<compile_context>
chip_gen: v6e
topology: v6e:2x2x1
jax: 0.10.0
libtpu: 0.0.40
codegen_flags: <defaults>
</compile_context>

<pallas_src>
import math

import jax
import jax.numpy as jnp
from jax import lax
from jax.experimental import pallas as pl
from jax.experimental.pallas import tpu as pltpu


def _sigmoid(x):
    # sigmoid(x) == 0.5 * tanh(0.5 * x) + 0.5 exactly; the tanh form is a single EUP
    # op instead of exp + divide (4 sigmoids + 2 tanh hit the lone EUP slot per step).
    return 0.5 * jnp.tanh(0.5 * x) + 0.5


def decoder_kernel(
    enc_ref,        # (Bb, P, E)   encoder features (matmul dtype)
    att1_ref,       # (Bb, P, A)   enc @ W_enc_att + b_enc_att + b_dec_att
    h0_ref,         # (Bb, D)      f32
    c0_ref,         # (Bb, D)      f32
    emb_gates_ref,  # (T, Bb, 4D)  emb @ W_ih_emb + b_ih + b_hh (merged gate stream)
    w_h_all_ref,    # (D, A+E+4D)  [W_dec_att | W_fbeta | W_hh] fused h-side weights
    wa_all_ref,     # (E, 4D)      awe half of W_ih (already gate-fused [i|f|g|o])
    w_full_ref,     # (1, 1, A)    full_att weight row (pre-shaped, no in-kernel bcast op)
    b_fbeta_ref,    # (1, E)       f32
    h_out_ref,      # (T, Bb, D)   f32
    alpha_out_ref,  # (T, Bb, P)   f32
):
    T, Bb, D = h_out_ref.shape
    P = alpha_out_ref.shape[2]
    A = w_full_ref.shape[2]
    E = b_fbeta_ref.shape[1]
    cdtype = w_h_all_ref.dtype

    def step(t, carry):
        h, c = carry  # (Bb, D) f32 recurrent state

        # --- One wide MXU dot for everything that depends on h this step:
        #     [att2 | f_beta pre-activation | h-side LSTM gate pre-activations].
        hp = jnp.dot(h.astype(cdtype), w_h_all_ref[...],
                     preferred_element_type=jnp.float32)            # (Bb, A+E+4D)
        att2 = hp[:, :A]
        fbeta_pre = hp[:, A:A + E]
        h_gates = hp[:, A + E:]

        # --- Attention scores + softmax over pixels.
        # b_dec_att already folded into att1; b_full dropped (softmax shift-invariant).
        att = jnp.maximum(att1_ref[...] + att2[:, None, :], 0.0)     # (Bb, P, A) f32
        # Score reduce stays on VPU/XLU: an MXU matvec here yields an N=1 result with
        # P on the sublane axis and would force a cross-lane relayout before softmax /
        # the awe contraction; the add+relu above is the same O(B*P*A) VALU work anyway.
        # TODO(synk): at realistic shapes, evaluate a transposed (B, A, P) att1 layout
        # that keeps this score GEMV on the MXU with P lane-dense.
        e = jnp.sum(att * w_full_ref[...], axis=-1)                  # (Bb, P)
        e_max = jnp.max(e, axis=1, keepdims=True)
        e_exp = jnp.exp(e - e_max)
        # Exact normalization keeps the 1e-4 f32 validation; switch to
        # pl.reciprocal(denom, approx=True) once the tolerance is relaxed.
        alpha = e_exp / jnp.sum(e_exp, axis=1, keepdims=True)        # (Bb, P) f32

        # --- Attention-weighted encoding on the MXU (batched (1,P)@(P,E) matvec).
        awe = jnp.einsum(
            "bqp,bpe->bqe", alpha[:, None, :].astype(cdtype), enc_ref[...],
            preferred_element_type=jnp.float32)[:, 0, :]             # (Bb, E) f32

        gate = _sigmoid(fbeta_pre + b_fbeta_ref[...])
        awe = gate * awe

        # --- LSTM cell: one fused (Bb,E)@(E,4D) dot for the awe side; embedding side
        #     + both LSTM biases were precomputed outside; h side came from hp above.
        gates = (emb_gates_ref[t]
                 + jnp.dot(awe.astype(cdtype), wa_all_ref[...],
                           preferred_element_type=jnp.float32)
                 + h_gates)                                          # (Bb, 4D)
        i_g = _sigmoid(gates[:, 0 * D:1 * D])
        f_g = _sigmoid(gates[:, 1 * D:2 * D])
        g_g = jnp.tanh(gates[:, 2 * D:3 * D])
        o_g = _sigmoid(gates[:, 3 * D:4 * D])
        c_new = f_g * c + i_g * g_g
        h_new = o_g * jnp.tanh(c_new)

        # Outputs stay VMEM-resident for the whole grid step; lane-dense at realistic
        # D (multiple of 128). HBM writeback happens once per batch block.
        h_out_ref[t] = h_new
        alpha_out_ref[t] = alpha
        return (h_new, c_new)

    # Full unroll only for short toy sequences; partial unroll at realistic T keeps
    # LLO scheduling visibility without the 64-vreg register-pressure cliff.
    unroll = T if T <= 8 else 4
    lax.fori_loop(0, T, step, (h0_ref[...], c0_ref[...]), unroll=unroll)


def _pick_batch_block(batch):
    for bb in (16, 8):
        if batch % bb == 0:
            return bb
    return batch


def decoder_forward(params, encoder_out, encoded_captions, *,
                    matmul_dtype=jnp.float32, batch_block=None):
    B = encoder_out.shape[0]
    E = encoder_out.shape[-1]
    enc = encoder_out.reshape(B, -1, E)                       # (B, P, E)
    P = enc.shape[1]
    T_dec = encoded_captions.shape[1] - 1
    V = params["w_fc"].shape[1]
    D = params["w_init_h"].shape[1]
    A = params["w_dec_att"].shape[1]
    embed_dim = params["embedding"].shape[1]
    cdtype = jnp.dtype(matmul_dtype)

    # ---------- Hoisted, non-recurrent compute (plain XLA, full-batch MXU) ----------
    mean_enc = enc.mean(axis=1)                                            # (B, E)
    h0 = mean_enc @ params["w_init_h"] + params["b_init_h"]                # (B, D) f32 state
    c0 = mean_enc @ params["w_init_c"] + params["b_init_c"]                # (B, D)
    # Encoder half of the attention with the decoder-att bias folded in (removes a
    # per-step broadcast add inside the kernel).
    att1 = enc @ params["w_enc_att"] + params["b_enc_att"] + params["b_dec_att"]

    emb = jnp.take(params["embedding"], encoded_captions[:, :T_dec], axis=0)  # (B, T, embed)
    emb_t = jnp.transpose(emb, (1, 0, 2))                                  # (T, B, embed)
    w_ih_emb = params["w_ih"][:embed_dim]                                  # (embed, 4D)
    wa_all = params["w_ih"][embed_dim:]                                    # (E, 4D) awe half
    # One big matmul for the embedding half of the LSTM input projection; fold both
    # LSTM biases; keep it as a single merged (T, B, 4D) gate stream.
    emb_gates = (emb_t.reshape(T_dec * B, embed_dim) @ w_ih_emb
                 + params["b_ih"] + params["b_hh"]).reshape(T_dec, B, 4 * D)

    # Fused h-side weights: one (D, A+E+4D) RHS instead of six small per-step dots.
    w_h_all = jnp.concatenate(
        [params["w_dec_att"], params["w_fbeta"], params["w_hh"]], axis=1)
    w_full3 = params["w_full"].reshape(1, 1, A)

    # Matmul-dtype cast (bf16 for realistic deployments; f32 keeps 1e-4 validation).
    enc_c = enc.astype(cdtype)
    att1_c = att1.astype(cdtype)
    emb_gates_c = emb_gates.astype(cdtype)
    w_h_all_c = w_h_all.astype(cdtype)
    wa_all_c = wa_all.astype(cdtype)
    w_full3_c = w_full3.astype(cdtype)
    b_fbeta = params["b_fbeta"]

    # ---------- Batch grid: bounded VMEM, pipelined DMA, megacore-parallel ----------
    Bb = batch_block if batch_block is not None else _pick_batch_block(B)
    assert B % Bb == 0, "batch_block must divide batch"
    grid = (B // Bb,)

    def nbytes(shape, dt):
        return math.prod(shape) * jnp.dtype(dt).itemsize

    resident = (
        nbytes((Bb, P, E), cdtype) + nbytes((Bb, P, A), cdtype)
        + 2 * nbytes((Bb, D), jnp.float32)
        + nbytes((T_dec, Bb, 4 * D), cdtype)
        + nbytes((D, A + E + 4 * D), cdtype) + nbytes((E, 4 * D), cdtype)
        + nbytes((1, 1, A), cdtype) + nbytes((1, E), jnp.float32)
        + nbytes((T_dec, Bb, D), jnp.float32) + nbytes((T_dec, Bb, P), jnp.float32)
    )
    # Double-buffered inputs/outputs + working-set headroom; stay within v7x's 64 MiB.
    vmem_limit = int(min(64 * 1024 * 1024,
                         max(32 * 1024 * 1024, 2 * resident + (4 << 20))))

    in_specs = [
        pl.BlockSpec((Bb, P, E), lambda b: (b, 0, 0)),            # enc
        pl.BlockSpec((Bb, P, A), lambda b: (b, 0, 0)),            # att1
        pl.BlockSpec((Bb, D), lambda b: (b, 0)),                  # h0
        pl.BlockSpec((Bb, D), lambda b: (b, 0)),                  # c0
        pl.BlockSpec((T_dec, Bb, 4 * D), lambda b: (0, b, 0)),    # merged gate stream
        pl.BlockSpec((D, A + E + 4 * D), lambda b: (0, 0)),       # fused h-side weights
        pl.BlockSpec((E, 4 * D), lambda b: (0, 0)),               # fused awe-side weights
        pl.BlockSpec((1, 1, A), lambda b: (0, 0, 0)),             # full_att row
        pl.BlockSpec((1, E), lambda b: (0, 0)),                   # f_beta bias
    ]
    out_specs = (
        pl.BlockSpec((T_dec, Bb, D), lambda b: (0, b, 0)),
        pl.BlockSpec((T_dec, Bb, P), lambda b: (0, b, 0)),
    )

    h_all, alpha_all = pl.pallas_call(
        decoder_kernel,
        out_shape=(
            jax.ShapeDtypeStruct((T_dec, B, D), jnp.float32),
            jax.ShapeDtypeStruct((T_dec, B, P), jnp.float32),
        ),
        grid=grid,
        in_specs=in_specs,
        out_specs=out_specs,
        compiler_params=pltpu.CompilerParams(
            dimension_semantics=("parallel",),
            vmem_limit_bytes=vmem_limit,
        ),
    )(enc_c, att1_c, h0, c0, emb_gates_c,
      w_h_all_c, wa_all_c, w_full3_c, b_fbeta)

    # ---------- Hoisted output projection: one (B*T, D) @ (D, V) matmul ----------
    # TODO(synk): training-mode dropout (stateful RNG mask) not implemented; identity used.
    h_bt = jnp.transpose(h_all, (1, 0, 2))                     # small (T,B,D) transpose only
    preds = (h_bt.reshape(B * T_dec, D) @ params["w_fc"]
             + params["b_fc"]).reshape(B, T_dec, V)            # (B, T, V) directly
    alphas = jnp.transpose(alpha_all, (1, 0, 2))               # (B, T, P)
    return preds, alphas


# ------------------- pure-JAX reference for validation -------------------
def reference_forward(params, encoder_out, encoded_captions):
    B = encoder_out.shape[0]
    E = encoder_out.shape[-1]
    enc = encoder_out.reshape(B, -1, E)
    T_dec = encoded_captions.shape[1] - 1
    emb = jnp.take(params["embedding"], encoded_captions, axis=0)

    mean_enc = enc.mean(axis=1)
    h = mean_enc @ params["w_init_h"] + params["b_init_h"]
    c = mean_enc @ params["w_init_c"] + params["b_init_c"]
    att1 = enc @ params["w_enc_att"] + params["b_enc_att"]

    D = h.shape[1]
    preds_list, alpha_list = [], []
    for t in range(T_dec):
        att2 = h @ params["w_dec_att"] + params["b_dec_att"]
        att = jnp.maximum(att1 + att2[:, None, :], 0.0)
        e = jnp.sum(att * params["w_full"][None, :, :], axis=-1) + params["b_full"][0, 0]
        alpha = jax.nn.softmax(e, axis=1)
        awe = jnp.sum(enc * alpha[:, :, None], axis=1)
        gate = jax.nn.sigmoid(h @ params["w_fbeta"] + params["b_fbeta"])
        awe = gate * awe
        x = jnp.concatenate([emb[:, t, :], awe], axis=1)
        gates = x @ params["w_ih"] + params["b_ih"] + h @ params["w_hh"] + params["b_hh"]
        i_g = jax.nn.sigmoid(gates[:, 0 * D:1 * D])
        f_g = jax.nn.sigmoid(gates[:, 1 * D:2 * D])
        g_g = jnp.tanh(gates[:, 2 * D:3 * D])
        o_g = jax.nn.sigmoid(gates[:, 3 * D:4 * D])
        c = f_g * c + i_g * g_g
        h = o_g * jnp.tanh(c)
        preds_list.append(h @ params["w_fc"] + params["b_fc"])
        alpha_list.append(alpha)
    return jnp.stack(preds_list, axis=1), jnp.stack(alpha_list, axis=1)


def init_params(key, *, attention_dim, embed_dim, decoder_dim, vocab_size, encoder_dim):
    ks = jax.random.split(key, 16)

    def lin(k, n_in, n_out):
        # nn.Linear-style uniform init, weight stored pre-transposed as (in, out).
        bound = 1.0 / jnp.sqrt(n_in)
        kw, kb = jax.random.split(k)
        w = jax.random.uniform(kw, (n_in, n_out), jnp.float32, -bound, bound)
        b = jax.random.uniform(kb, (1, n_out), jnp.float32, -bound, bound)
        return w, b

    p = {}
    p["w_enc_att"], p["b_enc_att"] = lin(ks[0], encoder_dim, attention_dim)
    p["w_dec_att"], p["b_dec_att"] = lin(ks[1], decoder_dim, attention_dim)
    # full_att: Linear(attention_dim, 1); kept as (1, attention_dim) row + (1,1) bias.
    bound = 1.0 / jnp.sqrt(attention_dim)
    p["w_full"] = jax.random.uniform(ks[2], (1, attention_dim), jnp.float32, -bound, bound)
    p["b_full"] = jax.random.uniform(ks[3], (1, 1), jnp.float32, -bound, bound)
    p["w_init_h"], p["b_init_h"] = lin(ks[4], encoder_dim, decoder_dim)
    p["w_init_c"], p["b_init_c"] = lin(ks[5], encoder_dim, decoder_dim)
    p["w_fbeta"], p["b_fbeta"] = lin(ks[6], decoder_dim, encoder_dim)
    # LSTMCell: weights stored as (in, 4*hidden), gate order [i, f, g, o].
    p["w_ih"], p["b_ih"] = lin(ks[7], embed_dim + encoder_dim, 4 * decoder_dim)
    p["w_hh"], p["b_hh"] = lin(ks[8], decoder_dim, 4 * decoder_dim)
    # init_weights(): embedding & fc weight uniform(-0.1, 0.1), fc bias = 0.
    p["embedding"] = jax.random.uniform(ks[9], (vocab_size, embed_dim), jnp.float32, -0.1, 0.1)
    p["w_fc"] = jax.random.uniform(ks[10], (decoder_dim, vocab_size), jnp.float32, -0.1, 0.1)
    p["b_fc"] = jnp.zeros((1, vocab_size), jnp.float32)
    return p


if __name__ == "__main__":
    # Small, forward-consistent shapes.
    B, enc_img, E = 2, 4, 32           # encoder_out: (B, 4, 4, 32) -> P = 16 pixels
    A, embed_dim, D, V = 32, 32, 32, 64
    seq_len = 8                         # decode_length = 7

    key = jax.random.PRNGKey(0)
    kp, kx, kc = jax.random.split(key, 3)
    params = init_params(kp, attention_dim=A, embed_dim=embed_dim,
                         decoder_dim=D, vocab_size=V, encoder_dim=E)
    encoder_out = jax.random.normal(kx, (B, enc_img, enc_img, E), jnp.float32)
    encoded_captions = jax.random.randint(kc, (B, seq_len), 0, V, jnp.int32)

    # f32 matmul dtype here so the strict reference comparison holds; realistic
    # deployments should pass matmul_dtype=jnp.bfloat16 (and relax tolerances).
    preds, alphas = decoder_forward(params, encoder_out, encoded_captions)
    preds = jax.block_until_ready(preds)
    alphas = jax.block_until_ready(alphas)

    ref_preds, ref_alphas = reference_forward(params, encoder_out, encoded_captions)
    assert preds.shape == (B, seq_len - 1, V)
    assert alphas.shape == (B, seq_len - 1, enc_img * enc_img)
    assert jnp.allclose(preds, ref_preds, atol=1e-4, rtol=1e-4)
    assert jnp.allclose(alphas, ref_alphas, atol=1e-4, rtol=1e-4)

    print("KERNEL_OK")
</pallas_src>

<mosaic_0001>
module attributes {stable_mosaic.version = 11 : i64} {
  func.func @decoder_kernel(%arg0: i32, %arg1: memref<2x16x32xf32, #tpu.memory_space<vmem>>, %arg2: memref<2x16x32xf32, #tpu.memory_space<vmem>>, %arg3: memref<2x32xf32, #tpu.memory_space<vmem>>, %arg4: memref<2x32xf32, #tpu.memory_space<vmem>>, %arg5: memref<7x2x128xf32, #tpu.memory_space<vmem>>, %arg6: memref<32x192xf32, #tpu.memory_space<vmem>>, %arg7: memref<32x128xf32, #tpu.memory_space<vmem>>, %arg8: memref<1x1x32xf32, #tpu.memory_space<vmem>>, %arg9: memref<1x32xf32, #tpu.memory_space<vmem>>, %arg10: memref<7x2x32xf32, #tpu.memory_space<vmem>>, %arg11: memref<7x2x16xf32, #tpu.memory_space<vmem>>) attributes {dimension_semantics = [#tpu.dimension_semantics<parallel>], iteration_bounds = array<i64: 1>, scalar_prefetch = 0 : i64, scratch_operands = 0 : i64, tpu.core_type = #tpu.core_type<tc>, window_params = [{transform_indices = @transform_0, window_bounds = array<i64: 2, 16, 32>}, {transform_indices = @transform_1, window_bounds = array<i64: 2, 16, 32>}, {transform_indices = @transform_2, window_bounds = array<i64: 2, 32>}, {transform_indices = @transform_3, window_bounds = array<i64: 2, 32>}, {transform_indices = @transform_4, window_bounds = array<i64: 7, 2, 128>}, {pipeline_mode = #tpu.pipeline_mode<synchronous>, transform_indices = @transform_5, window_bounds = array<i64: 32, 192>}, {pipeline_mode = #tpu.pipeline_mode<synchronous>, transform_indices = @transform_6, window_bounds = array<i64: 32, 128>}, {pipeline_mode = #tpu.pipeline_mode<synchronous>, transform_indices = @transform_7, window_bounds = array<i64: 1, 1, 32>}, {pipeline_mode = #tpu.pipeline_mode<synchronous>, transform_indices = @transform_8, window_bounds = array<i64: 1, 32>}, {transform_indices = @transform_9, window_bounds = array<i64: 7, 2, 32>}, {transform_indices = @transform_10, window_bounds = array<i64: 7, 2, 16>}]} {
    %c0 = arith.constant 0 : index
    %c0_0 = arith.constant 0 : index
    %0 = vector.load %arg3[%c0, %c0_0] : memref<2x32xf32, #tpu.memory_space<vmem>>, vector<2x32xf32>
    %c0_1 = arith.constant 0 : index
    %c0_2 = arith.constant 0 : index
    %1 = vector.load %arg4[%c0_1, %c0_2] : memref<2x32xf32, #tpu.memory_space<vmem>>, vector<2x32xf32>
    %c0_i32 = arith.constant 0 : i32
    %c0_3 = arith.constant 0 : index
    %c0_4 = arith.constant 0 : index
    %2 = vector.load %arg6[%c0_3, %c0_4] : memref<32x192xf32, #tpu.memory_space<vmem>>, vector<32x192xf32>
    %cst = arith.constant dense<0.000000e+00> : vector<2x192xf32>
    %3 = tpu.matmul %0, %2, %cst {dimension_numbers = #tpu.dot_dimension_numbers<[1], [0], [0], [1], [0, 0, 1, 1], [], []>} : vector<2x32xf32>, vector<32x192xf32>, vector<2x192xf32> -> vector<2x192xf32>
    %4 = vector.extract_strided_slice %3 {offsets = [0, 0], sizes = [2, 32], strides = [1, 1]} : vector<2x192xf32> to vector<2x32xf32>
    %5 = vector.extract_strided_slice %3 {offsets = [0, 32], sizes = [2, 32], strides = [1, 1]} : vector<2x192xf32> to vector<2x32xf32>
    %6 = vector.extract_strided_slice %3 {offsets = [0, 64], sizes = [2, 128], strides = [1, 1]} : vector<2x192xf32> to vector<2x128xf32>
    %c0_5 = arith.constant 0 : index
    %c0_6 = arith.constant 0 : index
    %c0_7 = arith.constant 0 : index
    %7 = vector.load %arg2[%c0_5, %c0_6, %c0_7] : memref<2x16x32xf32, #tpu.memory_space<vmem>>, vector<2x16x32xf32>
    %8 = vector.shape_cast %4 : vector<2x32xf32> to vector<2x1x32xf32>
    %9 = vector.broadcast %8 : vector<2x1x32xf32> to vector<2x16x32xf32>
    %10 = arith.addf %7, %9 : vector<2x16x32xf32>
    %cst_8 = arith.constant 0.000000e+00 : f32
    %11 = vector.broadcast %cst_8 : f32 to vector<2x16x32xf32>
    %12 = arith.maximumf %10, %11 : vector<2x16x32xf32>
    %c0_9 = arith.constant 0 : index
    %c0_10 = arith.constant 0 : index
    %c0_11 = arith.constant 0 : index
    %13 = vector.load %arg8[%c0_9, %c0_10, %c0_11] : memref<1x1x32xf32, #tpu.memory_space<vmem>>, vector<1x1x32xf32>
    %14 = vector.broadcast %13 : vector<1x1x32xf32> to vector<2x16x32xf32>
    %15 = arith.mulf %12, %14 : vector<2x16x32xf32>
    %cst_12 = arith.constant dense<0.000000e+00> : vector<2x16xf32>
    %16 = vector.multi_reduction <add>, %15, %cst_12 [2] : vector<2x16x32xf32> to vector<2x16xf32>
    %cst_13 = arith.constant dense<0xFF800000> : vector<2xf32>
    %17 = vector.multi_reduction <maximumf>, %16, %cst_13 [1] : vector<2x16xf32> to vector<2xf32>
    %18 = vector.shape_cast %17 : vector<2xf32> to vector<2x1xf32>
    %19 = vector.broadcast %18 : vector<2x1xf32> to vector<2x16xf32>
    %20 = arith.subf %16, %19 : vector<2x16xf32>
    %21 = math.exp %20 : vector<2x16xf32>
    %cst_14 = arith.constant dense<0.000000e+00> : vector<2xf32>
    %22 = vector.multi_reduction <add>, %21, %cst_14 [1] : vector<2x16xf32> to vector<2xf32>
    %23 = vector.shape_cast %22 : vector<2xf32> to vector<2x1xf32>
    %24 = vector.broadcast %23 : vector<2x1xf32> to vector<2x16xf32>
    %25 = arith.divf %21, %24 : vector<2x16xf32>
    %26 = vector.shape_cast %25 : vector<2x16xf32> to vector<2x1x16xf32>
    %c0_15 = arith.constant 0 : index
    %c0_16 = arith.constant 0 : index
    %c0_17 = arith.constant 0 : index
    %27 = vector.load %arg1[%c0_15, %c0_16, %c0_17] : memref<2x16x32xf32, #tpu.memory_space<vmem>>, vector<2x16x32xf32>
    "tpu.trace_start"() <{level = 10 : i32, message = "bqp,bpe->bqe"}> : () -> ()
    %cst_18 = arith.constant dense<0.000000e+00> : vector<2x1x32xf32>
    %28 = tpu.matmul %26, %27, %cst_18 {dimension_numbers = #tpu.dot_dimension_numbers<[2], [1], [1], [2], [0, 0, 0, 1, 1, 2], [0], [0]>} : vector<2x1x16xf32>, vector<2x16x32xf32>, vector<2x1x32xf32> -> vector<2x1x32xf32>
    "tpu.trace_stop"() : () -> ()
    %29 = vector.shape_cast %28 : vector<2x1x32xf32> to vector<2x32xf32>
    %c0_19 = arith.constant 0 : index
    %c0_20 = arith.constant 0 : index
    %30 = vector.load %arg9[%c0_19, %c0_20] : memref<1x32xf32, #tpu.memory_space<vmem>>, vector<1x32xf32>
    %31 = vector.broadcast %30 : vector<1x32xf32> to vector<2x32xf32>
    %32 = arith.addf %5, %31 : vector<2x32xf32>
    %cst_21 = arith.constant 5.000000e-01 : f32
    %33 = vector.broadcast %cst_21 : f32 to vector<2x32xf32>
    %34 = arith.mulf %33, %32 : vector<2x32xf32>
    %35 = math.tanh %34 : vector<2x32xf32>
    %cst_22 = arith.constant 5.000000e-01 : f32
    %36 = vector.broadcast %cst_22 : f32 to vector<2x32xf32>
    %37 = arith.mulf %36, %35 : vector<2x32xf32>
    %cst_23 = arith.constant 5.000000e-01 : f32
    %38 = vector.broadcast %cst_23 : f32 to vector<2x32xf32>
    %39 = arith.addf %37, %38 : vector<2x32xf32>
    %40 = arith.mulf %39, %29 : vector<2x32xf32>
    %41 = arith.index_cast %c0_i32 : i32 to index
    %c0_24 = arith.constant 0 : index
    %c0_25 = arith.constant 0 : index
    %42 = vector.load %arg5[%41, %c0_24, %c0_25] : memref<7x2x128xf32, #tpu.memory_space<vmem>>, vector<1x2x128xf32>
    %43 = vector.shape_cast %42 : vector<1x2x128xf32> to vector<2x128xf32>
    %c0_26 = arith.constant 0 : index
    %c0_27 = arith.constant 0 : index
    %44 = vector.load %arg7[%c0_26, %c0_27] : memref<32x128xf32, #tpu.memory_space<vmem>>, vector<32x128xf32>
    %cst_28 = arith.constant dense<0.000000e+00> : vector<2x128xf32>
    %45 = tpu.matmul %40, %44, %cst_28 {dimension_numbers = #tpu.dot_dimension_numbers<[1], [0], [0], [1], [0, 0, 1, 1], [], []>} : vector<2x32xf32>, vector<32x128xf32>, vector<2x128xf32> -> vector<2x128xf32>
    %46 = arith.addf %43, %45 : vector<2x128xf32>
    %47 = arith.addf %46, %6 : vector<2x128xf32>
    %48 = vector.extract_strided_slice %47 {offsets = [0, 0], sizes = [2, 32], strides = [1, 1]} : vector<2x128xf32> to vector<2x32xf32>
    %cst_29 = arith.constant 5.000000e-01 : f32
    %49 = vector.broadcast %cst_29 : f32 to vector<2x32xf32>
    %50 = arith.mulf %49, %48 : vector<2x32xf32>
    %51 = math.tanh %50 : vector<2x32xf32>
    %cst_30 = arith.constant 5.000000e-01 : f32
    %52 = vector.broadcast %cst_30 : f32 to vector<2x32xf32>
    %53 = arith.mulf %52, %51 : vector<2x32xf32>
    %cst_31 = arith.constant 5.000000e-01 : f32
    %54 = vector.broadcast %cst_31 : f32 to vector<2x32xf32>
    %55 = arith.addf %53, %54 : vector<2x32xf32>
    %56 = vector.extract_strided_slice %47 {offsets = [0, 32], sizes = [2, 32], strides = [1, 1]} : vector<2x128xf32> to vector<2x32xf32>
    %cst_32 = arith.constant 5.000000e-01 : f32
    %57 = vector.broadcast %cst_32 : f32 to vector<2x32xf32>
    %58 = arith.mulf %57, %56 : vector<2x32xf32>
    %59 = math.tanh %58 : vector<2x32xf32>
    %cst_33 = arith.constant 5.000000e-01 : f32
    %60 = vector.broadcast %cst_33 : f32 to vector<2x32xf32>
    %61 = arith.mulf %60, %59 : vector<2x32xf32>
    %cst_34 = arith.constant 5.000000e-01 : f32
    %62 = vector.broadcast %cst_34 : f32 to vector<2x32xf32>
    %63 = arith.addf %61, %62 : vector<2x32xf32>
    %64 = vector.extract_strided_slice %47 {offsets = [0, 64], sizes = [2, 32], strides = [1, 1]} : vector<2x128xf32> to vector<2x32xf32>
    %65 = math.tanh %64 : vector<2x32xf32>
    %66 = vector.extract_strided_slice %47 {offsets = [0, 96], sizes = [2, 32], strides = [1, 1]} : vector<2x128xf32> to vector<2x32xf32>
    %cst_35 = arith.constant 5.000000e-01 : f32
    %67 = vector.broadcast %cst_35 : f32 to vector<2x32xf32>
    %68 = arith.mulf %67, %66 : vector<2x32xf32>
    %69 = math.tanh %68 : vector<2x32xf32>
    %cst_36 = arith.constant 5.000000e-01 : f32
    %70 = vector.broadcast %cst_36 : f32 to vector<2x32xf32>
    %71 = arith.mulf %70, %69 : vector<2x32xf32>
    %cst_37 = arith.constant 5.000000e-01 : f32
    %72 = vector.broadcast %cst_37 : f32 to vector<2x32xf32>
    %73 = arith.addf %71, %72 : vector<2x32xf32>
    %74 = arith.mulf %63, %1 : vector<2x32xf32>
    %75 = arith.mulf %55, %65 : vector<2x32xf32>
    %76 = arith.addf %74, %75 : vector<2x32xf32>
    %77 = math.tanh %76 : vector<2x32xf32>
    %78 = arith.mulf %73, %77 : vector<2x32xf32>
    %79 = arith.index_cast %c0_i32 : i32 to index
    %c0_38 = arith.constant 0 : index
    %c0_39 = arith.constant 0 : index
    %80 = vector.load %arg10[%79, %c0_38, %c0_39] : memref<7x2x32xf32, #tpu.memory_space<vmem>>, vector<1x2x32xf32>
    %81 = vector.shape_cast %80 : vector<1x2x32xf32> to vector<2x32xf32>
    %82 = vector.shape_cast %78 : vector<2x32xf32> to vector<1x2x32xf32>
    tpu.vector_store %arg10[%79, %c0_38, %c0_39], %82 {strides = array<i32>} : memref<7x2x32xf32, #tpu.memory_space<vmem>>, vector<1x2x32xf32>,
    %83 = arith.index_cast %c0_i32 : i32 to index
    %c0_40 = arith.constant 0 : index
    %c0_41 = arith.constant 0 : index
    %84 = vector.load %arg11[%83, %c0_40, %c0_41] : memref<7x2x16xf32, #tpu.memory_space<vmem>>, vector<1x2x16xf32>
    %85 = vector.shape_cast %84 : vector<1x2x16xf32> to vector<2x16xf32>
    %86 = vector.shape_cast %25 : vector<2x16xf32> to vector<1x2x16xf32>
    tpu.vector_store %arg11[%83, %c0_40, %c0_41], %86 {strides = array<i32>} : memref<7x2x16xf32, #tpu.memory_space<vmem>>, vector<1x2x16xf32>,
    %c1_i32 = arith.constant 1 : i32
    %c0_42 = arith.constant 0 : index
    %c0_43 = arith.constant 0 : index
    %87 = vector.load %arg6[%c0_42, %c0_43] : memref<32x192xf32, #tpu.memory_space<vmem>>, vector<32x192xf32>
    %cst_44 = arith.constant dense<0.000000e+00> : vector<2x192xf32>
    %88 = tpu.matmul %78, %87, %cst_44 {dimension_numbers = #tpu.dot_dimension_numbers<[1], [0], [0], [1], [0, 0, 1, 1], [], []>} : vector<2x32xf32>, vector<32x192xf32>, vector<2x192xf32> -> vector<2x192xf32>
    %89 = vector.extract_strided_slice %88 {offsets = [0, 0], sizes = [2, 32], strides = [1, 1]} : vector<2x192xf32> to vector<2x32xf32>
    %90 = vector.extract_strided_slice %88 {offsets = [0, 32], sizes = [2, 32], strides = [1, 1]} : vector<2x192xf32> to vector<2x32xf32>
    %91 = vector.extract_strided_slice %88 {offsets = [0, 64], sizes = [2, 128], strides = [1, 1]} : vector<2x192xf32> to vector<2x128xf32>
    %c0_45 = arith.constant 0 : index
    %c0_46 = arith.constant 0 : index
    %c0_47 = arith.constant 0 : index
    %92 = vector.load %arg2[%c0_45, %c0_46, %c0_47] : memref<2x16x32xf32, #tpu.memory_space<vmem>>, vector<2x16x32xf32>
    %93 = vector.shape_cast %89 : vector<2x32xf32> to vector<2x1x32xf32>
    %94 = vector.broadcast %93 : vector<2x1x32xf32> to vector<2x16x32xf32>
    %95 = arith.addf %92, %94 : vector<2x16x32xf32>
    %cst_48 = arith.constant 0.000000e+00 : f32
    %96 = vector.broadcast %cst_48 : f32 to vector<2x16x32xf32>
    %97 = arith.maximumf %95, %96 : vector<2x16x32xf32>
    %c0_49 = arith.constant 0 : index
    %c0_50 = arith.constant 0 : index
    %c0_51 = arith.constant 0 : index
    %98 = vector.load %arg8[%c0_49, %c0_50, %c0_51] : memref<1x1x32xf32, #tpu.memory_space<vmem>>, vector<1x1x32xf32>
    %99 = vector.broadcast %98 : vector<1x1x32xf32> to vector<2x16x32xf32>
    %100 = arith.mulf %97, %99 : vector<2x16x32xf32>
    %cst_52 = arith.constant dense<0.000000e+00> : vector<2x16xf32>
    %101 = vector.multi_reduction <add>, %100, %cst_52 [2] : vector<2x16x32xf32> to vector<2x16xf32>
    %cst_53 = arith.constant dense<0xFF800000> : vector<2xf32>
    %102 = vector.multi_reduction <maximumf>, %101, %cst_53 [1] : vector<2x16xf32> to vector<2xf32>
    %103 = vector.shape_cast %102 : vector<2xf32> to vector<2x1xf32>
    %104 = vector.broadcast %103 : vector<2x1xf32> to vector<2x16xf32>
    %105 = arith.subf %101, %104 : vector<2x16xf32>
    %106 = math.exp %105 : vector<2x16xf32>
    %cst_54 = arith.constant dense<0.000000e+00> : vector<2xf32>
    %107 = vector.multi_reduction <add>, %106, %cst_54 [1] : vector<2x16xf32> to vector<2xf32>
    %108 = vector.shape_cast %107 : vector<2xf32> to vector<2x1xf32>
    %109 = vector.broadcast %108 : vector<2x1xf32> to vector<2x16xf32>
    %110 = arith.divf %106, %109 : vector<2x16xf32>
    %111 = vector.shape_cast %110 : vector<2x16xf32> to vector<2x1x16xf32>
    %c0_55 = arith.constant 0 : index
    %c0_56 = arith.constant 0 : index
    %c0_57 = arith.constant 0 : index
    %112 = vector.load %arg1[%c0_55, %c0_56, %c0_57] : memref<2x16x32xf32, #tpu.memory_space<vmem>>, vector<2x16x32xf32>
    "tpu.trace_start"() <{level = 10 : i32, message = "bqp,bpe->bqe"}> : () -> ()
    %cst_58 = arith.constant dense<0.000000e+00> : vector<2x1x32xf32>
    %113 = tpu.matmul %111, %112, %cst_58 {dimension_numbers = #tpu.dot_dimension_numbers<[2], [1], [1], [2], [0, 0, 0, 1, 1, 2], [0], [0]>} : vector<2x1x16xf32>, vector<2x16x32xf32>, vector<2x1x32xf32> -> vector<2x1x32xf32>
    "tpu.trace_stop"() : () -> ()
    %114 = vector.shape_cast %113 : vector<2x1x32xf32> to vector<2x32xf32>
    %c0_59 = arith.constant 0 : index
    %c0_60 = arith.constant 0 : index
    %115 = vector.load %arg9[%c0_59, %c0_60] : memref<1x32xf32, #tpu.memory_space<vmem>>, vector<1x32xf32>
    %116 = vector.broadcast %115 : vector<1x32xf32> to vector<2x32xf32>
    %117 = arith.addf %90, %116 : vector<2x32xf32>
    %cst_61 = arith.constant 5.000000e-01 : f32
    %118 = vector.broadcast %cst_61 : f32 to vector<2x32xf32>
    %119 = arith.mulf %118, %117 : vector<2x32xf32>
    %120 = math.tanh %119 : vector<2x32xf32>
    %cst_62 = arith.constant 5.000000e-01 : f32
    %121 = vector.broadcast %cst_62 : f32 to vector<2x32xf32>
    %122 = arith.mulf %121, %120 : vector<2x32xf32>
    %cst_63 = arith.constant 5.000000e-01 : f32
    %123 = vector.broadcast %cst_63 : f32 to vector<2x32xf32>
    %124 = arith.addf %122, %123 : vector<2x32xf32>
    %125 = arith.mulf %124, %114 : vector<2x32xf32>
    %126 = arith.index_cast %c1_i32 : i32 to index
    %c0_64 = arith.constant 0 : index
    %c0_65 = arith.constant 0 : index
    %127 = vector.load %arg5[%126, %c0_64, %c0_65] : memref<7x2x128xf32, #tpu.memory_space<vmem>>, vector<1x2x128xf32>
    %128 = vector.shape_cast %127 : vector<1x2x128xf32> to vector<2x128xf32>
    %c0_66 = arith.constant 0 : index
    %c0_67 = arith.constant 0 : index
    %129 = vector.load %arg7[%c0_66, %c0_67] : memref<32x128xf32, #tpu.memory_space<vmem>>, vector<32x128xf32>
    %cst_68 = arith.constant dense<0.000000e+00> : vector<2x128xf32>
    %130 = tpu.matmul %125, %129, %cst_68 {dimension_numbers = #tpu.dot_dimension_numbers<[1], [0], [0], [1], [0, 0, 1, 1], [], []>} : vector<2x32xf32>, vector<32x128xf32>, vector<2x128xf32> -> vector<2x128xf32>
    %131 = arith.addf %128, %130 : vector<2x128xf32>
    %132 = arith.addf %131, %91 : vector<2x128xf32>
    %133 = vector.extract_strided_slice %132 {offsets = [0, 0], sizes = [2, 32], strides = [1, 1]} : vector<2x128xf32> to vector<2x32xf32>
    %cst_69 = arith.constant 5.000000e-01 : f32
    %134 = vector.broadcast %cst_69 : f32 to vector<2x32xf32>
    %135 = arith.mulf %134, %133 : vector<2x32xf32>
    %136 = math.tanh %135 : vector<2x32xf32>
    %cst_70 = arith.constant 5.000000e-01 : f32
    %137 = vector.broadcast %cst_70 : f32 to vector<2x32xf32>
    %138 = arith.mulf %137, %136 : vector<2x32xf32>
    %cst_71 = arith.constant 5.000000e-01 : f32
    %139 = vector.broadcast %cst_71 : f32 to vector<2x32xf32>
    %140 = arith.addf %138, %139 : vector<2x32xf32>
    %141 = vector.extract_strided_slice %132 {offsets = [0, 32], sizes = [2, 32], strides = [1, 1]} : vector<2x128xf32> to vector<2x32xf32>
    %cst_72 = arith.constant 5.000000e-01 : f32
    %142 = vector.broadcast %cst_72 : f32 to vector<2x32xf32>
    %143 = arith.mulf %142, %141 : vector<2x32xf32>
    %144 = math.tanh %143 : vector<2x32xf32>
    %cst_73 = arith.constant 5.000000e-01 : f32
    %145 = vector.broadcast %cst_73 : f32 to vector<2x32xf32>
    %146 = arith.mulf %145, %144 : vector<2x32xf32>
    %cst_74 = arith.constant 5.000000e-01 : f32
    %147 = vector.broadcast %cst_74 : f32 to vector<2x32xf32>
    %148 = arith.addf %146, %147 : vector<2x32xf32>
    %149 = vector.extract_strided_slice %132 {offsets = [0, 64], sizes = [2, 32], strides = [1, 1]} : vector<2x128xf32> to vector<2x32xf32>
    %150 = math.tanh %149 : vector<2x32xf32>
    %151 = vector.extract_strided_slice %132 {offsets = [0, 96], sizes = [2, 32], strides = [1, 1]} : vector<2x128xf32> to vector<2x32xf32>
    %cst_75 = arith.constant 5.000000e-01 : f32
    %152 = vector.broadcast %cst_75 : f32 to vector<2x32xf32>
    %153 = arith.mulf %152, %151 : vector<2x32xf32>
    %154 = math.tanh %153 : vector<2x32xf32>
    %cst_76 = arith.constant 5.000000e-01 : f32
    %155 = vector.broadcast %cst_76 : f32 to vector<2x32xf32>
    %156 = arith.mulf %155, %154 : vector<2x32xf32>
    %cst_77 = arith.constant 5.000000e-01 : f32
    %157 = vector.broadcast %cst_77 : f32 to vector<2x32xf32>
    %158 = arith.addf %156, %157 : vector<2x32xf32>
    %159 = arith.mulf %148, %76 : vector<2x32xf32>
    %160 = arith.mulf %140, %150 : vector<2x32xf32>
    %161 = arith.addf %159, %160 : vector<2x32xf32>
    %162 = math.tanh %161 : vector<2x32xf32>
    %163 = arith.mulf %158, %162 : vector<2x32xf32>
    %164 = arith.index_cast %c1_i32 : i32 to index
    %c0_78 = arith.constant 0 : index
    %c0_79 = arith.constant 0 : index
    %165 = vector.load %arg10[%164, %c0_78, %c0_79] : memref<7x2x32xf32, #tpu.memory_space<vmem>>, vector<1x2x32xf32>
    %166 = vector.shape_cast %165 : vector<1x2x32xf32> to vector<2x32xf32>
    %167 = vector.shape_cast %163 : vector<2x32xf32> to vector<1x2x32xf32>
    tpu.vector_store %arg10[%164, %c0_78, %c0_79], %167 {strides = array<i32>} : memref<7x2x32xf32, #tpu.memory_space<vmem>>, vector<1x2x32xf32>,
    %168 = arith.index_cast %c1_i32 : i32 to index
    %c0_80 = arith.constant 0 : index
    %c0_81 = arith.constant 0 : index
    %169 = vector.load %arg11[%168, %c0_80, %c0_81] : memref<7x2x16xf32, #tpu.memory_space<vmem>>, vector<1x2x16xf32>
    %170 = vector.shape_cast %169 : vector<1x2x16xf32> to vector<2x16xf32>
    %171 = vector.shape_cast %110 : vector<2x16xf32> to vector<1x2x16xf32>
    tpu.vector_store %arg11[%168, %c0_80, %c0_81], %171 {strides = array<i32>} : memref<7x2x16xf32, #tpu.memory_space<vmem>>, vector<1x2x16xf32>,
    %c2_i32 = arith.constant 2 : i32
    %c0_82 = arith.constant 0 : index
    %c0_83 = arith.constant 0 : index
    %172 = vector.load %arg6[%c0_82, %c0_83] : memref<32x192xf32, #tpu.memory_space<vmem>>, vector<32x192xf32>
    %cst_84 = arith.constant dense<0.000000e+00> : vector<2x192xf32>
    %173 = tpu.matmul %163, %172, %cst_84 {dimension_numbers = #tpu.dot_dimension_numbers<[1], [0], [0], [1], [0, 0, 1, 1], [], []>} : vector<2x32xf32>, vector<32x192xf32>, vector<2x192xf32> -> vector<2x192xf32>
    %174 = vector.extract_strided_slice %173 {offsets = [0, 0], sizes = [2, 32], strides = [1, 1]} : vector<2x192xf32> to vector<2x32xf32>
    %175 = vector.extract_strided_slice %173 {offsets = [0, 32], sizes = [2, 32], strides = [1, 1]} : vector<2x192xf32> to vector<2x32xf32>
    %176 = vector.extract_strided_slice %173 {offsets = [0, 64], sizes = [2, 128], strides = [1, 1]} : vector<2x192xf32> to vector<2x128xf32>
    %c0_85 = arith.constant 0 : index
    %c0_86 = arith.constant 0 : index
    %c0_87 = arith.constant 0 : index
    %177 = vector.load %arg2[%c0_85, %c0_86, %c0_87] : memref<2x16x32xf32, #tpu.memory_space<vmem>>, vector<2x16x32xf32>
    %178 = vector.shape_cast %174 : vector<2x32xf32> to vector<2x1x32xf32>
    %179 = vector.broadcast %178 : vector<2x1x32xf32> to vector<2x16x32xf32>
    %180 = arith.addf %177, %179 : vector<2x16x32xf32>
    %cst_88 = arith.constant 0.000000e+00 : f32
    %181 = vector.broadcast %cst_88 : f32 to vector<2x16x32xf32>
    %182 = arith.maximumf %180, %181 : vector<2x16x32xf32>
    %c0_89 = arith.constant 0 : index
    %c0_90 = arith.constant 0 : index
    %c0_91 = arith.constant 0 : index
    %183 = vector.load %arg8[%c0_89, %c0_90, %c0_91] : memref<1x1x32xf32, #tpu.memory_space<vmem>>, vector<1x1x32xf32>
    %184 = vector.broadcast %183 : vector<1x1x32xf32> to vector<2x16x32xf32>
    %185 = arith.mulf %182, %184 : vector<2x16x32xf32>
    %cst_92 = arith.constant dense<0.000000e+00> : vector<2x16xf32>
    %186 = vector.multi_reduction <add>, %185, %cst_92 [2] : vector<2x16x32xf32> to vector<2x16xf32>
    %cst_93 = arith.constant dense<0xFF800000> : vector<2xf32>
    %187 = vector.multi_reduction <maximumf>, %186, %cst_93 [1] : vector<2x16xf32> to vector<2xf32>
    %188 = vector.shape_cast %187 : vector<2xf32> to vector<2x1xf32>
    %189 = vector.broadcast %188 : vector<2x1xf32> to vector<2x16xf32>
    %190 = arith.subf %186, %189 : vector<2x16xf32>
    %191 = math.exp %190 : vector<2x16xf32>
    %cst_94 = arith.constant dense<0.000000e+00> : vector<2xf32>
    %192 = vector.multi_reduction <add>, %191, %cst_94 [1] : vector<2x16xf32> to vector<2xf32>
    %193 = vector.shape_cast %192 : vector<2xf32> to vector<2x1xf32>
    %194 = vector.broadcast %193 : vector<2x1xf32> to vector<2x16xf32>
    %195 = arith.divf %191, %194 : vector<2x16xf32>
    %196 = vector.shape_cast %195 : vector<2x16xf32> to vector<2x1x16xf32>
    %c0_95 = arith.constant 0 : index
    %c0_96 = arith.constant 0 : index
    %c0_97 = arith.constant 0 : index
    %197 = vector.load %arg1[%c0_95, %c0_96, %c0_97] : memref<2x16x32xf32, #tpu.memory_space<vmem>>, vector<2x16x32xf32>
    "tpu.trace_start"() <{level = 10 : i32, message = "bqp,bpe->bqe"}> : () -> ()
    %cst_98 = arith.constant dense<0.000000e+00> : vector<2x1x32xf32>
    %198 = tpu.matmul %196, %197, %cst_98 {dimension_numbers = #tpu.dot_dimension_numbers<[2], [1], [1], [2], [0, 0, 0, 1, 1, 2], [0], [0]>} : vector<2x1x16xf32>, vector<2x16x32xf32>, vector<2x1x32xf32> -> vector<2x1x32xf32>
    "tpu.trace_stop"() : () -> ()
    %199 = vector.shape_cast %198 : vector<2x1x32xf32> to vector<2x32xf32>
    %c0_99 = arith.constant 0 : index
    %c0_100 = arith.constant 0 : index
    %200 = vector.load %arg9[%c0_99, %c0_100] : memref<1x32xf32, #tpu.memory_space<vmem>>, vector<1x32xf32>
    %201 = vector.broadcast %200 : vector<1x32xf32> to vector<2x32xf32>
    %202 = arith.addf %175, %201 : vector<2x32xf32>
    %cst_101 = arith.constant 5.000000e-01 : f32
    %203 = vector.broadcast %cst_101 : f32 to vector<2x32xf32>
    %204 = arith.mulf %203, %202 : vector<2x32xf32>
    %205 = math.tanh %204 : vector<2x32xf32>
    %cst_102 = arith.constant 5.000000e-01 : f32
    %206 = vector.broadcast %cst_102 : f32 to vector<2x32xf32>
    %207 = arith.mulf %206, %205 : vector<2x32xf32>
    %cst_103 = arith.constant 5.000000e-01 : f32
    %208 = vector.broadcast %cst_103 : f32 to vector<2x32xf32>
    %209 = arith.addf %207, %208 : vector<2x32xf32>
    %210 = arith.mulf %209, %199 : vector<2x32xf32>
    %211 = arith.index_cast %c2_i32 : i32 to index
    %c0_104 = arith.constant 0 : index
    %c0_105 = arith.constant 0 : index
    %212 = vector.load %arg5[%211, %c0_104, %c0_105] : memref<7x2x128xf32, #tpu.memory_space<vmem>>, vector<1x2x128xf32>
    %213 = vector.shape_cast %212 : vector<1x2x128xf32> to vector<2x128xf32>
    %c0_106 = arith.constant 0 : index
    %c0_107 = arith.constant 0 : index
    %214 = vector.load %arg7[%c0_106, %c0_107] : memref<32x128xf32, #tpu.memory_space<vmem>>, vector<32x128xf32>
    %cst_108 = arith.constant dense<0.000000e+00> : vector<2x128xf32>
    %215 = tpu.matmul %210, %214, %cst_108 {dimension_numbers = #tpu.dot_dimension_numbers<[1], [0], [0], [1], [0, 0, 1, 1], [], []>} : vector<2x32xf32>, vector<32x128xf32>, vector<2x128xf32> -> vector<2x128xf32>
    %216 = arith.addf %213, %215 : vector<2x128xf32>
    %217 = arith.addf %216, %176 : vector<2x128xf32>
    %218 = vector.extract_strided_slice %217 {offsets = [0, 0], sizes = [2, 32], strides = [1, 1]} : vector<2x128xf32> to vector<2x32xf32>
    %cst_109 = arith.constant 5.000000e-01 : f32
    %219 = vector.broadcast %cst_109 : f32 to vector<2x32xf32>
    %220 = arith.mulf %219, %218 : vector<2x32xf32>
    %221 = math.tanh %220 : vector<2x32xf32>
    %cst_110 = arith.constant 5.000000e-01 : f32
    %222 = vector.broadcast %cst_110 : f32 to vector<2x32xf32>
    %223 = arith.mulf %222, %221 : vector<2x32xf32>
    %cst_111 = arith.constant 5.000000e-01 : f32
    %224 = vector.broadcast %cst_111 : f32 to vector<2x32xf32>
    %225 = arith.addf %223, %224 : vector<2x32xf32>
    %226 = vector.extract_strided_slice %217 {offsets = [0, 32], sizes = [2, 32], strides = [1, 1]} : vector<2x128xf32> to vector<2x32xf32>
    %cst_112 = arith.constant 5.000000e-01 : f32
    %227 = vector.broadcast %cst_112 : f32 to vector<2x32xf32>
    %228 = arith.mulf %227, %226 : vector<2x32xf32>
    %229 = math.tanh %228 : vector<2x32xf32>
    %cst_113 = arith.constant 5.000000e-01 : f32
    %230 = vector.broadcast %cst_113 : f32 to vector<2x32xf32>
    %231 = arith.mulf %230, %229 : vector<2x32xf32>
    %cst_114 = arith.constant 5.000000e-01 : f32
    %232 = vector.broadcast %cst_114 : f32 to vector<2x32xf32>
    %233 = arith.addf %231, %232 : vector<2x32xf32>
    %234 = vector.extract_strided_slice %217 {offsets = [0, 64], sizes = [2, 32], strides = [1, 1]} : vector<2x128xf32> to vector<2x32xf32>
    %235 = math.tanh %234 : vector<2x32xf32>
    %236 = vector.extract_strided_slice %217 {offsets = [0, 96], sizes = [2, 32], strides = [1, 1]} : vector<2x128xf32> to vector<2x32xf32>
    %cst_115 = arith.constant 5.000000e-01 : f32
    %237 = vector.broadcast %cst_115 : f32 to vector<2x32xf32>
    %238 = arith.mulf %237, %236 : vector<2x32xf32>
    %239 = math.tanh %238 : vector<2x32xf32>
    %cst_116 = arith.constant 5.000000e-01 : f32
    %240 = vector.broadcast %cst_116 : f32 to vector<2x32xf32>
    %241 = arith.mulf %240, %239 : vector<2x32xf32>
    %cst_117 = arith.constant 5.000000e-01 : f32
    %242 = vector.broadcast %cst_117 : f32 to vector<2x32xf32>
    %243 = arith.addf %241, %242 : vector<2x32xf32>
    %244 = arith.mulf %233, %161 : vector<2x32xf32>
    %245 = arith.mulf %225, %235 : vector<2x32xf32>
    %246 = arith.addf %244, %245 : vector<2x32xf32>
    %247 = math.tanh %246 : vector<2x32xf32>
    %248 = arith.mulf %243, %247 : vector<2x32xf32>
    %249 = arith.index_cast %c2_i32 : i32 to index
    %c0_118 = arith.constant 0 : index
    %c0_119 = arith.constant 0 : index
    %250 = vector.load %arg10[%249, %c0_118, %c0_119] : memref<7x2x32xf32, #tpu.memory_space<vmem>>, vector<1x2x32xf32>
    %251 = vector.shape_cast %250 : vector<1x2x32xf32> to vector<2x32xf32>
    %252 = vector.shape_cast %248 : vector<2x32xf32> to vector<1x2x32xf32>
    tpu.vector_store %arg10[%249, %c0_118, %c0_119], %252 {strides = array<i32>} : memref<7x2x32xf32, #tpu.memory_space<vmem>>, vector<1x2x32xf32>,
    %253 = arith.index_cast %c2_i32 : i32 to index
    %c0_120 = arith.constant 0 : index
    %c0_121 = arith.constant 0 : index
    %254 = vector.load %arg11[%253, %c0_120, %c0_121] : memref<7x2x16xf32, #tpu.memory_space<vmem>>, vector<1x2x16xf32>
    %255 = vector.shape_cast %254 : vector<1x2x16xf32> to vector<2x16xf32>
    %256 = vector.shape_cast %195 : vector<2x16xf32> to vector<1x2x16xf32>
    tpu.vector_store %arg11[%253, %c0_120, %c0_121], %256 {strides = array<i32>} : memref<7x2x16xf32, #tpu.memory_space<vmem>>, vector<1x2x16xf32>,
    %c3_i32 = arith.constant 3 : i32
    %c0_122 = arith.constant 0 : index
    %c0_123 = arith.constant 0 : index
    %257 = vector.load %arg6[%c0_122, %c0_123] : memref<32x192xf32, #tpu.memory_space<vmem>>, vector<32x192xf32>
    %cst_124 = arith.constant dense<0.000000e+00> : vector<2x192xf32>
    %258 = tpu.matmul %248, %257, %cst_124 {dimension_numbers = #tpu.dot_dimension_numbers<[1], [0], [0], [1], [0, 0, 1, 1], [], []>} : vector<2x32xf32>, vector<32x192xf32>, vector<2x192xf32> -> vector<2x192xf32>
    %259 = vector.extract_strided_slice %258 {offsets = [0, 0], sizes = [2, 32], strides = [1, 1]} : vector<2x192xf32> to vector<2x32xf32>
    %260 = vector.extract_strided_slice %258 {offsets = [0, 32], sizes = [2, 32], strides = [1, 1]} : vector<2x192xf32> to vector<2x32xf32>
    %261 = vector.extract_strided_slice %258 {offsets = [0, 64], sizes = [2, 128], strides = [1, 1]} : vector<2x192xf32> to vector<2x128xf32>
    %c0_125 = arith.constant 0 : index
    %c0_126 = arith.constant 0 : index
    %c0_127 = arith.constant 0 : index
    %262 = vector.load %arg2[%c0_125, %c0_126, %c0_127] : memref<2x16x32xf32, #tpu.memory_space<vmem>>, vector<2x16x32xf32>
    %263 = vector.shape_cast %259 : vector<2x32xf32> to vector<2x1x32xf32>
    %264 = vector.broadcast %263 : vector<2x1x32xf32> to vector<2x16x32xf32>
    %265 = arith.addf %262, %264 : vector<2x16x32xf32>
    %cst_128 = arith.constant 0.000000e+00 : f32
    %266 = vector.broadcast %cst_128 : f32 to vector<2x16x32xf32>
    %267 = arith.maximumf %265, %266 : vector<2x16x32xf32>
    %c0_129 = arith.constant 0 : index
    %c0_130 = arith.constant 0 : index
    %c0_131 = arith.constant 0 : index
    %268 = vector.load %arg8[%c0_129, %c0_130, %c0_131] : memref<1x1x32xf32, #tpu.memory_space<vmem>>, vector<1x1x32xf32>
    %269 = vector.broadcast %268 : vector<1x1x32xf32> to vector<2x16x32xf32>
    %270 = arith.mulf %267, %269 : vector<2x16x32xf32>
    %cst_132 = arith.constant dense<0.000000e+00> : vector<2x16xf32>
    %271 = vector.multi_reduction <add>, %270, %cst_132 [2] : vector<2x16x32xf32> to vector<2x16xf32>
    %cst_133 = arith.constant dense<0xFF800000> : vector<2xf32>
    %272 = vector.multi_reduction <maximumf>, %271, %cst_133 [1] : vector<2x16xf32> to vector<2xf32>
    %273 = vector.shape_cast %272 : vector<2xf32> to vector<2x1xf32>
    %274 = vector.broadcast %273 : vector<2x1xf32> to vector<2x16xf32>
    %275 = arith.subf %271, %274 : vector<2x16xf32>
    %276 = math.exp %275 : vector<2x16xf32>
    %cst_134 = arith.constant dense<0.000000e+00> : vector<2xf32>
    %277 = vector.multi_reduction <add>, %276, %cst_134 [1] : vector<2x16xf32> to vector<2xf32>
    %278 = vector.shape_cast %277 : vector<2xf32> to vector<2x1xf32>
    %279 = vector.broadcast %278 : vector<2x1xf32> to vector<2x16xf32>
    %280 = arith.divf %276, %279 : vector<2x16xf32>
    %281 = vector.shape_cast %280 : vector<2x16xf32> to vector<2x1x16xf32>
    %c0_135 = arith.constant 0 : index
    %c0_136 = arith.constant 0 : index
    %c0_137 = arith.constant 0 : index
    %282 = vector.load %arg1[%c0_135, %c0_136, %c0_137] : memref<2x16x32xf32, #tpu.memory_space<vmem>>, vector<2x16x32xf32>
    "tpu.trace_start"() <{level = 10 : i32, message = "bqp,bpe->bqe"}> : () -> ()
    %cst_138 = arith.constant dense<0.000000e+00> : vector<2x1x32xf32>
    %283 = tpu.matmul %281, %282, %cst_138 {dimension_numbers = #tpu.dot_dimension_numbers<[2], [1], [1], [2], [0, 0, 0, 1, 1, 2], [0], [0]>} : vector<2x1x16xf32>, vector<2x16x32xf32>, vector<2x1x32xf32> -> vector<2x1x32xf32>
    "tpu.trace_stop"() : () -> ()
    %284 = vector.shape_cast %283 : vector<2x1x32xf32> to vector<2x32xf32>
    %c0_139 = arith.constant 0 : index
    %c0_140 = arith.constant 0 : index
    %285 = vector.load %arg9[%c0_139, %c0_140] : memref<1x32xf32, #tpu.memory_space<vmem>>, vector<1x32xf32>
    %286 = vector.broadcast %285 : vector<1x32xf32> to vector<2x32xf32>
    %287 = arith.addf %260, %286 : vector<2x32xf32>
    %cst_141 = arith.constant 5.000000e-01 : f32
    %288 = vector.broadcast %cst_141 : f32 to vector<2x32xf32>
    %289 = arith.mulf %288, %287 : vector<2x32xf32>
    %290 = math.tanh %289 : vector<2x32xf32>
    %cst_142 = arith.constant 5.000000e-01 : f32
    %291 = vector.broadcast %cst_142 : f32 to vector<2x32xf32>
    %292 = arith.mulf %291, %290 : vector<2x32xf32>
    %cst_143 = arith.constant 5.000000e-01 : f32
    %293 = vector.broadcast %cst_143 : f32 to vector<2x32xf32>
    %294 = arith.addf %292, %293 : vector<2x32xf32>
    %295 = arith.mulf %294, %284 : vector<2x32xf32>
    %296 = arith.index_cast %c3_i32 : i32 to index
    %c0_144 = arith.constant 0 : index
    %c0_145 = arith.constant 0 : index
    %297 = vector.load %arg5[%296, %c0_144, %c0_145] : memref<7x2x128xf32, #tpu.memory_space<vmem>>, vector<1x2x128xf32>
    %298 = vector.shape_cast %297 : vector<1x2x128xf32> to vector<2x128xf32>
    %c0_146 = arith.constant 0 : index
    %c0_147 = arith.constant 0 : index
    %299 = vector.load %arg7[%c0_146, %c0_147] : memref<32x128xf32, #tpu.memory_space<vmem>>, vector<32x128xf32>
    %cst_148 = arith.constant dense<0.000000e+00> : vector<2x128xf32>
    %300 = tpu.matmul %295, %299, %cst_148 {dimension_numbers = #tpu.dot_dimension_numbers<[1], [0], [0], [1], [0, 0, 1, 1], [], []>} : vector<2x32xf32>, vector<32x128xf32>, vector<2x128xf32> -> vector<2x128xf32>
    %301 = arith.addf %298, %300 : vector<2x128xf32>
    %302 = arith.addf %301, %261 : vector<2x128xf32>
    %303 = vector.extract_strided_slice %302 {offsets = [0, 0], sizes = [2, 32], strides = [1, 1]} : vector<2x128xf32> to vector<2x32xf32>
    %cst_149 = arith.constant 5.000000e-01 : f32
    %304 = vector.broadcast %cst_149 : f32 to vector<2x32xf32>
    %305 = arith.mulf %304, %303 : vector<2x32xf32>
    %306 = math.tanh %305 : vector<2x32xf32>
    %cst_150 = arith.constant 5.000000e-01 : f32
    %307 = vector.broadcast %cst_150 : f32 to vector<2x32xf32>
    %308 = arith.mulf %307, %306 : vector<2x32xf32>
    %cst_151 = arith.constant 5.000000e-01 : f32
    %309 = vector.broadcast %cst_151 : f32 to vector<2x32xf32>
    %310 = arith.addf %308, %309 : vector<2x32xf32>
    %311 = vector.extract_strided_slice %302 {offsets = [0, 32], sizes = [2, 32], strides = [1, 1]} : vector<2x128xf32> to vector<2x32xf32>
    %cst_152 = arith.constant 5.000000e-01 : f32
    %312 = vector.broadcast %cst_152 : f32 to vector<2x32xf32>
    %313 = arith.mulf %312, %311 : vector<2x32xf32>
    %314 = math.tanh %313 : vector<2x32xf32>
    %cst_153 = arith.constant 5.000000e-01 : f32
    %315 = vector.broadcast %cst_153 : f32 to vector<2x32xf32>
    %316 = arith.mulf %315, %314 : vector<2x32xf32>
    %cst_154 = arith.constant 5.000000e-01 : f32
    %317 = vector.broadcast %cst_154 : f32 to vector<2x32xf32>
    %318 = arith.addf %316, %317 : vector<2x32xf32>
    %319 = vector.extract_strided_slice %302 {offsets = [0, 64], sizes = [2, 32], strides = [1, 1]} : vector<2x128xf32> to vector<2x32xf32>
    %320 = math.tanh %319 : vector<2x32xf32>
    %321 = vector.extract_strided_slice %302 {offsets = [0, 96], sizes = [2, 32], strides = [1, 1]} : vector<2x128xf32> to vector<2x32xf32>
    %cst_155 = arith.constant 5.000000e-01 : f32
    %322 = vector.broadcast %cst_155 : f32 to vector<2x32xf32>
    %323 = arith.mulf %322, %321 : vector<2x32xf32>
    %324 = math.tanh %323 : vector<2x32xf32>
    %cst_156 = arith.constant 5.000000e-01 : f32
    %325 = vector.broadcast %cst_156 : f32 to vector<2x32xf32>
    %326 = arith.mulf %325, %324 : vector<2x32xf32>
    %cst_157 = arith.constant 5.000000e-01 : f32
    %327 = vector.broadcast %cst_157 : f32 to vector<2x32xf32>
    %328 = arith.addf %326, %327 : vector<2x32xf32>
    %329 = arith.mulf %318, %246 : vector<2x32xf32>
    %330 = arith.mulf %310, %320 : vector<2x32xf32>
    %331 = arith.addf %329, %330 : vector<2x32xf32>
    %332 = math.tanh %331 : vector<2x32xf32>
    %333 = arith.mulf %328, %332 : vector<2x32xf32>
    %334 = arith.index_cast %c3_i32 : i32 to index
    %c0_158 = arith.constant 0 : index
    %c0_159 = arith.constant 0 : index
    %335 = vector.load %arg10[%334, %c0_158, %c0_159] : memref<7x2x32xf32, #tpu.memory_space<vmem>>, vector<1x2x32xf32>
    %336 = vector.shape_cast %335 : vector<1x2x32xf32> to vector<2x32xf32>
    %337 = vector.shape_cast %333 : vector<2x32xf32> to vector<1x2x32xf32>
    tpu.vector_store %arg10[%334, %c0_158, %c0_159], %337 {strides = array<i32>} : memref<7x2x32xf32, #tpu.memory_space<vmem>>, vector<1x2x32xf32>,
    %338 = arith.index_cast %c3_i32 : i32 to index
    %c0_160 = arith.constant 0 : index
    %c0_161 = arith.constant 0 : index
    %339 = vector.load %arg11[%338, %c0_160, %c0_161] : memref<7x2x16xf32, #tpu.memory_space<vmem>>, vector<1x2x16xf32>
    %340 = vector.shape_cast %339 : vector<1x2x16xf32> to vector<2x16xf32>
    %341 = vector.shape_cast %280 : vector<2x16xf32> to vector<1x2x16xf32>
    tpu.vector_store %arg11[%338, %c0_160, %c0_161], %341 {strides = array<i32>} : memref<7x2x16xf32, #tpu.memory_space<vmem>>, vector<1x2x16xf32>,
    %c4_i32 = arith.constant 4 : i32
    %c0_162 = arith.constant 0 : index
    %c0_163 = arith.constant 0 : index
    %342 = vector.load %arg6[%c0_162, %c0_163] : memref<32x192xf32, #tpu.memory_space<vmem>>, vector<32x192xf32>
    %cst_164 = arith.constant dense<0.000000e+00> : vector<2x192xf32>
    %343 = tpu.matmul %333, %342, %cst_164 {dimension_numbers = #tpu.dot_dimension_numbers<[1], [0], [0], [1], [0, 0, 1, 1], [], []>} : vector<2x32xf32>, vector<32x192xf32>, vector<2x192xf32> -> vector<2x192xf32>
    %344 = vector.extract_strided_slice %343 {offsets = [0, 0], sizes = [2, 32], strides = [1, 1]} : vector<2x192xf32> to vector<2x32xf32>
    %345 = vector.extract_strided_slice %343 {offsets = [0, 32], sizes = [2, 32], strides = [1, 1]} : vector<2x192xf32> to vector<2x32xf32>
    %346 = vector.extract_strided_slice %343 {offsets = [0, 64], sizes = [2, 128], strides = [1, 1]} : vector<2x192xf32> to vector<2x128xf32>
    %c0_165 = arith.constant 0 : index
    %c0_166 = arith.constant 0 : index
    %c0_167 = arith.constant 0 : index
    %347 = vector.load %arg2[%c0_165, %c0_166, %c0_167] : memref<2x16x32xf32, #tpu.memory_space<vmem>>, vector<2x16x32xf32>
    %348 = vector.shape_cast %344 : vector<2x32xf32> to vector<2x1x32xf32>
    %349 = vector.broadcast %348 : vector<2x1x32xf32> to vector<2x16x32xf32>
    %350 = arith.addf %347, %349 : vector<2x16x32xf32>
    %cst_168 = arith.constant 0.000000e+00 : f32
    %351 = vector.broadcast %cst_168 : f32 to vector<2x16x32xf32>
    %352 = arith.maximumf %350, %351 : vector<2x16x32xf32>
    %c0_169 = arith.constant 0 : index
    %c0_170 = arith.constant 0 : index
    %c0_171 = arith.constant 0 : index
    %353 = vector.load %arg8[%c0_169, %c0_170, %c0_171] : memref<1x1x32xf32, #tpu.memory_space<vmem>>, vector<1x1x32xf32>
    %354 = vector.broadcast %353 : vector<1x1x32xf32> to vector<2x16x32xf32>
    %355 = arith.mulf %352, %354 : vector<2x16x32xf32>
    %cst_172 = arith.constant dense<0.000000e+00> : vector<2x16xf32>
    %356 = vector.multi_reduction <add>, %355, %cst_172 [2] : vector<2x16x32xf32> to vector<2x16xf32>
    %cst_173 = arith.constant dense<0xFF800000> : vector<2xf32>
    %357 = vector.multi_reduction <maximumf>, %356, %cst_173 [1] : vector<2x16xf32> to vector<2xf32>
    %358 = vector.shape_cast %357 : vector<2xf32> to vector<2x1xf32>
    %359 = vector.broadcast %358 : vector<2x1xf32> to vector<2x16xf32>
    %360 = arith.subf %356, %359 : vector<2x16xf32>
    %361 = math.exp %360 : vector<2x16xf32>
    %cst_174 = arith.constant dense<0.000000e+00> : vector<2xf32>
    %362 = vector.multi_reduction <add>, %361, %cst_174 [1] : vector<2x16xf32> to vector<2xf32>
    %363 = vector.shape_cast %362 : vector<2xf32> to vector<2x1xf32>
    %364 = vector.broadcast %363 : vector<2x1xf32> to vector<2x16xf32>
    %365 = arith.divf %361, %364 : vector<2x16xf32>
    %366 = vector.shape_cast %365 : vector<2x16xf32> to vector<2x1x16xf32>
    %c0_175 = arith.constant 0 : index
    %c0_176 = arith.constant 0 : index
    %c0_177 = arith.constant 0 : index
    %367 = vector.load %arg1[%c0_175, %c0_176, %c0_177] : memref<2x16x32xf32, #tpu.memory_space<vmem>>, vector<2x16x32xf32>
    "tpu.trace_start"() <{level = 10 : i32, message = "bqp,bpe->bqe"}> : () -> ()
    %cst_178 = arith.constant dense<0.000000e+00> : vector<2x1x32xf32>
    %368 = tpu.matmul %366, %367, %cst_178 {dimension_numbers = #tpu.dot_dimension_numbers<[2], [1], [1], [2], [0, 0, 0, 1, 1, 2], [0], [0]>} : vector<2x1x16xf32>, vector<2x16x32xf32>, vector<2x1x32xf32> -> vector<2x1x32xf32>
    "tpu.trace_stop"() : () -> ()
    %369 = vector.shape_cast %368 : vector<2x1x32xf32> to vector<2x32xf32>
    %c0_179 = arith.constant 0 : index
    %c0_180 = arith.constant 0 : index
    %370 = vector.load %arg9[%c0_179, %c0_180] : memref<1x32xf32, #tpu.memory_space<vmem>>, vector<1x32xf32>
    %371 = vector.broadcast %370 : vector<1x32xf32> to vector<2x32xf32>
    %372 = arith.addf %345, %371 : vector<2x32xf32>
    %cst_181 = arith.constant 5.000000e-01 : f32
    %373 = vector.broadcast %cst_181 : f32 to vector<2x32xf32>
    %374 = arith.mulf %373, %372 : vector<2x32xf32>
    %375 = math.tanh %374 : vector<2x32xf32>
    %cst_182 = arith.constant 5.000000e-01 : f32
    %376 = vector.broadcast %cst_182 : f32 to vector<2x32xf32>
    %377 = arith.mulf %376, %375 : vector<2x32xf32>
    %cst_183 = arith.constant 5.000000e-01 : f32
    %378 = vector.broadcast %cst_183 : f32 to vector<2x32xf32>
    %379 = arith.addf %377, %378 : vector<2x32xf32>
    %380 = arith.mulf %379, %369 : vector<2x32xf32>
    %381 = arith.index_cast %c4_i32 : i32 to index
    %c0_184 = arith.constant 0 : index
    %c0_185 = arith.constant 0 : index
    %382 = vector.load %arg5[%381, %c0_184, %c0_185] : memref<7x2x128xf32, #tpu.memory_space<vmem>>, vector<1x2x128xf32>
    %383 = vector.shape_cast %382 : vector<1x2x128xf32> to vector<2x128xf32>
    %c0_186 = arith.constant 0 : index
    %c0_187 = arith.constant 0 : index
    %384 = vector.load %arg7[%c0_186, %c0_187] : memref<32x128xf32, #tpu.memory_space<vmem>>, vector<32x128xf32>
    %cst_188 = arith.constant dense<0.000000e+00> : vector<2x128xf32>
    %385 = tpu.matmul %380, %384, %cst_188 {dimension_numbers = #tpu.dot_dimension_numbers<[1], [0], [0], [1], [0, 0, 1, 1], [], []>} : vector<2x32xf32>, vector<32x128xf32>, vector<2x128xf32> -> vector<2x128xf32>
    %386 = arith.addf %383, %385 : vector<2x128xf32>
    %387 = arith.addf %386, %346 : vector<2x128xf32>
    %388 = vector.extract_strided_slice %387 {offsets = [0, 0], sizes = [2, 32], strides = [1, 1]} : vector<2x128xf32> to vector<2x32xf32>
    %cst_189 = arith.constant 5.000000e-01 : f32
    %389 = vector.broadcast %cst_189 : f32 to vector<2x32xf32>
    %390 = arith.mulf %389, %388 : vector<2x32xf32>
    %391 = math.tanh %390 : vector<2x32xf32>
    %cst_190 = arith.constant 5.000000e-01 : f32
    %392 = vector.broadcast %cst_190 : f32 to vector<2x32xf32>
    %393 = arith.mulf %392, %391 : vector<2x32xf32>
    %cst_191 = arith.constant 5.000000e-01 : f32
    %394 = vector.broadcast %cst_191 : f32 to vector<2x32xf32>
    %395 = arith.addf %393, %394 : vector<2x32xf32>
    %396 = vector.extract_strided_slice %387 {offsets = [0, 32], sizes = [2, 32], strides = [1, 1]} : vector<2x128xf32> to vector<2x32xf32>
    %cst_192 = arith.constant 5.000000e-01 : f32
    %397 = vector.broadcast %cst_192 : f32 to vector<2x32xf32>
    %398 = arith.mulf %397, %396 : vector<2x32xf32>
    %399 = math.tanh %398 : vector<2x32xf32>
    %cst_193 = arith.constant 5.000000e-01 : f32
    %400 = vector.broadcast %cst_193 : f32 to vector<2x32xf32>
    %401 = arith.mulf %400, %399 : vector<2x32xf32>
    %cst_194 = arith.constant 5.000000e-01 : f32
    %402 = vector.broadcast %cst_194 : f32 to vector<2x32xf32>
    %403 = arith.addf %401, %402 : vector<2x32xf32>
    %404 = vector.extract_strided_slice %387 {offsets = [0, 64], sizes = [2, 32], strides = [1, 1]} : vector<2x128xf32> to vector<2x32xf32>
    %405 = math.tanh %404 : vector<2x32xf32>
    %406 = vector.extract_strided_slice %387 {offsets = [0, 96], sizes = [2, 32], strides = [1, 1]} : vector<2x128xf32> to vector<2x32xf32>
    %cst_195 = arith.constant 5.000000e-01 : f32
    %407 = vector.broadcast %cst_195 : f32 to vector<2x32xf32>
    %408 = arith.mulf %407, %406 : vector<2x32xf32>
    %409 = math.tanh %408 : vector<2x32xf32>
    %cst_196 = arith.constant 5.000000e-01 : f32
    %410 = vector.broadcast %cst_196 : f32 to vector<2x32xf32>
    %411 = arith.mulf %410, %409 : vector<2x32xf32>
    %cst_197 = arith.constant 5.000000e-01 : f32
    %412 = vector.broadcast %cst_197 : f32 to vector<2x32xf32>
    %413 = arith.addf %411, %412 : vector<2x32xf32>
    %414 = arith.mulf %403, %331 : vector<2x32xf32>
    %415 = arith.mulf %395, %405 : vector<2x32xf32>
    %416 = arith.addf %414, %415 : vector<2x32xf32>
    %417 = math.tanh %416 : vector<2x32xf32>
    %418 = arith.mulf %413, %417 : vector<2x32xf32>
    %419 = arith.index_cast %c4_i32 : i32 to index
    %c0_198 = arith.constant 0 : index
    %c0_199 = arith.constant 0 : index
    %420 = vector.load %arg10[%419, %c0_198, %c0_199] : memref<7x2x32xf32, #tpu.memory_space<vmem>>, vector<1x2x32xf32>
    %421 = vector.shape_cast %420 : vector<1x2x32xf32> to vector<2x32xf32>
    %422 = vector.shape_cast %418 : vector<2x32xf32> to vector<1x2x32xf32>
    tpu.vector_store %arg10[%419, %c0_198, %c0_199], %422 {strides = array<i32>} : memref<7x2x32xf32, #tpu.memory_space<vmem>>, vector<1x2x32xf32>,
    %423 = arith.index_cast %c4_i32 : i32 to index
    %c0_200 = arith.constant 0 : index
    %c0_201 = arith.constant 0 : index
    %424 = vector.load %arg11[%423, %c0_200, %c0_201] : memref<7x2x16xf32, #tpu.memory_space<vmem>>, vector<1x2x16xf32>
    %425 = vector.shape_cast %424 : vector<1x2x16xf32> to vector<2x16xf32>
    %426 = vector.shape_cast %365 : vector<2x16xf32> to vector<1x2x16xf32>
    tpu.vector_store %arg11[%423, %c0_200, %c0_201], %426 {strides = array<i32>} : memref<7x2x16xf32, #tpu.memory_space<vmem>>, vector<1x2x16xf32>,
    %c5_i32 = arith.constant 5 : i32
    %c0_202 = arith.constant 0 : index
    %c0_203 = arith.constant 0 : index
    %427 = vector.load %arg6[%c0_202, %c0_203] : memref<32x192xf32, #tpu.memory_space<vmem>>, vector<32x192xf32>
    %cst_204 = arith.constant dense<0.000000e+00> : vector<2x192xf32>
    %428 = tpu.matmul %418, %427, %cst_204 {dimension_numbers = #tpu.dot_dimension_numbers<[1], [0], [0], [1], [0, 0, 1, 1], [], []>} : vector<2x32xf32>, vector<32x192xf32>, vector<2x192xf32> -> vector<2x192xf32>
    %429 = vector.extract_strided_slice %428 {offsets = [0, 0], sizes = [2, 32], strides = [1, 1]} : vector<2x192xf32> to vector<2x32xf32>
    %430 = vector.extract_strided_slice %428 {offsets = [0, 32], sizes = [2, 32], strides = [1, 1]} : vector<2x192xf32> to vector<2x32xf32>
    %431 = vector.extract_strided_slice %428 {offsets = [0, 64], sizes = [2, 128], strides = [1, 1]} : vector<2x192xf32> to vector<2x128xf32>
    %c0_205 = arith.constant 0 : index
    %c0_206 = arith.constant 0 : index
    %c0_207 = arith.constant 0 : index
    %432 = vector.load %arg2[%c0_205, %c0_206, %c0_207] : memref<2x16x32xf32, #tpu.memory_space<vmem>>, vector<2x16x32xf32>
    %433 = vector.shape_cast %429 : vector<2x32xf32> to vector<2x1x32xf32>
    %434 = vector.broadcast %433 : vector<2x1x32xf32> to vector<2x16x32xf32>
    %435 = arith.addf %432, %434 : vector<2x16x32xf32>
    %cst_208 = arith.constant 0.000000e+00 : f32
    %436 = vector.broadcast %cst_208 : f32 to vector<2x16x32xf32>
    %437 = arith.maximumf %435, %436 : vector<2x16x32xf32>
    %c0_209 = arith.constant 0 : index
    %c0_210 = arith.constant 0 : index
    %c0_211 = arith.constant 0 : index
    %438 = vector.load %arg8[%c0_209, %c0_210, %c0_211] : memref<1x1x32xf32, #tpu.memory_space<vmem>>, vector<1x1x32xf32>
    %439 = vector.broadcast %438 : vector<1x1x32xf32> to vector<2x16x32xf32>
    %440 = arith.mulf %437, %439 : vector<2x16x32xf32>
    %cst_212 = arith.constant dense<0.000000e+00> : vector<2x16xf32>
    %441 = vector.multi_reduction <add>, %440, %cst_212 [2] : vector<2x16x32xf32> to vector<2x16xf32>
    %cst_213 = arith.constant dense<0xFF800000> : vector<2xf32>
    %442 = vector.multi_reduction <maximumf>, %441, %cst_213 [1] : vector<2x16xf32> to vector<2xf32>
    %443 = vector.shape_cast %442 : vector<2xf32> to vector<2x1xf32>
    %444 = vector.broadcast %443 : vector<2x1xf32> to vector<2x16xf32>
    %445 = arith.subf %441, %444 : vector<2x16xf32>
    %446 = math.exp %445 : vector<2x16xf32>
    %cst_214 = arith.constant dense<0.000000e+00> : vector<2xf32>
    %447 = vector.multi_reduction <add>, %446, %cst_214 [1] : vector<2x16xf32> to vector<2xf32>
    %448 = vector.shape_cast %447 : vector<2xf32> to vector<2x1xf32>
    %449 = vector.broadcast %448 : vector<2x1xf32> to vector<2x16xf32>
    %450 = arith.divf %446, %449 : vector<2x16xf32>
    %451 = vector.shape_cast %450 : vector<2x16xf32> to vector<2x1x16xf32>
    %c0_215 = arith.constant 0 : index
    %c0_216 = arith.constant 0 : index
    %c0_217 = arith.constant 0 : index
    %452 = vector.load %arg1[%c0_215, %c0_216, %c0_217] : memref<2x16x32xf32, #tpu.memory_space<vmem>>, vector<2x16x32xf32>
    "tpu.trace_start"() <{level = 10 : i32, message = "bqp,bpe->bqe"}> : () -> ()
    %cst_218 = arith.constant dense<0.000000e+00> : vector<2x1x32xf32>
    %453 = tpu.matmul %451, %452, %cst_218 {dimension_numbers = #tpu.dot_dimension_numbers<[2], [1], [1], [2], [0, 0, 0, 1, 1, 2], [0], [0]>} : vector<2x1x16xf32>, vector<2x16x32xf32>, vector<2x1x32xf32> -> vector<2x1x32xf32>
    "tpu.trace_stop"() : () -> ()
    %454 = vector.shape_cast %453 : vector<2x1x32xf32> to vector<2x32xf32>
    %c0_219 = arith.constant 0 : index
    %c0_220 = arith.constant 0 : index
    %455 = vector.load %arg9[%c0_219, %c0_220] : memref<1x32xf32, #tpu.memory_space<vmem>>, vector<1x32xf32>
    %456 = vector.broadcast %455 : vector<1x32xf32> to vector<2x32xf32>
    %457 = arith.addf %430, %456 : vector<2x32xf32>
    %cst_221 = arith.constant 5.000000e-01 : f32
    %458 = vector.broadcast %cst_221 : f32 to vector<2x32xf32>
    %459 = arith.mulf %458, %457 : vector<2x32xf32>
    %460 = math.tanh %459 : vector<2x32xf32>
    %cst_222 = arith.constant 5.000000e-01 : f32
    %461 = vector.broadcast %cst_222 : f32 to vector<2x32xf32>
    %462 = arith.mulf %461, %460 : vector<2x32xf32>
    %cst_223 = arith.constant 5.000000e-01 : f32
    %463 = vector.broadcast %cst_223 : f32 to vector<2x32xf32>
    %464 = arith.addf %462, %463 : vector<2x32xf32>
    %465 = arith.mulf %464, %454 : vector<2x32xf32>
    %466 = arith.index_cast %c5_i32 : i32 to index
    %c0_224 = arith.constant 0 : index
    %c0_225 = arith.constant 0 : index
    %467 = vector.load %arg5[%466, %c0_224, %c0_225] : memref<7x2x128xf32, #tpu.memory_space<vmem>>, vector<1x2x128xf32>
    %468 = vector.shape_cast %467 : vector<1x2x128xf32> to vector<2x128xf32>
    %c0_226 = arith.constant 0 : index
    %c0_227 = arith.constant 0 : index
    %469 = vector.load %arg7[%c0_226, %c0_227] : memref<32x128xf32, #tpu.memory_space<vmem>>, vector<32x128xf32>
    %cst_228 = arith.constant dense<0.000000e+00> : vector<2x128xf32>
    %470 = tpu.matmul %465, %469, %cst_228 {dimension_numbers = #tpu.dot_dimension_numbers<[1], [0], [0], [1], [0, 0, 1, 1], [], []>} : vector<2x32xf32>, vector<32x128xf32>, vector<2x128xf32> -> vector<2x128xf32>
    %471 = arith.addf %468, %470 : vector<2x128xf32>
    %472 = arith.addf %471, %431 : vector<2x128xf32>
    %473 = vector.extract_strided_slice %472 {offsets = [0, 0], sizes = [2, 32], strides = [1, 1]} : vector<2x128xf32> to vector<2x32xf32>
    %cst_229 = arith.constant 5.000000e-01 : f32
    %474 = vector.broadcast %cst_229 : f32 to vector<2x32xf32>
    %475 = arith.mulf %474, %473 : vector<2x32xf32>
    %476 = math.tanh %475 : vector<2x32xf32>
    %cst_230 = arith.constant 5.000000e-01 : f32
    %477 = vector.broadcast %cst_230 : f32 to vector<2x32xf32>
    %478 = arith.mulf %477, %476 : vector<2x32xf32>
    %cst_231 = arith.constant 5.000000e-01 : f32
    %479 = vector.broadcast %cst_231 : f32 to vector<2x32xf32>
    %480 = arith.addf %478, %479 : vector<2x32xf32>
    %481 = vector.extract_strided_slice %472 {offsets = [0, 32], sizes = [2, 32], strides = [1, 1]} : vector<2x128xf32> to vector<2x32xf32>
    %cst_232 = arith.constant 5.000000e-01 : f32
    %482 = vector.broadcast %cst_232 : f32 to vector<2x32xf32>
    %483 = arith.mulf %482, %481 : vector<2x32xf32>
    %484 = math.tanh %483 : vector<2x32xf32>
    %cst_233 = arith.constant 5.000000e-01 : f32
    %485 = vector.broadcast %cst_233 : f32 to vector<2x32xf32>
    %486 = arith.mulf %485, %484 : vector<2x32xf32>
    %cst_234 = arith.constant 5.000000e-01 : f32
    %487 = vector.broadcast %cst_234 : f32 to vector<2x32xf32>
    %488 = arith.addf %486, %487 : vector<2x32xf32>
    %489 = vector.extract_strided_slice %472 {offsets = [0, 64], sizes = [2, 32], strides = [1, 1]} : vector<2x128xf32> to vector<2x32xf32>
    %490 = math.tanh %489 : vector<2x32xf32>
    %491 = vector.extract_strided_slice %472 {offsets = [0, 96], sizes = [2, 32], strides = [1, 1]} : vector<2x128xf32> to vector<2x32xf32>
    %cst_235 = arith.constant 5.000000e-01 : f32
    %492 = vector.broadcast %cst_235 : f32 to vector<2x32xf32>
    %493 = arith.mulf %492, %491 : vector<2x32xf32>
    %494 = math.tanh %493 : vector<2x32xf32>
    %cst_236 = arith.constant 5.000000e-01 : f32
    %495 = vector.broadcast %cst_236 : f32 to vector<2x32xf32>
    %496 = arith.mulf %495, %494 : vector<2x32xf32>
    %cst_237 = arith.constant 5.000000e-01 : f32
    %497 = vector.broadcast %cst_237 : f32 to vector<2x32xf32>
    %498 = arith.addf %496, %497 : vector<2x32xf32>
    %499 = arith.mulf %488, %416 : vector<2x32xf32>
    %500 = arith.mulf %480, %490 : vector<2x32xf32>
    %501 = arith.addf %499, %500 : vector<2x32xf32>
    %502 = math.tanh %501 : vector<2x32xf32>
    %503 = arith.mulf %498, %502 : vector<2x32xf32>
    %504 = arith.index_cast %c5_i32 : i32 to index
    %c0_238 = arith.constant 0 : index
    %c0_239 = arith.constant 0 : index
    %505 = vector.load %arg10[%504, %c0_238, %c0_239] : memref<7x2x32xf32, #tpu.memory_space<vmem>>, vector<1x2x32xf32>
    %506 = vector.shape_cast %505 : vector<1x2x32xf32> to vector<2x32xf32>
    %507 = vector.shape_cast %503 : vector<2x32xf32> to vector<1x2x32xf32>
    tpu.vector_store %arg10[%504, %c0_238, %c0_239], %507 {strides = array<i32>} : memref<7x2x32xf32, #tpu.memory_space<vmem>>, vector<1x2x32xf32>,
    %508 = arith.index_cast %c5_i32 : i32 to index
    %c0_240 = arith.constant 0 : index
    %c0_241 = arith.constant 0 : index
    %509 = vector.load %arg11[%508, %c0_240, %c0_241] : memref<7x2x16xf32, #tpu.memory_space<vmem>>, vector<1x2x16xf32>
    %510 = vector.shape_cast %509 : vector<1x2x16xf32> to vector<2x16xf32>
    %511 = vector.shape_cast %450 : vector<2x16xf32> to vector<1x2x16xf32>
    tpu.vector_store %arg11[%508, %c0_240, %c0_241], %511 {strides = array<i32>} : memref<7x2x16xf32, #tpu.memory_space<vmem>>, vector<1x2x16xf32>,
    %c6_i32 = arith.constant 6 : i32
    %c0_242 = arith.constant 0 : index
    %c0_243 = arith.constant 0 : index
    %512 = vector.load %arg6[%c0_242, %c0_243] : memref<32x192xf32, #tpu.memory_space<vmem>>, vector<32x192xf32>
    %cst_244 = arith.constant dense<0.000000e+00> : vector<2x192xf32>
    %513 = tpu.matmul %503, %512, %cst_244 {dimension_numbers = #tpu.dot_dimension_numbers<[1], [0], [0], [1], [0, 0, 1, 1], [], []>} : vector<2x32xf32>, vector<32x192xf32>, vector<2x192xf32> -> vector<2x192xf32>
    %514 = vector.extract_strided_slice %513 {offsets = [0, 0], sizes = [2, 32], strides = [1, 1]} : vector<2x192xf32> to vector<2x32xf32>
    %515 = vector.extract_strided_slice %513 {offsets = [0, 32], sizes = [2, 32], strides = [1, 1]} : vector<2x192xf32> to vector<2x32xf32>
    %516 = vector.extract_strided_slice %513 {offsets = [0, 64], sizes = [2, 128], strides = [1, 1]} : vector<2x192xf32> to vector<2x128xf32>
    %c0_245 = arith.constant 0 : index
    %c0_246 = arith.constant 0 : index
    %c0_247 = arith.constant 0 : index
    %517 = vector.load %arg2[%c0_245, %c0_246, %c0_247] : memref<2x16x32xf32, #tpu.memory_space<vmem>>, vector<2x16x32xf32>
    %518 = vector.shape_cast %514 : vector<2x32xf32> to vector<2x1x32xf32>
    %519 = vector.broadcast %518 : vector<2x1x32xf32> to vector<2x16x32xf32>
    %520 = arith.addf %517, %519 : vector<2x16x32xf32>
    %cst_248 = arith.constant 0.000000e+00 : f32
    %521 = vector.broadcast %cst_248 : f32 to vector<2x16x32xf32>
    %522 = arith.maximumf %520, %521 : vector<2x16x32xf32>
    %c0_249 = arith.constant 0 : index
    %c0_250 = arith.constant 0 : index
    %c0_251 = arith.constant 0 : index
    %523 = vector.load %arg8[%c0_249, %c0_250, %c0_251] : memref<1x1x32xf32, #tpu.memory_space<vmem>>, vector<1x1x32xf32>
    %524 = vector.broadcast %523 : vector<1x1x32xf32> to vector<2x16x32xf32>
    %525 = arith.mulf %522, %524 : vector<2x16x32xf32>
    %cst_252 = arith.constant dense<0.000000e+00> : vector<2x16xf32>
    %526 = vector.multi_reduction <add>, %525, %cst_252 [2] : vector<2x16x32xf32> to vector<2x16xf32>
    %cst_253 = arith.constant dense<0xFF800000> : vector<2xf32>
    %527 = vector.multi_reduction <maximumf>, %526, %cst_253 [1] : vector<2x16xf32> to vector<2xf32>
    %528 = vector.shape_cast %527 : vector<2xf32> to vector<2x1xf32>
    %529 = vector.broadcast %528 : vector<2x1xf32> to vector<2x16xf32>
    %530 = arith.subf %526, %529 : vector<2x16xf32>
    %531 = math.exp %530 : vector<2x16xf32>
    %cst_254 = arith.constant dense<0.000000e+00> : vector<2xf32>
    %532 = vector.multi_reduction <add>, %531, %cst_254 [1] : vector<2x16xf32> to vector<2xf32>
    %533 = vector.shape_cast %532 : vector<2xf32> to vector<2x1xf32>
    %534 = vector.broadcast %533 : vector<2x1xf32> to vector<2x16xf32>
    %535 = arith.divf %531, %534 : vector<2x16xf32>
    %536 = vector.shape_cast %535 : vector<2x16xf32> to vector<2x1x16xf32>
    %c0_255 = arith.constant 0 : index
    %c0_256 = arith.constant 0 : index
    %c0_257 = arith.constant 0 : index
    %537 = vector.load %arg1[%c0_255, %c0_256, %c0_257] : memref<2x16x32xf32, #tpu.memory_space<vmem>>, vector<2x16x32xf32>
    "tpu.trace_start"() <{level = 10 : i32, message = "bqp,bpe->bqe"}> : () -> ()
    %cst_258 = arith.constant dense<0.000000e+00> : vector<2x1x32xf32>
    %538 = tpu.matmul %536, %537, %cst_258 {dimension_numbers = #tpu.dot_dimension_numbers<[2], [1], [1], [2], [0, 0, 0, 1, 1, 2], [0], [0]>} : vector<2x1x16xf32>, vector<2x16x32xf32>, vector<2x1x32xf32> -> vector<2x1x32xf32>
    "tpu.trace_stop"() : () -> ()
    %539 = vector.shape_cast %538 : vector<2x1x32xf32> to vector<2x32xf32>
    %c0_259 = arith.constant 0 : index
    %c0_260 = arith.constant 0 : index
    %540 = vector.load %arg9[%c0_259, %c0_260] : memref<1x32xf32, #tpu.memory_space<vmem>>, vector<1x32xf32>
    %541 = vector.broadcast %540 : vector<1x32xf32> to vector<2x32xf32>
    %542 = arith.addf %515, %541 : vector<2x32xf32>
    %cst_261 = arith.constant 5.000000e-01 : f32
    %543 = vector.broadcast %cst_261 : f32 to vector<2x32xf32>
    %544 = arith.mulf %543, %542 : vector<2x32xf32>
    %545 = math.tanh %544 : vector<2x32xf32>
    %cst_262 = arith.constant 5.000000e-01 : f32
    %546 = vector.broadcast %cst_262 : f32 to vector<2x32xf32>
    %547 = arith.mulf %546, %545 : vector<2x32xf32>
    %cst_263 = arith.constant 5.000000e-01 : f32
    %548 = vector.broadcast %cst_263 : f32 to vector<2x32xf32>
    %549 = arith.addf %547, %548 : vector<2x32xf32>
    %550 = arith.mulf %549, %539 : vector<2x32xf32>
    %551 = arith.index_cast %c6_i32 : i32 to index
    %c0_264 = arith.constant 0 : index
    %c0_265 = arith.constant 0 : index
    %552 = vector.load %arg5[%551, %c0_264, %c0_265] : memref<7x2x128xf32, #tpu.memory_space<vmem>>, vector<1x2x128xf32>
    %553 = vector.shape_cast %552 : vector<1x2x128xf32> to vector<2x128xf32>
    %c0_266 = arith.constant 0 : index
    %c0_267 = arith.constant 0 : index
    %554 = vector.load %arg7[%c0_266, %c0_267] : memref<32x128xf32, #tpu.memory_space<vmem>>, vector<32x128xf32>
    %cst_268 = arith.constant dense<0.000000e+00> : vector<2x128xf32>
    %555 = tpu.matmul %550, %554, %cst_268 {dimension_numbers = #tpu.dot_dimension_numbers<[1], [0], [0], [1], [0, 0, 1, 1], [], []>} : vector<2x32xf32>, vector<32x128xf32>, vector<2x128xf32> -> vector<2x128xf32>
    %556 = arith.addf %553, %555 : vector<2x128xf32>
    %557 = arith.addf %556, %516 : vector<2x128xf32>
    %558 = vector.extract_strided_slice %557 {offsets = [0, 0], sizes = [2, 32], strides = [1, 1]} : vector<2x128xf32> to vector<2x32xf32>
    %cst_269 = arith.constant 5.000000e-01 : f32
    %559 = vector.broadcast %cst_269 : f32 to vector<2x32xf32>
    %560 = arith.mulf %559, %558 : vector<2x32xf32>
    %561 = math.tanh %560 : vector<2x32xf32>
    %cst_270 = arith.constant 5.000000e-01 : f32
    %562 = vector.broadcast %cst_270 : f32 to vector<2x32xf32>
    %563 = arith.mulf %562, %561 : vector<2x32xf32>
    %cst_271 = arith.constant 5.000000e-01 : f32
    %564 = vector.broadcast %cst_271 : f32 to vector<2x32xf32>
    %565 = arith.addf %563, %564 : vector<2x32xf32>
    %566 = vector.extract_strided_slice %557 {offsets = [0, 32], sizes = [2, 32], strides = [1, 1]} : vector<2x128xf32> to vector<2x32xf32>
    %cst_272 = arith.constant 5.000000e-01 : f32
    %567 = vector.broadcast %cst_272 : f32 to vector<2x32xf32>
    %568 = arith.mulf %567, %566 : vector<2x32xf32>
    %569 = math.tanh %568 : vector<2x32xf32>
    %cst_273 = arith.constant 5.000000e-01 : f32
    %570 = vector.broadcast %cst_273 : f32 to vector<2x32xf32>
    %571 = arith.mulf %570, %569 : vector<2x32xf32>
    %cst_274 = arith.constant 5.000000e-01 : f32
    %572 = vector.broadcast %cst_274 : f32 to vector<2x32xf32>
    %573 = arith.addf %571, %572 : vector<2x32xf32>
    %574 = vector.extract_strided_slice %557 {offsets = [0, 64], sizes = [2, 32], strides = [1, 1]} : vector<2x128xf32> to vector<2x32xf32>
    %575 = math.tanh %574 : vector<2x32xf32>
    %576 = vector.extract_strided_slice %557 {offsets = [0, 96], sizes = [2, 32], strides = [1, 1]} : vector<2x128xf32> to vector<2x32xf32>
    %cst_275 = arith.constant 5.000000e-01 : f32
    %577 = vector.broadcast %cst_275 : f32 to vector<2x32xf32>
    %578 = arith.mulf %577, %576 : vector<2x32xf32>
    %579 = math.tanh %578 : vector<2x32xf32>
    %cst_276 = arith.constant 5.000000e-01 : f32
    %580 = vector.broadcast %cst_276 : f32 to vector<2x32xf32>
    %581 = arith.mulf %580, %579 : vector<2x32xf32>
    %cst_277 = arith.constant 5.000000e-01 : f32
    %582 = vector.broadcast %cst_277 : f32 to vector<2x32xf32>
    %583 = arith.addf %581, %582 : vector<2x32xf32>
    %584 = arith.mulf %573, %501 : vector<2x32xf32>
    %585 = arith.mulf %565, %575 : vector<2x32xf32>
    %586 = arith.addf %584, %585 : vector<2x32xf32>
    %587 = math.tanh %586 : vector<2x32xf32>
    %588 = arith.mulf %583, %587 : vector<2x32xf32>
    %589 = arith.index_cast %c6_i32 : i32 to index
    %c0_278 = arith.constant 0 : index
    %c0_279 = arith.constant 0 : index
    %590 = vector.load %arg10[%589, %c0_278, %c0_279] : memref<7x2x32xf32, #tpu.memory_space<vmem>>, vector<1x2x32xf32>
    %591 = vector.shape_cast %590 : vector<1x2x32xf32> to vector<2x32xf32>
    %592 = vector.shape_cast %588 : vector<2x32xf32> to vector<1x2x32xf32>
    tpu.vector_store %arg10[%589, %c0_278, %c0_279], %592 {strides = array<i32>} : memref<7x2x32xf32, #tpu.memory_space<vmem>>, vector<1x2x32xf32>,
    %593 = arith.index_cast %c6_i32 : i32 to index
    %c0_280 = arith.constant 0 : index
    %c0_281 = arith.constant 0 : index
    %594 = vector.load %arg11[%593, %c0_280, %c0_281] : memref<7x2x16xf32, #tpu.memory_space<vmem>>, vector<1x2x16xf32>
    %595 = vector.shape_cast %594 : vector<1x2x16xf32> to vector<2x16xf32>
    %596 = vector.shape_cast %535 : vector<2x16xf32> to vector<1x2x16xf32>
    tpu.vector_store %arg11[%593, %c0_280, %c0_281], %596 {strides = array<i32>} : memref<7x2x16xf32, #tpu.memory_space<vmem>>, vector<1x2x16xf32>,
    %c7_i32 = arith.constant 7 : i32
    return
  }
  func.func @transform_0(%arg0: i32) -> (i32, i32, i32) {
    %c0_i32 = arith.constant 0 : i32
    %c0_i32_0 = arith.constant 0 : i32
    %c0_i32_1 = arith.constant 0 : i32
    return %arg0, %c0_i32, %c0_i32_0 : i32, i32, i32
  }
  func.func @transform_1(%arg0: i32) -> (i32, i32, i32) {
    %c0_i32 = arith.constant 0 : i32
    %c0_i32_0 = arith.constant 0 : i32
    %c0_i32_1 = arith.constant 0 : i32
    return %arg0, %c0_i32, %c0_i32_0 : i32, i32, i32
  }
  func.func @transform_2(%arg0: i32) -> (i32, i32) {
    %c0_i32 = arith.constant 0 : i32
    %c0_i32_0 = arith.constant 0 : i32
    return %arg0, %c0_i32 : i32, i32
  }
  func.func @transform_3(%arg0: i32) -> (i32, i32) {
    %c0_i32 = arith.constant 0 : i32
    %c0_i32_0 = arith.constant 0 : i32
    return %arg0, %c0_i32 : i32, i32
  }
  func.func @transform_4(%arg0: i32) -> (i32, i32, i32) {
    %c0_i32 = arith.constant 0 : i32
    %c0_i32_0 = arith.constant 0 : i32
    %c0_i32_1 = arith.constant 0 : i32
    return %c0_i32, %arg0, %c0_i32_0 : i32, i32, i32
  }
  func.func @transform_5(%arg0: i32) -> (i32, i32) {
    %c0_i32 = arith.constant 0 : i32
    %c0_i32_0 = arith.constant 0 : i32
    %c0_i32_1 = arith.constant 0 : i32
    return %c0_i32, %c0_i32_0 : i32, i32
  }
  func.func @transform_6(%arg0: i32) -> (i32, i32) {
    %c0_i32 = arith.constant 0 : i32
    %c0_i32_0 = arith.constant 0 : i32
    %c0_i32_1 = arith.constant 0 : i32
    return %c0_i32, %c0_i32_0 : i32, i32
  }
  func.func @transform_7(%arg0: i32) -> (i32, i32, i32) {
    %c0_i32 = arith.constant 0 : i32
    %c0_i32_0 = arith.constant 0 : i32
    %c0_i32_1 = arith.constant 0 : i32
    %c0_i32_2 = arith.constant 0 : i32
    return %c0_i32, %c0_i32_0, %c0_i32_1 : i32, i32, i32
  }
  func.func @transform_8(%arg0: i32) -> (i32, i32) {
    %c0_i32 = arith.constant 0 : i32
    %c0_i32_0 = arith.constant 0 : i32
    %c0_i32_1 = arith.constant 0 : i32
    return %c0_i32, %c0_i32_0 : i32, i32
  }
  func.func @transform_9(%arg0: i32) -> (i32, i32, i32) {
    %c0_i32 = arith.constant 0 : i32
    %c0_i32_0 = arith.constant 0 : i32
    %c0_i32_1 = arith.constant 0 : i32
    return %c0_i32, %arg0, %c0_i32_0 : i32, i32, i32
  }
  func.func @transform_10(%arg0: i32) -> (i32, i32, i32) {
    %c0_i32 = arith.constant 0 : i32
    %c0_i32_0 = arith.constant 0 : i32
    %c0_i32_1 = arith.constant 0 : i32
    return %c0_i32, %arg0, %c0_i32_0 : i32, i32, i32
  }
}

</mosaic_0001>

<bundles_post_ra>
// kernel: tpu_custom_call.1
= control target key start
LH: loop header
LB: loop body
LE: loop exit
PB: predicated region body
PF: predicated region fallthrough
CT: control target
= control target key end

     0   :  { %16 = vsyncpa [#allocation3], 0  ;;  %s5746_s0 = inlined_call_operand.hbm [shape: f32[2,16,32], index: 0, kind: input, shape index: {}]   ;;  %s5747_s1 = inlined_call_operand.hbm [shape: f32[2,16,32], index: 1, kind: input, shape index: {}]   ;;  %s5748_s2 = inlined_call_operand.vmem [shape: f32[2,32], index: 2, kind: input, shape index: {}]   ;;  %s5749_s3 = inlined_call_operand.vmem [shape: f32[2,32], index: 3, kind: input, shape index: {}]   ;;  %s5750_s4 = inlined_call_operand.hbm [shape: f32[7,2,128], index: 4, kind: input, shape index: {}]   ;;  %s5751_s5 = inlined_call_operand.hbm [shape: f32[32,192], index: 5, kind: input, shape index: {}]   ;;  %s5752_s6 = inlined_call_operand.hbm [shape: f32[32,128], index: 6, kind: input, shape index: {}]   ;;  %s5753_s7 = inlined_call_operand.vmem [shape: f32[1,1,32], index: 7, kind: input, shape index: {}]   ;;  %s5754_s8 = inlined_call_operand.vmem [shape: f32[1,32], index: 8, kind: input, shape index: {}]   ;;  %s5755_s9 = inlined_call_operand.hbm [shape: f32[7,2,32], index: 9, kind: output, shape index: {0}]   ;;  %s5756_s10 = inlined_call_operand.hbm [shape: f32[7,2,16], index: 10, kind: output, shape index: {1}]  }
   0x1   :  { %17 = vsyncpa [#allocation6], 0 }
   0x2   :  { %18 = vsyncpa [#allocation9], 0 }
   0x3   :  { %19 = vsyncpa [#allocation4], 0 }
   0x4   :  { %20 = vsyncpa [#allocation13], 0  ;;  %s4825_s13 = smov [#allocation5]   ;;  %s4826_s15 = smov [#allocation8]  }
   0x5   :  { %s38_s14 = sshll.u32 %s4825_s13, 4  ;;  %s66_s16 = sshll.u32 %s4826_s15, 4  ;;  %s39_s14 = int_to_ptr.vmem [resolvable:$true] %s38_s14  ;;  %s67_s16 = int_to_ptr.vmem [resolvable:$true] %s66_s16 }
   0x6   :  { %s4683_s17 = scalar_lea.vmem %s39_s14, 512  ;;  %p4688_p1 = scmp.lt.s32.totalorder %s39_s14, %s39_s14 }
   0x7   :  { %p4684_p0 = scmp.ne.s32.totalorder %s39_s14, %s4683_s17  ;;  %p4689_p2 = scmp.lt.s32.totalorder %s4683_s17, %s4683_s17 }
   0x9   :  { %p4690_p3 = por %p4689_p2, %p4688_p1 }
   0xb   :  { %p4691_p4 = pnand %p4690_p3, %p4684_p0 }
   0xd   :  { %4694 = shalt.err (!%p4691_p4)
}
   0xe   :  { %s4827_s18 = smov 128   ;;  %s4828_s19 = smov 8  }
   0xf   :  { %44 = dma.hbm_to_vmem [thread:$0]  %s5747_s1, 512, %s39_s14, [#allocation6], %s4827_s18, %s4827_s18, %s4828_s19  }
  0x10   :  { %s4703_s22 = scalar_lea.vmem %s67_s16, 1024  ;;  %p4708_p6 = scmp.lt.s32.totalorder %s67_s16, %s67_s16 }
  0x11   :  { %p4704_p5 = scmp.ne.s32.totalorder %s67_s16, %s4703_s22  ;;  %p4709_p7 = scmp.lt.s32.totalorder %s4703_s22, %s4703_s22 }
  0x13   :  { %p4710_p8 = por %p4709_p7, %p4708_p6 }
  0x15   :  { %p4711_p9 = pnand %p4710_p8, %p4704_p5 }
  0x17   :  { %4714 = shalt.err (!%p4711_p9)
}
  0x18   :  { %s4829_s23 = smov 256   ;;  %s4830_s24 = smov 16  }
  0x19   :  { %72 = dma.hbm_to_vmem [thread:$0]  %s5751_s5, 1024, %s67_s16, [#allocation9], %s4829_s23, %s4829_s23, %s4830_s24  }
  0x1a   :  { %s4831_s27 = smov [#allocation2]   ;;  %s4832_s29 = smov [#allocation7]  }
  0x1b   :  { %s26_s28 = sshll.u32 %s4831_s27, 4  ;;  %s54_s30 = sshll.u32 %s4832_s29, 4  ;;  %s27_s28 = int_to_ptr.vmem [resolvable:$true] %s26_s28  ;;  %s55_s30 = int_to_ptr.vmem [resolvable:$true] %s54_s30 }
  0x1c   :  { %s4723_s1 = scalar_lea.vmem %s27_s28, 512  ;;  %p4728_p11 = scmp.lt.s32.totalorder %s27_s28, %s27_s28 }
  0x1d   :  { %p4724_p10 = scmp.ne.s32.totalorder %s27_s28, %s4723_s1  ;;  %p4729_p12 = scmp.lt.s32.totalorder %s4723_s1, %s4723_s1 }
  0x1f   :  { %p4730_p13 = por %p4729_p12, %p4728_p11 }
  0x21   :  { %p4731_p0 = pnand %p4730_p13, %p4724_p10 }
  0x23   :  { %4734 = shalt.err (!%p4731_p0)
}
  0x24   :  { %32 = dma.hbm_to_vmem [thread:$0]  %s5746_s0, 512, %s27_s28, [#allocation3], %s4827_s18, %s4827_s18, %s4828_s19  }
  0x25   :  { %s4743_s5 = scalar_lea.vmem %s55_s30, 224  ;;  %p4748_p2 = scmp.lt.s32.totalorder %s55_s30, %s55_s30 }
  0x26   :  { %p4744_p1 = scmp.ne.s32.totalorder %s55_s30, %s4743_s5  ;;  %p4749_p3 = scmp.lt.s32.totalorder %s4743_s5, %s4743_s5 }
  0x28   :  { %p4750_p4 = por %p4749_p3, %p4748_p2 }
  0x2a   :  { %p4751_p5 = pnand %p4750_p4, %p4744_p1 }
  0x2c   :  { %4754 = shalt.err (!%p4751_p5)
}
  0x2d   :  { %s4833_s13 = smov 32   ;;  %s4834_s14 = smov 2  }
  0x2e   :  { %60 = dma.hbm_to_vmem [thread:$0]  %s5750_s4, 224, %s55_s30, [#allocation6], %s4833_s13, %s4833_s13, %s4834_s14  }
  0x2f   :  { %s4835_s17 = smov [#allocation10]  }
  0x30   :  { %s78_s20 = sshll.u32 %s4835_s17, 4  ;;  %s79_s20 = int_to_ptr.vmem [resolvable:$true] %s78_s20 }
  0x31   :  { %s4763_s0 = scalar_lea.vmem %s79_s20, 512  ;;  %p4768_p7 = scmp.lt.s32.totalorder %s79_s20, %s79_s20 }
  0x32   :  { %p4764_p6 = scmp.ne.s32.totalorder %s79_s20, %s4763_s0  ;;  %p4769_p8 = scmp.lt.s32.totalorder %s4763_s0, %s4763_s0 }
  0x34   :  { %p4770_p9 = por %p4769_p8, %p4768_p7 }
  0x36   :  { %p4771_p10 = pnand %p4770_p9, %p4764_p6 }
  0x38   :  { %4774 = shalt.err (!%p4771_p10)
}
  0x39   :  { %84 = dma.hbm_to_vmem [thread:$0]  %s5752_s6, 512, %s79_s20, [#allocation9], %s4827_s18, %s4827_s18, %s4828_s19  }
  0x3a   :  { %4815 = dma.done.wait [#allocation3], 512  }
  0x3b   :  { %4816 = vsyncadd [#allocation3], 4294966784 }
  0x3c   :  { %4817 = dma.done.wait [#allocation6], 736  }
  0x3d   :  { %4818 = vsyncadd [#allocation6], 4294966560 }
  0x3e   :  { %4819 = dma.done.wait [#allocation9], 1536  }
  0x3f   :  { %4820 = vsyncadd [#allocation9], 4294965760  ;;  %v4836_v0 = vmov 0.0   ;;  %v4928_v1 = vld [vmem:[#allocation8 + $0x38] sm:$0xff]  ;;  %v4930_v2 = vld [vmem:[#allocation8 + $0x30] sm:$0xff]  ;;  %vm114_vm0 = vcmask 261120   ;;  %v197_v12 = vlaneseq }
  0x40   :  { %182 = vmatprep.mubr.f32.mxu0 %v4836_v0  ;;  %4339 = vmatprep.subr.mxu1 %v4836_v0  ;;  %v4932_v3 = vld [vmem:[#allocation8 + $0x28] sm:$0xff]  ;;  %v4935_v4 = vld [vmem:[#allocation8 + $0x20] sm:$0xff]  ;;  %v4938_v5 = vld [vmem:[#allocation8 + $0x18] sm:$0xff]  ;;  %v4837_v10 = vmov 1966171168   ;;  %vm272_vm1 = vcmask 130112  }
  0x41   :  { %142 = vmatprep.subr.mxu0 %v4928_v1  ;;  %v4941_v6 = vld [vmem:[#allocation8 + $0x10] sm:$0xff]  ;;  %v4944_v7 = vld [vmem:[#allocation8 + $0x8] sm:$0xff]  ;;  %v4947_v8 = vld [vmem:[#allocation8] sm:$0xff]  ;;  %v195_v11 = vunpack.c.l.s4 %v4837_v10  ;;  %v198_v14 = vshrl.u32 %v197_v12, 7  ;;  %v262_v45 = vand.u32 127, %v197_v12  ;;  %vm283_vm2 = vcmask 1041409  }
  0x42   :  { %143 = vmatpush1.msra.mxu0 %v4930_v2  ;;  %v104_v9 = vld [vmem:[%s5748_s2] sm:$0x3]  ;;  %v4968_v22 = vld [vmem:[#allocation5 + $0x8] sm:$0xff]  ;;  %v4972_v25 = vld [vmem:[#allocation5 + $0x10] sm:$0xff]  ;;  %vm286_vm3 = vcmask 123904   ;;  %v4838_v61 = vmov 0  }
  0x43   :  { %144 = vmatprep.subr.mxu0 %v4932_v3  ;;  %v196_v13 = vunpack.c.0.s8 %v195_v11  ;;  %v4963_v18 = vsub.s32 0, %v198_v14  ;;  %v4966_v21 = vld [vmem:[#allocation5] sm:$0xff]  ;;  %v4974_v26 = vld [vmem:[#allocation5 + $0x18] sm:$0xff]  ;;  %v267_v46 = vadd.s32 4294967288, %v262_v45  ;;  %v4996_v50 = vsub.s32 %v262_v45, %v198_v14  ;;  %4534 = vset.pattern.permute.xlu0 %v4838_v61  ;;  %s4840_s24 = smov 96   ;;  %s4841_s25 = smov 64  }
  0x44   :  { %145 = vmatpush1.msra.mxu0 %v4935_v4  ;;  %v4982_v30 = vld [vmem:[%s5753_s7] ss:$0 sm:$0xff]  ;;  %4533 = vset.pattern.permute.xlu1 %v4838_v61  ;;  %v5006_v62 = vsub.s32 1, %v198_v14  ;;  %vm4839_vm4 = vmmov 0   ;;  %vm390_vm5 = vcmask 130048   ;;  %v5041_v61 = vld [vmem:[#allocation2 + $0x18] sm:$0xff] }
  0x45   :  { %146 = vmatprep.subr.mxu0 %v4938_v5  ;;  %v4957_v15 = vsub.s32 %v196_v13, %v198_v14  ;;  %v4994_v48 = vsub.s32 %v267_v46, %v198_v14  ;;  %4343 = vmatprep.mubr.msk.f32.mxu1 %vm4839_vm4, %v4836_v0  ;;  %vm660_vm6 = vcmask 523264   ;;  %vm694_vm7 = vcmask 254976  }
  0x46   :  { %147 = vmatpush1.msra.mxu0 %v4941_v6 }
  0x47   :  { %148 = vmatprep.subr.mxu0 %v4944_v7 }
  0x48   :  { %149 = vmatpush1.msra.mxu0 %v4947_v8 }
  0x49   :  { %4220 = vmatmul.mubr.msk.f32.vlgmr.msra.gmra.mxu0 %vm114_vm0, %v104_v9  ;;  %4353 = vmatprep.subr.mxu0 %v4836_v0 }
  0x4a   :  { %4361 = vmatprep.mubr.msk.f32.mxu0 %vm4839_vm4, %v4836_v0 }
 0x109   :  { %v4959_v16 = vpop.f32.mrf.mxu0 }
 0x10a   :  { %v200_v17 = vrot.slane %v4959_v16, %v4957_v15 }
 0x10c   :  { %v201_v19 = vcombine.high %v200_v17, %v200_v17  ;;  %v208_v20 = vrot.slane %v200_v17, %v4957_v15 }
 0x10e   :  { %v215_v23 = vrot.slane %v201_v19, %v4957_v15  ;;  %v219_v24 = vrot.slane %v208_v20, %v4963_v18 }
 0x110   :  { %v226_v27 = vadd.f32 %v219_v24, %v4966_v21  ;;  %v223_v28 = vrot.slane %v215_v23, %v4963_v18  ;;  %v227_v29 = vadd.f32 %v219_v24, %v4968_v22 }
 0x112   :  { %v230_v31 = vmax.f32 %v226_v27, 0.0  ;;  %v228_v32 = vadd.f32 %v223_v28, %v4972_v25  ;;  %v231_v33 = vmax.f32 %v227_v29, 0.0  ;;  %v229_v34 = vadd.f32 %v223_v28, %v4974_v26 }
 0x114   :  { %v241_v35 = vmul.f32 %v4982_v30, %v230_v31  ;;  %v232_v36 = vmax.f32 %v228_v32, 0.0  ;;  %v233_v37 = vmax.f32 %v229_v34, 0.0  ;;  %v242_v40 = vmul.f32 %v4982_v30, %v231_v33 }
 0x116   :  { %v245_v38 = vsel %vm114_vm0, %v241_v35, 0.0  ;;  %v243_v39 = vmul.f32 %v4982_v30, %v232_v36  ;;  %v244_v42 = vmul.f32 %v4982_v30, %v233_v37  ;;  %v248_v43 = vsel %vm114_vm0, %v242_v40, 0.0 }
 0x117   :  { %246 = vadd.xlane.f32.xlu0 %v245_v38 }
 0x118   :  { %v251_v41 = vsel %vm114_vm0, %v243_v39, 0.0  ;;  %v254_v44 = vsel %vm114_vm0, %v244_v42, 0.0 }
 0x119   :  { %252 = vadd.xlane.f32.xlu1 %v251_v41 }
 0x11b   :  { %249 = vadd.xlane.f32.xlu0 %v248_v43  ;;  %v5021_v43 = vld [vmem:[%s5754_s8] ss:$0 sm:$0xff] }
 0x11d   :  { %255 = vadd.xlane.f32.xlu1 %v254_v44 }
 0x1a0   :  { %v247_v47 = vpop.xlane.xlu0 %246 }
 0x1a1   :  { %v266_v54 = vrot.slane %v247_v47, %v4996_v50 }
 0x1a2   :  { %v253_v49 = vpop.xlane.xlu1 %252 }
 0x1a3   :  { %v277_v55 = vrot.slane %v253_v49, %v4996_v50 }
 0x1a4   :  { %v250_v51 = vpop.xlane.xlu0 %249 }
 0x1a5   :  { %v271_v52 = vrot.slane %v250_v51, %v4994_v48 }
 0x1a6   :  { %v256_v53 = vpop.xlane.xlu1 %255 }
 0x1a7   :  { %v281_v56 = vrot.slane %v256_v53, %v4994_v48  ;;  %v273_v57 = vsel %vm272_vm1, %v271_v52, %v266_v54  ;;  %v5029_v52 = vld [vmem:[#allocation2] sm:$0xff] }
 0x1a9   :  { %v282_v58 = vsel %vm272_vm1, %v281_v56, %v277_v55 }
 0x1aa   :  { %v284_v59 = vsel %vm283_vm2, %v282_v58, %v273_v57 }
 0x1ab   :  { %v287_v60 = vsel %vm286_vm3, %v284_v59, -inf }
 0x1ac   :  { %288 = vmax.xlane.f32.xlu0 %v287_v60 }
 0x235   :  { %v289_v63 = vpop.xlane.xlu0 %288 }
 0x236   :  { %v294_v9 = vrot.slane %v289_v63, %v4963_v18  ;;  %v298_v10 = vrot.slane %v289_v63, %v5006_v62 }
 0x238   :  { %v301_v11 = vsub.f32 %v247_v47, %v294_v9  ;;  %v302_v12 = vsub.f32 %v250_v51, %v294_v9  ;;  %v303_v13 = vsub.f32 %v253_v49, %v298_v10  ;;  %v304_v20 = vsub.f32 %v256_v53, %v298_v10  ;;  %v5027_v51 = vld [vmem:[#allocation2 + $0x8] sm:$0xff]  ;;  %v5045_v10 = vld [vmem:[#allocation2 + $0x10] sm:$0xff] }
 0x239   :  { %4340 = vmatpush3.msra.mxu1 %v5027_v51 }
 0x23a   :  { %v305_v17 = vmul.f32 1.442695, %v301_v11  ;;  %v307_v19 = vmul.f32 1.442695, %v302_v12  ;;  %v309_v23 = vmul.f32 1.442695, %v303_v13  ;;  %4341 = vmatprep.subr.mxu1 %v4836_v0 }
 0x23b   :  { %v311_v24 = vmul.f32 1.442695, %v304_v20  ;;  %4342 = vmatpush3.msra.mxu1 %v5029_v52 }
 0x23c   :  { %4535 = vpow2.f32 %v305_v17  ;;  %4346 = vmatprep.subr.mxu1 %v4836_v0 }
 0x23d   :  { %4537 = vpow2.f32 %v307_v19 }
 0x23e   :  { %4539 = vpow2.f32 %v309_v23 }
 0x23f   :  { %4541 = vpow2.f32 %v311_v24 }
 0x249   :  { %v4536_v27 = vpop.eup %4535 }
 0x24a   :  { %v4538_v14 = vpop.eup %4537  ;;  %318 = vperm.xlu1 %4533, %v4536_v27  }
 0x24b   :  { %321 = vperm.xlu0 %4534, %v4538_v14   ;;  %v4540_v28 = vpop.eup %4539 }
 0x24c   :  { %v4542_v29 = vpop.eup %4541 }
 0x24e   :  { %324 = vperm.xlu1 %4533, %v4540_v28  }
 0x252   :  { %327 = vperm.xlu1 %4533, %v4542_v29  }
 0x2c5   :  { %v319_v31 = vpop.permute.xlu1 %318 }
 0x2c6   :  { %v322_v32 = vpop.permute.xlu0 %321  ;;  %v332_v35 = vrot.slane %v319_v31, %v4996_v50 }
 0x2c7   :  { %v336_v34 = vrot.slane %v322_v32, %v4994_v48  ;;  %v5075_v32 = vld [vmem:[#allocation10 + $0x8] sm:$0xff] }
 0x2c9   :  { %v325_v33 = vpop.permute.xlu1 %324  ;;  %v337_v39 = vsel %vm272_vm1, %v336_v34, %v332_v35 }
 0x2ca   :  { %v341_v37 = vrot.slane %v325_v33, %v4996_v50  ;;  %v5080_v33 = vld [vmem:[#allocation10] sm:$0xff] }
 0x2cd   :  { %v328_v36 = vpop.permute.xlu1 %327 }
 0x2ce   :  { %v345_v38 = vrot.slane %v328_v36, %v4994_v48 }
 0x2d0   :  { %v346_v40 = vsel %vm272_vm1, %v345_v38, %v341_v37 }
 0x2d1   :  { %v347_v41 = vsel %vm283_vm2, %v346_v40, %v337_v39 }
 0x2d2   :  { %v349_v42 = vsel %vm286_vm3, %v347_v41, 0.0 }
 0x2d3   :  { %350 = vadd.xlane.f32.xlu1 %v349_v42  ;;  %v186_v42 = vpop.f32.mrf.mxu0 }
 0x2e4   :  { %558 = vrot.lane.b32.xlu1 %v5021_v43, %s4833_s13 }
 0x35c   :  { %v351_v44 = vpop.xlane.xlu1 %350 }
 0x35d   :  { %v356_v45 = vrot.slane %v351_v44, %v4963_v18  ;;  %v360_v46 = vrot.slane %v351_v44, %v5006_v62  ;;  %v105_v44 = vld [vmem:[%s5749_s3] sm:$0x3] }
 0x35f   :  { %4543 = vrcp.f32 %v356_v45 }
 0x360   :  { %4545 = vrcp.f32 %v360_v46  ;;  %v559_v34 = vpop.permute.xlu1 %558  ;;  %v574_v46 = vld [vmem:[#allocation7] sm:$0x3] }
 0x361   :  { %v561_v35 = vadd.f32 %v559_v34, %v4959_v16 }
 0x363   :  { %v562_v36 = vmul.f32 0.5, %v561_v35 }
 0x365   :  { %4547 = vtanh.f32 %v562_v36 }
 0x36c   :  { %v4544_v47 = vpop.eup %4543 }
 0x36d   :  { %v364_v49 = vmul.f32 %v4544_v47, %v4536_v27  ;;  %v365_v53 = vmul.f32 %v4544_v47, %v4538_v14  ;;  %v4546_v54 = vpop.eup %4545  ;;  %v5068_v14 = vld [vmem:[#allocation10 + $0x18] sm:$0xff] }
 0x36e   :  { %v367_v55 = vmul.f32 %v4546_v54, %v4540_v28  ;;  %v368_v56 = vmul.f32 %v4546_v54, %v4542_v29  ;;  %v5070_v28 = vld [vmem:[#allocation10 + $0x10] sm:$0xff]  ;;  %4354 = vmatpush3.msra.mxu0 %v5068_v14 }
 0x36f   :  { %376 = vperm.xlu0 %4534, %v364_v49   ;;  %4355 = vmatprep.subr.mxu0 %v4836_v0 }
 0x370   :  { %4356 = vmatpush3.msra.mxu0 %v5070_v28 }
 0x371   :  { %4357 = vmatprep.subr.mxu0 %v4836_v0 }
 0x372   :  { %4358 = vmatpush3.msra.mxu0 %v5075_v32  ;;  %v4548_v37 = vpop.eup %4547 }
 0x373   :  { %379 = vperm.xlu0 %4534, %v365_v53   ;;  %4359 = vmatprep.subr.mxu0 %v4836_v0  ;;  %v564_v38 = vmul.f32 0.5, %v4548_v37 }
 0x374   :  { %4360 = vmatpush3.msra.mxu0 %v5080_v33 }
 0x375   :  { %4378 = vmatprep.subr.mxu0 %v4836_v0  ;;  %v565_v39 = vadd.f32 0.5, %v564_v38 }
 0x377   :  { %466 = vperm.xlu0 %4534, %v367_v55  }
 0x37b   :  { %469 = vperm.xlu0 %4534, %v368_v56  }
 0x3ea   :  { %v377_v57 = vpop.permute.xlu0 %376 }
 0x3eb   :  { %v384_v59 = vrot.slane %v377_v57, %v4996_v50 }
 0x3ee   :  { %v380_v58 = vpop.permute.xlu0 %379 }
 0x3ef   :  { %v388_v60 = vrot.slane %v380_v58, %v4994_v48 }
 0x3f1   :  { %v389_v63 = vsel %vm272_vm1, %v388_v60, %v384_v59 }
 0x3f2   :  { %4344 = vmatmul.mubr.msk.f32.vlgmr.msra.gmra.mxu1 %vm390_vm5, %v389_v63  ;;  %v467_v9 = vpop.permute.xlu0 %466 }
 0x3f3   :  { %4347 = vmatpush3.msra.mxu1 %v5041_v61  ;;  %4350 = vmatprep.mubr.msk.f32.mxu1 %vm4839_vm4, %v4836_v0  ;;  %v474_v12 = vrot.slane %v467_v9, %v4996_v50 }
 0x3f4   :  { %4348 = vmatprep.subr.mxu1 %v4836_v0 }
 0x3f5   :  { %4349 = vmatpush3.msra.mxu1 %v5045_v10 }
 0x3f6   :  { %v470_v11 = vpop.permute.xlu0 %469  ;;  %733 = vmatprep.subr.mxu1 %v4928_v1 }
 0x3f7   :  { %v478_v13 = vrot.slane %v470_v11, %v4994_v48 }
 0x3f9   :  { %v479_v17 = vsel %vm272_vm1, %v478_v13, %v474_v12 }
 0x3fa   :  { %4351 = vmatmul.mubr.msk.f32.vlgmr.msra.gmra.mxu1 %vm390_vm5, %v479_v17  ;;  %v696_v19 = vsel %vm283_vm2, %v479_v17, %v389_v63 }
 0x3fb   :  { %698 = vst.msk [vmem:[#allocation12] sm:$0x3] %vm286_vm3, %v696_v19  ;;  %734 = vmatpush1.msra.mxu1 %v4930_v2  ;;  %773 = vmatprep.mubr.f32.mxu1 %v4836_v0 }
 0x3fc   :  { %735 = vmatprep.subr.mxu1 %v4932_v3 }
 0x3fd   :  { %736 = vmatpush1.msra.mxu1 %v4935_v4 }
 0x3fe   :  { %737 = vmatprep.subr.mxu1 %v4938_v5 }
 0x3ff   :  { %738 = vmatpush1.msra.mxu1 %v4941_v6 }
 0x400   :  { %739 = vmatprep.subr.mxu1 %v4944_v7 }
 0x401   :  { %740 = vmatpush1.msra.mxu1 %v4947_v8 }
 0x402   :  { %4364 = vmatprep.subr.mxu1 %v4836_v0 }
 0x4b2   :  { %v459_v20 = vpop.f32.mrf.mxu1 }
 0x4b4   :  { %v4345_v23 = vpop.f32.mrf.mxu1 }
 0x4ba   :  { %v548_v24 = vpop.f32.mrf.mxu1 }
 0x4bb   :  { %v568_v27 = vrot.slane %v548_v24, 7 }
 0x4bc   :  { %v4352_v29 = vpop.f32.mrf.mxu1 }
 0x4bd   :  { %v569_v31 = vsel %vm283_vm2, %v568_v27, %v459_v20 }
 0x4be   :  { %570 = vrot.lane.b32.xlu0 %v569_v31, %s4833_s13 }
 0x530   :  { %v571_v40 = vpop.permute.xlu0 %570 }
 0x531   :  { %v573_v41 = vmul.f32 %v571_v40, %v565_v39 }
 0x533   :  { %580 = vrot.lane.b32.xlu0 %v573_v41, %s4840_s24 }
 0x537   :  { %656 = vrot.lane.b32.xlu0 %v4959_v16, %s4841_s25 }
 0x53b   :  { %658 = vrot.lane.b32.xlu0 %v186_v42, %s4841_s25 }
 0x53f   :  { %670 = vrot.lane.b32.xlu0 %v105_v44, %s4833_s13 }
 0x5a5   :  { %v581_v45 = vpop.permute.xlu0 %580 }
 0x5a6   :  { %4362 = vmatmul.mubr.msk.f32.vlgmr.msra.gmra.mxu0 %vm114_vm0, %v581_v45 }
 0x5a7   :  { %4379 = vmatpush3.msra.mxu0 %v5068_v14  ;;  %4386 = vmatprep.mubr.msk.f32.mxu0 %vm4839_vm4, %v4836_v0 }
 0x5a8   :  { %4380 = vmatprep.subr.mxu0 %v4836_v0 }
 0x5a9   :  { %4381 = vmatpush3.msra.mxu0 %v5070_v28  ;;  %v657_v16 = vpop.permute.xlu0 %656 }
 0x5aa   :  { %4382 = vmatprep.subr.mxu0 %v4836_v0 }
 0x5ab   :  { %4383 = vmatpush3.msra.mxu0 %v5075_v32 }
 0x5ac   :  { %4384 = vmatprep.subr.mxu0 %v4836_v0 }
 0x5ad   :  { %4385 = vmatpush3.msra.mxu0 %v5080_v33  ;;  %v659_v47 = vpop.permute.xlu0 %658 }
 0x5ae   :  { %4389 = vmatprep.subr.mxu0 %v4836_v0  ;;  %v661_v54 = vsel %vm660_vm6, %v657_v16, %v659_v47 }
 0x5b1   :  { %v671_v12 = vpop.permute.xlu0 %670 }
 0x666   :  { %v650_v49 = vpop.f32.mrf.mxu0 }
 0x667   :  { %v654_v53 = vadd.f32 %v650_v49, %v574_v46 }
 0x668   :  { %v4363_v55 = vpop.f32.mrf.mxu0 }
 0x669   :  { %v663_v56 = vadd.f32 %v661_v54, %v654_v53 }
 0x66b   :  { %4549 = vtanh.f32 %v663_v56  ;;  %v664_v58 = vmul.f32 0.5, %v663_v56 }
 0x66d   :  { %4551 = vtanh.f32 %v664_v58 }
 0x678   :  { %v4550_v57 = vpop.eup %4549 }
 0x679   :  { %675 = vrot.lane.b32.xlu1 %v4550_v57, %s4841_s25 }
 0x67a   :  { %v4552_v59 = vpop.eup %4551 }
 0x67b   :  { %v666_v60 = vmul.f32 0.5, %v4552_v59 }
 0x67d   :  { %v667_v63 = vadd.f32 0.5, %v666_v60 }
 0x67f   :  { %v673_v13 = vmul.f32 %v671_v12, %v667_v63 }
 0x6eb   :  { %v676_v9 = vpop.permute.xlu1 %675 }
 0x6ec   :  { %v678_v11 = vmul.f32 %v676_v9, %v667_v63 }
 0x6ee   :  { %680 = vrot.lane.b32.xlu1 %v678_v11, %s4833_s13 }
 0x760   :  { %v681_v17 = vpop.permute.xlu1 %680 }
 0x761   :  { %v5109_v19 = vadd.f32 %v681_v17, %v673_v13 }
 0x763   :  { %4553 = vtanh.f32 %v5109_v19 }
 0x770   :  { %v4554_v20 = vpop.eup %4553 }
 0x771   :  { %686 = vrot.lane.b32.xlu0 %v4554_v20, %s4841_s25 }
 0x7e3   :  { %v687_v23 = vpop.permute.xlu0 %686 }
 0x7e4   :  { %v689_v24 = vmul.f32 %v687_v23, %v667_v63 }
 0x7e6   :  { %691 = vrot.lane.b32.xlu1 %v689_v24, %s4833_s13 }
 0x858   :  { %v692_v27 = vpop.permute.xlu1 %691 }
 0x859   :  { %695 = vst.msk [vmem:[#allocation11] sm:$0x3] %vm694_vm7, %v692_v27  ;;  %4226 = vmatmul.mubr.msk.f32.vlgmr.msra.gmra.mxu1 %vm114_vm0, %v692_v27 }
 0x85a   :  { %4365 = vmatpush3.msra.mxu1 %v5027_v51  ;;  %4368 = vmatprep.mubr.msk.f32.mxu1 %vm4839_vm4, %v4836_v0 }
 0x85b   :  { %4366 = vmatprep.subr.mxu1 %v4836_v0 }
 0x85c   :  { %4367 = vmatpush3.msra.mxu1 %v5029_v52 }
 0x85d   :  { %4371 = vmatprep.subr.mxu1 %v4836_v0 }
 0x919   :  { %v5122_v29 = vpop.f32.mrf.mxu1 }
 0x91a   :  { %v791_v31 = vrot.slane %v5122_v29, %v4957_v15 }
 0x91c   :  { %v792_v34 = vcombine.high %v791_v31, %v791_v31  ;;  %v799_v35 = vrot.slane %v791_v31, %v4957_v15 }
 0x91e   :  { %v806_v36 = vrot.slane %v792_v34, %v4957_v15  ;;  %v810_v37 = vrot.slane %v799_v35, %v4963_v18 }
 0x920   :  { %v818_v38 = vadd.f32 %v810_v37, %v4968_v22  ;;  %v817_v39 = vadd.f32 %v810_v37, %v4966_v21  ;;  %v814_v40 = vrot.slane %v806_v36, %v4963_v18 }
 0x922   :  { %v822_v41 = vmax.f32 %v818_v38, 0.0  ;;  %v821_v42 = vmax.f32 %v817_v39, 0.0  ;;  %v819_v44 = vadd.f32 %v814_v40, %v4972_v25  ;;  %v820_v45 = vadd.f32 %v814_v40, %v4974_v26 }
 0x924   :  { %v833_v16 = vmul.f32 %v4982_v30, %v822_v41  ;;  %v832_v46 = vmul.f32 %v4982_v30, %v821_v42  ;;  %v823_v47 = vmax.f32 %v819_v44, 0.0  ;;  %v824_v55 = vmax.f32 %v820_v45, 0.0 }
 0x926   :  { %v839_v49 = vsel %vm114_vm0, %v833_v16, 0.0  ;;  %v836_v53 = vsel %vm114_vm0, %v832_v46, 0.0  ;;  %v834_v54 = vmul.f32 %v4982_v30, %v823_v47  ;;  %v835_v57 = vmul.f32 %v4982_v30, %v824_v55 }
 0x927   :  { %840 = vadd.xlane.f32.xlu1 %v839_v49  ;;  %837 = vadd.xlane.f32.xlu0 %v836_v53 }
 0x928   :  { %v842_v56 = vsel %vm114_vm0, %v834_v54, 0.0  ;;  %v845_v58 = vsel %vm114_vm0, %v835_v57, 0.0 }
 0x92b   :  { %843 = vadd.xlane.f32.xlu0 %v842_v56 }
 0x92f   :  { %846 = vadd.xlane.f32.xlu0 %v845_v58 }
 0x9b0   :  { %v838_v59 = vpop.xlane.xlu0 %837  ;;  %v841_v60 = vpop.xlane.xlu1 %840 }
 0x9b1   :  { %v859_v9 = vrot.slane %v841_v60, %v4994_v48  ;;  %v855_v11 = vrot.slane %v838_v59, %v4996_v50 }
 0x9b3   :  { %v860_v20 = vsel %vm272_vm1, %v859_v9, %v855_v11 }
 0x9b4   :  { %v844_v63 = vpop.xlane.xlu0 %843 }
 0x9b5   :  { %v864_v13 = vrot.slane %v844_v63, %v4996_v50 }
 0x9b8   :  { %v847_v12 = vpop.xlane.xlu0 %846 }
 0x9b9   :  { %v868_v17 = vrot.slane %v847_v12, %v4994_v48 }
 0x9bb   :  { %v869_v23 = vsel %vm272_vm1, %v868_v17, %v864_v13 }
 0x9bc   :  { %v870_v24 = vsel %vm283_vm2, %v869_v23, %v860_v20 }
 0x9bd   :  { %v872_v27 = vsel %vm286_vm3, %v870_v24, -inf }
 0x9be   :  { %873 = vmax.xlane.f32.xlu1 %v872_v27 }
 0xa47   :  { %v874_v31 = vpop.xlane.xlu1 %873 }
 0xa48   :  { %v879_v34 = vrot.slane %v874_v31, %v4963_v18  ;;  %v883_v35 = vrot.slane %v874_v31, %v5006_v62 }
 0xa4a   :  { %v886_v36 = vsub.f32 %v838_v59, %v879_v34  ;;  %v887_v37 = vsub.f32 %v841_v60, %v879_v34  ;;  %v889_v38 = vsub.f32 %v847_v12, %v883_v35  ;;  %v888_v39 = vsub.f32 %v844_v63, %v883_v35 }
 0xa4c   :  { %v890_v40 = vmul.f32 1.442695, %v886_v36  ;;  %v892_v41 = vmul.f32 1.442695, %v887_v37  ;;  %v896_v42 = vmul.f32 1.442695, %v889_v38 }
 0xa4d   :  { %v894_v44 = vmul.f32 1.442695, %v888_v39 }
 0xa4e   :  { %4555 = vpow2.f32 %v890_v40 }
 0xa4f   :  { %4557 = vpow2.f32 %v892_v41 }
 0xa50   :  { %4559 = vpow2.f32 %v896_v42 }
 0xa51   :  { %4561 = vpow2.f32 %v894_v44 }
 0xa5b   :  { %v4556_v45 = vpop.eup %4555 }
 0xa5c   :  { %v4558_v16 = vpop.eup %4557  ;;  %903 = vperm.xlu0 %4534, %v4556_v45  }
 0xa5d   :  { %906 = vperm.xlu1 %4533, %v4558_v16   ;;  %v4560_v46 = vpop.eup %4559 }
 0xa5e   :  { %v4562_v47 = vpop.eup %4561 }
 0xa60   :  { %912 = vperm.xlu0 %4534, %v4560_v46  }
 0xa61   :  { %909 = vperm.xlu1 %4533, %v4562_v47  }
 0xad7   :  { %v904_v49 = vpop.permute.xlu0 %903 }
 0xad8   :  { %v907_v53 = vpop.permute.xlu1 %906  ;;  %v917_v55 = vrot.slane %v904_v49, %v4996_v50 }
 0xad9   :  { %v921_v54 = vrot.slane %v907_v53, %v4994_v48 }
 0xadb   :  { %v913_v56 = vpop.permute.xlu0 %912  ;;  %v922_v60 = vsel %vm272_vm1, %v921_v54, %v917_v55 }
 0xadc   :  { %v910_v57 = vpop.permute.xlu1 %909  ;;  %v930_v58 = vrot.slane %v913_v56, %v4994_v48 }
 0xadd   :  { %v926_v59 = vrot.slane %v910_v57, %v4996_v50 }
 0xadf   :  { %v931_v63 = vsel %vm272_vm1, %v930_v58, %v926_v59  ;;  %v1159_v59 = vld [vmem:[#allocation7 + $0x2] sm:$0x3] }
 0xae0   :  { %v932_v9 = vsel %vm283_vm2, %v931_v63, %v922_v60 }
 0xae1   :  { %v934_v11 = vsel %vm286_vm3, %v932_v9, 0.0 }
 0xae2   :  { %935 = vadd.xlane.f32.xlu1 %v934_v11 }
 0xb6b   :  { %v936_v12 = vpop.xlane.xlu1 %935 }
 0xb6c   :  { %v941_v13 = vrot.slane %v936_v12, %v4963_v18  ;;  %v945_v17 = vrot.slane %v936_v12, %v5006_v62 }
 0xb6e   :  { %4563 = vrcp.f32 %v941_v13 }
 0xb6f   :  { %4565 = vrcp.f32 %v945_v17 }
 0xb7b   :  { %v4564_v20 = vpop.eup %4563 }
 0xb7c   :  { %v949_v23 = vmul.f32 %v4564_v20, %v4556_v45  ;;  %v950_v24 = vmul.f32 %v4564_v20, %v4558_v16  ;;  %v4566_v27 = vpop.eup %4565 }
 0xb7d   :  { %v952_v31 = vmul.f32 %v4566_v27, %v4562_v47  ;;  %v953_v34 = vmul.f32 %v4566_v27, %v4560_v46 }
 0xb7e   :  { %961 = vperm.xlu0 %4534, %v949_v23  }
 0xb82   :  { %964 = vperm.xlu0 %4534, %v950_v24  }
 0xb86   :  { %1050 = vperm.xlu0 %4534, %v952_v31  }
 0xb8a   :  { %1053 = vperm.xlu0 %4534, %v953_v34  }
 0xb8e   :  { %1142 = vrot.lane.b32.xlu0 %v5021_v43, %s4833_s13 }
 0xbf9   :  { %v962_v35 = vpop.permute.xlu0 %961 }
 0xbfa   :  { %v969_v37 = vrot.slane %v962_v35, %v4996_v50 }
 0xbfd   :  { %v965_v36 = vpop.permute.xlu0 %964 }
 0xbfe   :  { %v973_v38 = vrot.slane %v965_v36, %v4994_v48 }
 0xc00   :  { %v974_v39 = vsel %vm272_vm1, %v973_v38, %v969_v37 }
 0xc01   :  { %4369 = vmatmul.mubr.msk.f32.vlgmr.msra.gmra.mxu1 %vm390_vm5, %v974_v39  ;;  %v1051_v40 = vpop.permute.xlu0 %1050 }
 0xc02   :  { %4372 = vmatpush3.msra.mxu1 %v5041_v61  ;;  %4375 = vmatprep.mubr.msk.f32.mxu1 %vm4839_vm4, %v4836_v0  ;;  %v1058_v42 = vrot.slane %v1051_v40, %v4996_v50 }
 0xc03   :  { %4373 = vmatprep.subr.mxu1 %v4836_v0 }
 0xc04   :  { %4374 = vmatpush3.msra.mxu1 %v5045_v10 }
 0xc05   :  { %v1054_v41 = vpop.permute.xlu0 %1053  ;;  %1314 = vmatprep.subr.mxu1 %v4928_v1  ;;  %v777_v1 = vpop.f32.mrf.mxu1 }
 0xc06   :  { %v1062_v44 = vrot.slane %v1054_v41, %v4994_v48 }
 0xc08   :  { %v1063_v45 = vsel %vm272_vm1, %v1062_v44, %v1058_v42 }
 0xc09   :  { %4376 = vmatmul.mubr.msk.f32.vlgmr.msra.gmra.mxu1 %vm390_vm5, %v1063_v45  ;;  %v1276_v16 = vsel %vm283_vm2, %v1063_v45, %v974_v39 }
 0xc0a   :  { %1279 = vst.msk [vmem:[#allocation12 + $0x2] sm:$0x3] %vm286_vm3, %v1276_v16  ;;  %1315 = vmatpush1.msra.mxu1 %v4930_v2  ;;  %1354 = vmatprep.mubr.f32.mxu1 %v4836_v0 }
 0xc0b   :  { %1316 = vmatprep.subr.mxu1 %v4932_v3 }
 0xc0c   :  { %1317 = vmatpush1.msra.mxu1 %v4935_v4  ;;  %v1143_v4 = vpop.permute.xlu0 %1142 }
 0xc0d   :  { %1318 = vmatprep.subr.mxu1 %v4938_v5  ;;  %v1145_v5 = vadd.f32 %v1143_v4, %v5122_v29 }
 0xc0e   :  { %1319 = vmatpush1.msra.mxu1 %v4941_v6 }
 0xc0f   :  { %1320 = vmatprep.subr.mxu1 %v4944_v7  ;;  %v1146_v6 = vmul.f32 0.5, %v1145_v5 }
 0xc10   :  { %1321 = vmatpush1.msra.mxu1 %v4947_v8 }
 0xc11   :  { %4396 = vmatprep.subr.mxu1 %v4836_v0  ;;  %4567 = vtanh.f32 %v1146_v6 }
 0xc1e   :  { %v4568_v7 = vpop.eup %4567 }
 0xc1f   :  { %v1148_v54 = vmul.f32 0.5, %v4568_v7 }
 0xc21   :  { %v1149_v8 = vadd.f32 0.5, %v1148_v54 }
 0xcc1   :  { %v1043_v46 = vpop.f32.mrf.mxu1 }
 0xcc3   :  { %v4370_v47 = vpop.f32.mrf.mxu1 }
 0xcc9   :  { %v1132_v2 = vpop.f32.mrf.mxu1 }
 0xcca   :  { %v1152_v49 = vrot.slane %v1132_v2, 7 }
 0xccb   :  { %v4377_v53 = vpop.f32.mrf.mxu1 }
 0xccc   :  { %v1153_v3 = vsel %vm283_vm2, %v1152_v49, %v1043_v46 }
 0xccd   :  { %1154 = vrot.lane.b32.xlu0 %v1153_v3, %s4833_s13 }
 0xd3f   :  { %v1155_v55 = vpop.permute.xlu0 %1154 }
 0xd40   :  { %v1157_v56 = vmul.f32 %v1155_v55, %v1149_v8 }
 0xd42   :  { %1165 = vrot.lane.b32.xlu0 %v1157_v56, %s4840_s24 }
 0xd46   :  { %1241 = vrot.lane.b32.xlu0 %v5122_v29, %s4841_s25 }
 0xd4a   :  { %1243 = vrot.lane.b32.xlu0 %v777_v1, %s4841_s25 }
 0xdb4   :  { %v1166_v57 = vpop.permute.xlu0 %1165 }
 0xdb5   :  { %4387 = vmatmul.mubr.msk.f32.vlgmr.msra.gmra.mxu0 %vm114_vm0, %v1166_v57 }
 0xdb6   :  { %4390 = vmatpush3.msra.mxu0 %v5027_v51  ;;  %4393 = vmatprep.mubr.msk.f32.mxu0 %vm4839_vm4, %v4836_v0 }
 0xdb7   :  { %4391 = vmatprep.subr.mxu0 %v4836_v0 }
 0xdb8   :  { %4392 = vmatpush3.msra.mxu0 %v5029_v52  ;;  %v1242_v58 = vpop.permute.xlu0 %1241 }
 0xdb9   :  { %4403 = vmatprep.subr.mxu0 %v4836_v0 }
 0xdbc   :  { %v1244_v60 = vpop.permute.xlu0 %1243 }
 0xdbd   :  { %v1245_v9 = vsel %vm660_vm6, %v1242_v58, %v1244_v60 }
 0xe75   :  { %v1235_v29 = vpop.f32.mrf.mxu0 }
 0xe76   :  { %v1239_v63 = vadd.f32 %v1235_v29, %v1159_v59 }
 0xe77   :  { %v4388_v11 = vpop.f32.mrf.mxu0 }
 0xe78   :  { %v1247_v12 = vadd.f32 %v1245_v9, %v1239_v63 }
 0xe7a   :  { %4569 = vtanh.f32 %v1247_v12  ;;  %v1248_v13 = vmul.f32 0.5, %v1247_v12 }
 0xe7c   :  { %4571 = vtanh.f32 %v1248_v13 }
 0xe87   :  { %v4570_v51 = vpop.eup %4569 }
 0xe88   :  { %1255 = vrot.lane.b32.xlu1 %v4570_v51, %s4841_s25 }
 0xe89   :  { %v4572_v17 = vpop.eup %4571 }
 0xe8a   :  { %v1250_v20 = vmul.f32 0.5, %v4572_v17 }
 0xe8c   :  { %v1251_v52 = vadd.f32 0.5, %v1250_v20 }
 0xe8e   :  { %v1253_v27 = vmul.f32 %v1251_v52, %v5109_v19 }
 0xefa   :  { %v1256_v23 = vpop.permute.xlu1 %1255 }
 0xefb   :  { %v1258_v24 = vmul.f32 %v1256_v23, %v1251_v52 }
 0xefd   :  { %1260 = vrot.lane.b32.xlu0 %v1258_v24, %s4833_s13 }
 0xf6f   :  { %v1261_v31 = vpop.permute.xlu0 %1260 }
 0xf70   :  { %v5207_v34 = vadd.f32 %v1261_v31, %v1253_v27 }
 0xf72   :  { %4573 = vtanh.f32 %v5207_v34 }
 0xf7f   :  { %v4574_v35 = vpop.eup %4573 }
 0xf80   :  { %1266 = vrot.lane.b32.xlu0 %v4574_v35, %s4841_s25 }
 0xff2   :  { %v1267_v36 = vpop.permute.xlu0 %1266 }
 0xff3   :  { %v1269_v37 = vmul.f32 %v1267_v36, %v1251_v52 }
 0xff5   :  { %1271 = vrot.lane.b32.xlu0 %v1269_v37, %s4833_s13 }
0x1067   :  { %v1272_v38 = vpop.permute.xlu0 %1271 }
0x1068   :  { %1275 = vst.msk [vmem:[#allocation11 + $0x2] sm:$0x3] %vm694_vm7, %v1272_v38  ;;  %4232 = vmatmul.mubr.msk.f32.vlgmr.msra.gmra.mxu1 %vm114_vm0, %v1272_v38 }
0x1069   :  { %4397 = vmatpush3.msra.mxu1 %v5041_v61  ;;  %4400 = vmatprep.mubr.msk.f32.mxu1 %vm4839_vm4, %v4836_v0 }
0x106a   :  { %4398 = vmatprep.subr.mxu1 %v4836_v0 }
0x106b   :  { %4399 = vmatpush3.msra.mxu1 %v5045_v10 }
0x1128   :  { %v5219_v19 = vpop.f32.mrf.mxu1 }
0x1129   :  { %v1372_v39 = vrot.slane %v5219_v19, %v4957_v15 }
0x112b   :  { %v1373_v40 = vcombine.high %v1372_v39, %v1372_v39  ;;  %v1380_v41 = vrot.slane %v1372_v39, %v4957_v15 }
0x112d   :  { %v1387_v42 = vrot.slane %v1373_v40, %v4957_v15  ;;  %v1391_v44 = vrot.slane %v1380_v41, %v4963_v18 }
0x112f   :  { %v1399_v61 = vadd.f32 %v1391_v44, %v4968_v22  ;;  %v1398_v45 = vadd.f32 %v1391_v44, %v4966_v21  ;;  %v1395_v16 = vrot.slane %v1387_v42, %v4963_v18 }
0x1131   :  { %v1403_v1 = vmax.f32 %v1399_v61, 0.0  ;;  %v1402_v10 = vmax.f32 %v1398_v45, 0.0  ;;  %v1400_v46 = vadd.f32 %v1395_v16, %v4972_v25  ;;  %v1401_v47 = vadd.f32 %v1395_v16, %v4974_v26 }
0x1133   :  { %v1414_v2 = vmul.f32 %v4982_v30, %v1403_v1  ;;  %v1413_v49 = vmul.f32 %v4982_v30, %v1402_v10  ;;  %v1404_v53 = vmax.f32 %v1400_v46, 0.0  ;;  %v1405_v21 = vmax.f32 %v1401_v47, 0.0 }
0x1135   :  { %v1420_v3 = vsel %vm114_vm0, %v1414_v2, 0.0  ;;  %v1417_v4 = vsel %vm114_vm0, %v1413_v49, 0.0  ;;  %v1415_v22 = vmul.f32 %v4982_v30, %v1404_v53  ;;  %v1416_v25 = vmul.f32 %v4982_v30, %v1405_v21 }
0x1136   :  { %1421 = vadd.xlane.f32.xlu1 %v1420_v3  ;;  %1418 = vadd.xlane.f32.xlu0 %v1417_v4 }
0x1137   :  { %v1423_v5 = vsel %vm114_vm0, %v1415_v22, 0.0  ;;  %v1426_v26 = vsel %vm114_vm0, %v1416_v25, 0.0 }
0x113a   :  { %1424 = vadd.xlane.f32.xlu0 %v1423_v5 }
0x113e   :  { %1427 = vadd.xlane.f32.xlu0 %v1426_v26 }
0x11bf   :  { %v1419_v6 = vpop.xlane.xlu0 %1418  ;;  %v1422_v7 = vpop.xlane.xlu1 %1421 }
0x11c0   :  { %v1440_v8 = vrot.slane %v1422_v7, %v4994_v48  ;;  %v1436_v55 = vrot.slane %v1419_v6, %v4996_v50 }
0x11c2   :  { %v1441_v59 = vsel %vm272_vm1, %v1440_v8, %v1436_v55 }
0x11c3   :  { %v1425_v54 = vpop.xlane.xlu0 %1424 }
0x11c4   :  { %v1445_v57 = vrot.slane %v1425_v54, %v4996_v50 }
0x11c7   :  { %v1428_v56 = vpop.xlane.xlu0 %1427 }
0x11c8   :  { %v1449_v58 = vrot.slane %v1428_v56, %v4994_v48 }
0x11ca   :  { %v1450_v30 = vsel %vm272_vm1, %v1449_v58, %v1445_v57  ;;  %v1358_v58 = vpop.f32.mrf.mxu1 }
0x11cb   :  { %v1451_v60 = vsel %vm283_vm2, %v1450_v30, %v1441_v59 }
0x11cc   :  { %v1453_v29 = vsel %vm286_vm3, %v1451_v60, -inf }
0x11cd   :  { %1454 = vmax.xlane.f32.xlu0 %v1453_v29 }
0x1256   :  { %v1455_v63 = vpop.xlane.xlu0 %1454 }
0x1257   :  { %v1460_v9 = vrot.slane %v1455_v63, %v4963_v18  ;;  %v1464_v11 = vrot.slane %v1455_v63, %v5006_v62 }
0x1259   :  { %v1467_v12 = vsub.f32 %v1419_v6, %v1460_v9  ;;  %v1468_v51 = vsub.f32 %v1422_v7, %v1460_v9  ;;  %v1469_v13 = vsub.f32 %v1425_v54, %v1464_v11  ;;  %v1470_v52 = vsub.f32 %v1428_v56, %v1464_v11 }
0x125b   :  { %v1471_v17 = vmul.f32 1.442695, %v1467_v12  ;;  %v1473_v20 = vmul.f32 1.442695, %v1468_v51  ;;  %v1475_v23 = vmul.f32 1.442695, %v1469_v13 }
0x125c   :  { %v1477_v24 = vmul.f32 1.442695, %v1470_v52  ;;  %v1740_v52 = vld [vmem:[#allocation7 + $0x4] sm:$0x3] }
0x125d   :  { %4575 = vpow2.f32 %v1471_v17 }
0x125e   :  { %4577 = vpow2.f32 %v1473_v20 }
0x125f   :  { %4579 = vpow2.f32 %v1475_v23 }
0x1260   :  { %4581 = vpow2.f32 %v1477_v24 }
0x126a   :  { %v4576_v27 = vpop.eup %4575 }
0x126b   :  { %v4578_v31 = vpop.eup %4577  ;;  %1484 = vperm.xlu1 %4533, %v4576_v27  }
0x126c   :  { %1487 = vperm.xlu0 %4534, %v4578_v31   ;;  %v4580_v35 = vpop.eup %4579 }
0x126d   :  { %v4582_v36 = vpop.eup %4581 }
0x126f   :  { %1490 = vperm.xlu1 %4533, %v4580_v35  }
0x1273   :  { %1493 = vperm.xlu1 %4533, %v4582_v36  }
0x12e6   :  { %v1485_v37 = vpop.permute.xlu1 %1484 }
0x12e7   :  { %v1488_v38 = vpop.permute.xlu0 %1487  ;;  %v1498_v41 = vrot.slane %v1485_v37, %v4996_v50 }
0x12e8   :  { %v1502_v40 = vrot.slane %v1488_v38, %v4994_v48 }
0x12ea   :  { %v1491_v39 = vpop.permute.xlu1 %1490  ;;  %v1503_v45 = vsel %vm272_vm1, %v1502_v40, %v1498_v41 }
0x12eb   :  { %v1507_v44 = vrot.slane %v1491_v39, %v4996_v50 }
0x12ee   :  { %v1494_v42 = vpop.permute.xlu1 %1493 }
0x12ef   :  { %v1511_v61 = vrot.slane %v1494_v42, %v4994_v48 }
0x12f1   :  { %v1512_v16 = vsel %vm272_vm1, %v1511_v61, %v1507_v44 }
0x12f2   :  { %v1513_v1 = vsel %vm283_vm2, %v1512_v16, %v1503_v45  ;;  %v5299_v16 = vld [vmem:[#allocation8 + $0x38] sm:$0xff] }
0x12f3   :  { %v1515_v10 = vsel %vm286_vm3, %v1513_v1, 0.0  ;;  %v5301_v1 = vld [vmem:[#allocation8 + $0x30] sm:$0xff]  ;;  %1895 = vmatprep.subr.mxu1 %v5299_v16 }
0x12f4   :  { %1516 = vadd.xlane.f32.xlu1 %v1515_v10  ;;  %v5303_v10 = vld [vmem:[#allocation8 + $0x28] sm:$0xff] }
0x137d   :  { %v1517_v46 = vpop.xlane.xlu1 %1516 }
0x137e   :  { %v1526_v47 = vrot.slane %v1517_v46, %v5006_v62  ;;  %v1522_v2 = vrot.slane %v1517_v46, %v4963_v18  ;;  %v5306_v46 = vld [vmem:[#allocation8 + $0x20] sm:$0xff] }
0x1380   :  { %4583 = vrcp.f32 %v1526_v47  ;;  %v5309_v47 = vld [vmem:[#allocation8 + $0x18] sm:$0xff] }
0x1381   :  { %4585 = vrcp.f32 %v1522_v2  ;;  %v5315_v2 = vld [vmem:[#allocation8 + $0x8] sm:$0xff] }
0x138d   :  { %v4584_v49 = vpop.eup %4583 }
0x138e   :  { %v1533_v53 = vmul.f32 %v4584_v49, %v4580_v35  ;;  %v1534_v3 = vmul.f32 %v4584_v49, %v4582_v36  ;;  %v4586_v4 = vpop.eup %4585  ;;  %v5318_v49 = vld [vmem:[#allocation8] sm:$0xff] }
0x138f   :  { %v1530_v22 = vmul.f32 %v4586_v4, %v4576_v27  ;;  %v1531_v21 = vmul.f32 %v4586_v4, %v4578_v31 }
0x1390   :  { %1631 = vperm.xlu0 %4534, %v1533_v53  }
0x1394   :  { %1634 = vperm.xlu0 %4534, %v1534_v3  }
0x1398   :  { %1542 = vperm.xlu0 %4534, %v1530_v22  }
0x139c   :  { %1545 = vperm.xlu0 %4534, %v1531_v21  }
0x13a0   :  { %1723 = vrot.lane.b32.xlu0 %v5021_v43, %s4833_s13 }
0x140b   :  { %v1632_v5 = vpop.permute.xlu0 %1631 }
0x140c   :  { %v1639_v26 = vrot.slane %v1632_v5, %v4996_v50 }
0x140f   :  { %v1635_v25 = vpop.permute.xlu0 %1634 }
0x1410   :  { %v1643_v6 = vrot.slane %v1635_v25, %v4994_v48 }
0x1412   :  { %v1644_v7 = vsel %vm272_vm1, %v1643_v6, %v1639_v26  ;;  %v5335_v6 = vld [vmem:[#allocation5 + $0x8] sm:$0xff] }
0x1413   :  { %4401 = vmatmul.mubr.msk.f32.vlgmr.msra.gmra.mxu1 %vm390_vm5, %v1644_v7  ;;  %v1543_v54 = vpop.permute.xlu0 %1542 }
0x1414   :  { %1935 = vmatprep.mubr.f32.mxu1 %v4836_v0  ;;  %v1550_v55 = vrot.slane %v1543_v54, %v4996_v50  ;;  %1896 = vmatpush1.msra.mxu1 %v5301_v1 }
0x1415   :  { %1897 = vmatprep.subr.mxu1 %v5303_v10 }
0x1416   :  { %1898 = vmatpush1.msra.mxu1 %v5306_v46 }
0x1417   :  { %v1546_v8 = vpop.permute.xlu0 %1545  ;;  %1899 = vmatprep.subr.mxu1 %v5309_v47 }
0x1418   :  { %v1554_v56 = vrot.slane %v1546_v8, %v4994_v48 }
0x141a   :  { %v1555_v43 = vsel %vm272_vm1, %v1554_v56, %v1550_v55  ;;  %v5341_v55 = vld [vmem:[#allocation5 + $0x10] sm:$0xff]  ;;  %v5343_v56 = vld [vmem:[#allocation5 + $0x18] sm:$0xff] }
0x141b   :  { %4394 = vmatmul.mubr.msk.f32.vlgmr.msra.gmra.mxu0 %vm390_vm5, %v1555_v43  ;;  %v1857_v57 = vsel %vm283_vm2, %v1644_v7, %v1555_v43  ;;  %v1724_v63 = vpop.permute.xlu0 %1723  ;;  %v5337_v7 = vld [vmem:[#allocation5] sm:$0xff] }
0x141c   :  { %1860 = vst.msk [vmem:[#allocation12 + $0x4] sm:$0x3] %vm286_vm3, %v1857_v57  ;;  %4404 = vmatpush3.msra.mxu0 %v5068_v14  ;;  %4411 = vmatprep.mubr.msk.f32.mxu0 %vm4839_vm4, %v4836_v0  ;;  %v1726_v9 = vadd.f32 %v1724_v63, %v5219_v19 }
0x141d   :  { %4405 = vmatprep.subr.mxu0 %v4836_v0 }
0x141e   :  { %4406 = vmatpush3.msra.mxu0 %v5070_v28 }
0x141f   :  { %4407 = vmatprep.subr.mxu0 %v4836_v0 }
0x1420   :  { %4408 = vmatpush3.msra.mxu0 %v5075_v32  ;;  %v1727_v32 = vmul.f32 0.5, %v1726_v9 }
0x1421   :  { %4409 = vmatprep.subr.mxu0 %v4836_v0 }
0x1422   :  { %4410 = vmatpush3.msra.mxu0 %v5080_v33  ;;  %4587 = vtanh.f32 %v1727_v32 }
0x1423   :  { %4414 = vmatprep.subr.mxu0 %v4836_v0 }
0x142f   :  { %v4588_v11 = vpop.eup %4587 }
0x1430   :  { %v1729_v12 = vmul.f32 0.5, %v4588_v11 }
0x1432   :  { %v1730_v33 = vadd.f32 0.5, %v1729_v12 }
0x14d3   :  { %v1713_v59 = vpop.f32.mrf.mxu1 }
0x14d4   :  { %v1733_v30 = vrot.slane %v1713_v59, 7  ;;  %v5351_v59 = vld [vmem:[%s5753_s7] ss:$0 sm:$0xff] }
0x14d5   :  { %v4402_v14 = vpop.f32.mrf.mxu1 }
0x14db   :  { %v1624_v60 = vpop.f32.mrf.mxu0 }
0x14dc   :  { %v1734_v29 = vsel %vm283_vm2, %v1733_v30, %v1624_v60 }
0x14dd   :  { %1735 = vrot.lane.b32.xlu0 %v1734_v29, %s4833_s13  ;;  %v4395_v28 = vpop.f32.mrf.mxu0 }
0x154f   :  { %v1736_v51 = vpop.permute.xlu0 %1735 }
0x1550   :  { %v1738_v13 = vmul.f32 %v1736_v51, %v1730_v33 }
0x1552   :  { %1746 = vrot.lane.b32.xlu0 %v1738_v13, %s4840_s24 }
0x1556   :  { %1822 = vrot.lane.b32.xlu0 %v5219_v19, %s4841_s25 }
0x155a   :  { %1824 = vrot.lane.b32.xlu0 %v1358_v58, %s4841_s25 }
0x15c4   :  { %v1747_v17 = vpop.permute.xlu0 %1746 }
0x15c5   :  { %4412 = vmatmul.mubr.msk.f32.vlgmr.msra.gmra.mxu0 %vm114_vm0, %v1747_v17 }
0x15c6   :  { %4418 = vmatprep.mubr.msk.f32.mxu0 %vm4839_vm4, %v4836_v0 }
0x15c8   :  { %v1823_v20 = vpop.permute.xlu0 %1822 }
0x15cc   :  { %v1825_v23 = vpop.permute.xlu0 %1824 }
0x15cd   :  { %v1826_v31 = vsel %vm660_vm6, %v1823_v20, %v1825_v23 }
0x1685   :  { %v1816_v24 = vpop.f32.mrf.mxu0 }
0x1686   :  { %v1820_v27 = vadd.f32 %v1816_v24, %v1740_v52 }
0x1687   :  { %v4413_v35 = vpop.f32.mrf.mxu0 }
0x1688   :  { %v1828_v36 = vadd.f32 %v1826_v31, %v1820_v27 }
0x168a   :  { %4589 = vtanh.f32 %v1828_v36  ;;  %v1829_v19 = vmul.f32 0.5, %v1828_v36 }
0x168c   :  { %4591 = vtanh.f32 %v1829_v19 }
0x1697   :  { %v4590_v37 = vpop.eup %4589 }
0x1698   :  { %1836 = vrot.lane.b32.xlu1 %v4590_v37, %s4841_s25 }
0x1699   :  { %v4592_v38 = vpop.eup %4591 }
0x169a   :  { %v1831_v39 = vmul.f32 0.5, %v4592_v38 }
0x169c   :  { %v1832_v40 = vadd.f32 0.5, %v1831_v39 }
0x169e   :  { %v1834_v44 = vmul.f32 %v1832_v40, %v5207_v34  ;;  %v5312_v34 = vld [vmem:[#allocation8 + $0x10] sm:$0xff] }
0x169f   :  { %1900 = vmatpush1.msra.mxu1 %v5312_v34 }
0x16a0   :  { %1901 = vmatprep.subr.mxu1 %v5315_v2 }
0x16a1   :  { %1902 = vmatpush1.msra.mxu1 %v5318_v49 }
0x16a2   :  { %4421 = vmatprep.subr.mxu1 %v4836_v0 }
0x170a   :  { %v1837_v41 = vpop.permute.xlu1 %1836 }
0x170b   :  { %v1839_v42 = vmul.f32 %v1837_v41, %v1832_v40 }
0x170d   :  { %1841 = vrot.lane.b32.xlu0 %v1839_v42, %s4833_s13 }
0x177f   :  { %v1842_v61 = vpop.permute.xlu0 %1841 }
0x1780   :  { %v5296_v45 = vadd.f32 %v1842_v61, %v1834_v44 }
0x1782   :  { %4593 = vtanh.f32 %v5296_v45 }
0x178f   :  { %v4594_v53 = vpop.eup %4593 }
0x1790   :  { %1847 = vrot.lane.b32.xlu0 %v4594_v53, %s4841_s25 }
0x1802   :  { %v1848_v3 = vpop.permute.xlu0 %1847 }
0x1803   :  { %v1850_v4 = vmul.f32 %v1848_v3, %v1832_v40 }
0x1805   :  { %1852 = vrot.lane.b32.xlu0 %v1850_v4, %s4833_s13 }
0x1877   :  { %v1853_v22 = vpop.permute.xlu0 %1852 }
0x1878   :  { %1856 = vst.msk [vmem:[#allocation11 + $0x4] sm:$0x3] %vm694_vm7, %v1853_v22  ;;  %4238 = vmatmul.mubr.msk.f32.vlgmr.msra.gmra.mxu1 %vm114_vm0, %v1853_v22 }
0x1879   :  { %4425 = vmatprep.mubr.msk.f32.mxu1 %vm4839_vm4, %v4836_v0 }
0x1938   :  { %v5330_v21 = vpop.f32.mrf.mxu1 }
0x1939   :  { %v1953_v5 = vrot.slane %v5330_v21, %v4957_v15 }
0x193b   :  { %v1954_v25 = vcombine.high %v1953_v5, %v1953_v5  ;;  %v1961_v26 = vrot.slane %v1953_v5, %v4957_v15 }
0x193d   :  { %v1968_v54 = vrot.slane %v1954_v25, %v4957_v15  ;;  %v1972_v8 = vrot.slane %v1961_v26, %v4963_v18 }
0x193f   :  { %v1980_v43 = vadd.f32 %v1972_v8, %v5335_v6  ;;  %v1979_v57 = vadd.f32 %v1972_v8, %v5337_v7  ;;  %v1976_v58 = vrot.slane %v1968_v54, %v4963_v18 }
0x1941   :  { %v1984_v14 = vmax.f32 %v1980_v43, 0.0  ;;  %v1983_v30 = vmax.f32 %v1979_v57, 0.0  ;;  %v1981_v60 = vadd.f32 %v1976_v58, %v5341_v55  ;;  %v1982_v29 = vadd.f32 %v1976_v58, %v5343_v56 }
0x1943   :  { %v1995_v28 = vmul.f32 %v5351_v59, %v1984_v14  ;;  %v1994_v63 = vmul.f32 %v5351_v59, %v1983_v30  ;;  %v1985_v9 = vmax.f32 %v1981_v60, 0.0  ;;  %v1986_v33 = vmax.f32 %v1982_v29, 0.0 }
0x1945   :  { %v2001_v32 = vsel %vm114_vm0, %v1995_v28, 0.0  ;;  %v1998_v11 = vsel %vm114_vm0, %v1994_v63, 0.0  ;;  %v1996_v12 = vmul.f32 %v5351_v59, %v1985_v9  ;;  %v1997_v13 = vmul.f32 %v5351_v59, %v1986_v33  ;;  %v1939_v33 = vpop.f32.mrf.mxu1 }
0x1946   :  { %2002 = vadd.xlane.f32.xlu1 %v2001_v32  ;;  %1999 = vadd.xlane.f32.xlu0 %v1998_v11 }
0x1947   :  { %v2004_v51 = vsel %vm114_vm0, %v1996_v12, 0.0  ;;  %v2007_v17 = vsel %vm114_vm0, %v1997_v13, 0.0 }
0x194a   :  { %2005 = vadd.xlane.f32.xlu0 %v2004_v51 }
0x194e   :  { %2008 = vadd.xlane.f32.xlu0 %v2007_v17 }
0x19cf   :  { %v2000_v20 = vpop.xlane.xlu0 %1999  ;;  %v2003_v52 = vpop.xlane.xlu1 %2002 }
0x19d0   :  { %v2021_v24 = vrot.slane %v2003_v52, %v4994_v48  ;;  %v2017_v27 = vrot.slane %v2000_v20, %v4996_v50 }
0x19d2   :  { %v2022_v37 = vsel %vm272_vm1, %v2021_v24, %v2017_v27  ;;  %v5387_v27 = vld [vmem:[#allocation2 + $0x10] sm:$0xff] }
0x19d3   :  { %v2006_v23 = vpop.xlane.xlu0 %2005 }
0x19d4   :  { %v2026_v35 = vrot.slane %v2006_v23, %v4996_v50 }
0x19d7   :  { %v2009_v31 = vpop.xlane.xlu0 %2008 }
0x19d8   :  { %v2030_v36 = vrot.slane %v2009_v31, %v4994_v48 }
0x19da   :  { %v2031_v19 = vsel %vm272_vm1, %v2030_v36, %v2026_v35  ;;  %v5391_v35 = vld [vmem:[#allocation2 + $0x8] sm:$0xff] }
0x19db   :  { %v2032_v38 = vsel %vm283_vm2, %v2031_v19, %v2022_v37  ;;  %4415 = vmatpush3.msra.mxu0 %v5391_v35  ;;  %v5396_v19 = vld [vmem:[#allocation2] sm:$0xff] }
0x19dc   :  { %v2034_v39 = vsel %vm286_vm3, %v2032_v38, -inf  ;;  %4416 = vmatprep.subr.mxu0 %v4836_v0  ;;  %v5402_v38 = vld [vmem:[%s5754_s8] ss:$0 sm:$0xff] }
0x19dd   :  { %2035 = vmax.xlane.f32.xlu0 %v2034_v39  ;;  %4417 = vmatpush3.msra.mxu0 %v5396_v19 }
0x19de   :  { %4428 = vmatprep.subr.mxu0 %v4836_v0 }
0x1a66   :  { %v2036_v40 = vpop.xlane.xlu0 %2035 }
0x1a67   :  { %v2041_v41 = vrot.slane %v2036_v40, %v4963_v18  ;;  %v2045_v42 = vrot.slane %v2036_v40, %v5006_v62 }
0x1a69   :  { %v2048_v44 = vsub.f32 %v2000_v20, %v2041_v41  ;;  %v2049_v61 = vsub.f32 %v2003_v52, %v2041_v41  ;;  %v2050_v53 = vsub.f32 %v2006_v23, %v2045_v42  ;;  %v2051_v22 = vsub.f32 %v2009_v31, %v2045_v42  ;;  %v5384_v23 = vld [vmem:[#allocation2 + $0x18] sm:$0xff] }
0x1a6a   :  { %4422 = vmatpush3.msra.mxu1 %v5384_v23 }
0x1a6b   :  { %v2052_v3 = vmul.f32 1.442695, %v2048_v44  ;;  %v2054_v4 = vmul.f32 1.442695, %v2049_v61  ;;  %v2056_v5 = vmul.f32 1.442695, %v2050_v53  ;;  %4423 = vmatprep.subr.mxu1 %v4836_v0 }
0x1a6c   :  { %v2058_v25 = vmul.f32 1.442695, %v2051_v22  ;;  %4424 = vmatpush3.msra.mxu1 %v5387_v27 }
0x1a6d   :  { %4595 = vpow2.f32 %v2052_v3  ;;  %2476 = vmatprep.subr.mxu1 %v5299_v16 }
0x1a6e   :  { %4597 = vpow2.f32 %v2054_v4 }
0x1a6f   :  { %4599 = vpow2.f32 %v2056_v5 }
0x1a70   :  { %4601 = vpow2.f32 %v2058_v25 }
0x1a7a   :  { %v4596_v26 = vpop.eup %4595 }
0x1a7b   :  { %v4598_v54 = vpop.eup %4597  ;;  %2065 = vperm.xlu1 %4533, %v4596_v26  }
0x1a7c   :  { %2068 = vperm.xlu0 %4534, %v4598_v54   ;;  %v4600_v8 = vpop.eup %4599 }
0x1a7d   :  { %v4602_v43 = vpop.eup %4601 }
0x1a7f   :  { %2071 = vperm.xlu1 %4533, %v4600_v8  }
0x1a83   :  { %2074 = vperm.xlu1 %4533, %v4602_v43  }
0x1af6   :  { %v2066_v57 = vpop.permute.xlu1 %2065 }
0x1af7   :  { %v2069_v58 = vpop.permute.xlu0 %2068  ;;  %v2079_v60 = vrot.slane %v2066_v57, %v4996_v50 }
0x1af8   :  { %v2083_v30 = vrot.slane %v2069_v58, %v4994_v48  ;;  %v5438_v58 = vld [vmem:[#allocation10] sm:$0xff] }
0x1afa   :  { %v2072_v14 = vpop.permute.xlu1 %2071  ;;  %v2084_v9 = vsel %vm272_vm1, %v2083_v30, %v2079_v60 }
0x1afb   :  { %v2088_v28 = vrot.slane %v2072_v14, %v4996_v50 }
0x1afe   :  { %v2075_v29 = vpop.permute.xlu1 %2074 }
0x1aff   :  { %v2092_v63 = vrot.slane %v2075_v29, %v4994_v48 }
0x1b01   :  { %v2093_v32 = vsel %vm272_vm1, %v2092_v63, %v2088_v28 }
0x1b02   :  { %v2094_v11 = vsel %vm283_vm2, %v2093_v32, %v2084_v9 }
0x1b03   :  { %v2096_v12 = vsel %vm286_vm3, %v2094_v11, 0.0 }
0x1b04   :  { %2097 = vadd.xlane.f32.xlu0 %v2096_v12 }
0x1b1a   :  { %2405 = vrot.lane.b32.xlu0 %v1939_v33, %s4841_s25 }
0x1b8d   :  { %v2098_v51 = vpop.xlane.xlu0 %2097 }
0x1b8e   :  { %v2107_v13 = vrot.slane %v2098_v51, %v5006_v62  ;;  %v2103_v17 = vrot.slane %v2098_v51, %v4963_v18 }
0x1b90   :  { %4603 = vrcp.f32 %v2107_v13  ;;  %v2321_v13 = vld [vmem:[#allocation7 + $0x6] sm:$0x3] }
0x1b91   :  { %4605 = vrcp.f32 %v2103_v17 }
0x1b9d   :  { %v4604_v20 = vpop.eup %4603 }
0x1b9e   :  { %v2114_v52 = vmul.f32 %v4604_v20, %v4600_v8  ;;  %v2115_v24 = vmul.f32 %v4604_v20, %v4602_v43  ;;  %v4606_v31 = vpop.eup %4605  ;;  %v5430_v8 = vld [vmem:[#allocation10 + $0x10] sm:$0xff]  ;;  %v5434_v43 = vld [vmem:[#allocation10 + $0x8] sm:$0xff] }
0x1b9f   :  { %v2111_v36 = vmul.f32 %v4606_v31, %v4596_v26  ;;  %v2112_v37 = vmul.f32 %v4606_v31, %v4598_v54  ;;  %v5428_v54 = vld [vmem:[#allocation10 + $0x18] sm:$0xff] }
0x1ba0   :  { %2212 = vperm.xlu1 %4533, %v2114_v52   ;;  %v2406_v52 = vpop.permute.xlu0 %2405 }
0x1ba4   :  { %2215 = vperm.xlu1 %4533, %v2115_v24  }
0x1ba8   :  { %2123 = vperm.xlu1 %4533, %v2111_v36  }
0x1bac   :  { %2126 = vperm.xlu1 %4533, %v2112_v37  }
0x1bb0   :  { %2304 = vrot.lane.b32.xlu1 %v5402_v38, %s4833_s13 }
0x1c1b   :  { %v2213_v39 = vpop.permute.xlu1 %2212 }
0x1c1c   :  { %v2220_v41 = vrot.slane %v2213_v39, %v4996_v50 }
0x1c1f   :  { %v2216_v40 = vpop.permute.xlu1 %2215 }
0x1c20   :  { %v2224_v42 = vrot.slane %v2216_v40, %v4994_v48 }
0x1c22   :  { %v2225_v44 = vsel %vm272_vm1, %v2224_v42, %v2220_v41 }
0x1c23   :  { %4426 = vmatmul.mubr.msk.f32.vlgmr.msra.gmra.mxu1 %vm390_vm5, %v2225_v44  ;;  %v2124_v61 = vpop.permute.xlu1 %2123 }
0x1c24   :  { %2477 = vmatpush1.msra.mxu1 %v5301_v1  ;;  %2516 = vmatprep.mubr.f32.mxu1 %v4836_v0  ;;  %v2131_v3 = vrot.slane %v2124_v61, %v4996_v50 }
0x1c25   :  { %2478 = vmatprep.subr.mxu1 %v5303_v10 }
0x1c26   :  { %2479 = vmatpush1.msra.mxu1 %v5306_v46 }
0x1c27   :  { %v2127_v53 = vpop.permute.xlu1 %2126  ;;  %2480 = vmatprep.subr.mxu1 %v5309_v47 }
0x1c28   :  { %v2135_v4 = vrot.slane %v2127_v53, %v4994_v48  ;;  %2481 = vmatpush1.msra.mxu1 %v5312_v34 }
0x1c29   :  { %2482 = vmatprep.subr.mxu1 %v5315_v2 }
0x1c2a   :  { %v2136_v22 = vsel %vm272_vm1, %v2135_v4, %v2131_v3  ;;  %2483 = vmatpush1.msra.mxu1 %v5318_v49 }
0x1c2b   :  { %v2438_v5 = vsel %vm283_vm2, %v2225_v44, %v2136_v22  ;;  %4419 = vmatmul.mubr.msk.f32.vlgmr.msra.gmra.mxu0 %vm390_vm5, %v2136_v22  ;;  %4446 = vmatprep.subr.mxu1 %v4836_v0  ;;  %v2305_v29 = vpop.permute.xlu1 %2304 }
0x1c2c   :  { %2441 = vst.msk [vmem:[#allocation12 + $0x6] sm:$0x3] %vm286_vm3, %v2438_v5  ;;  %4436 = vmatprep.mubr.msk.f32.mxu0 %vm4839_vm4, %v4836_v0  ;;  %4429 = vmatpush3.msra.mxu0 %v5428_v54  ;;  %v2307_v28 = vadd.f32 %v2305_v29, %v5330_v21 }
0x1c2d   :  { %4430 = vmatprep.subr.mxu0 %v4836_v0 }
0x1c2e   :  { %4431 = vmatpush3.msra.mxu0 %v5430_v8  ;;  %v2308_v63 = vmul.f32 0.5, %v2307_v28 }
0x1c2f   :  { %4432 = vmatprep.subr.mxu0 %v4836_v0 }
0x1c30   :  { %4433 = vmatpush3.msra.mxu0 %v5434_v43  ;;  %4607 = vtanh.f32 %v2308_v63 }
0x1c31   :  { %4434 = vmatprep.subr.mxu0 %v4836_v0 }
0x1c32   :  { %4435 = vmatpush3.msra.mxu0 %v5438_v58 }
0x1c33   :  { %4439 = vmatprep.subr.mxu0 %v4836_v0 }
0x1c3d   :  { %v4608_v9 = vpop.eup %4607 }
0x1c3e   :  { %v2310_v32 = vmul.f32 0.5, %v4608_v9 }
0x1c40   :  { %v2311_v11 = vadd.f32 0.5, %v2310_v32 }
0x1ce3   :  { %v2294_v25 = vpop.f32.mrf.mxu1 }
0x1ce4   :  { %v2314_v57 = vrot.slane %v2294_v25, 7 }
0x1ce5   :  { %v4427_v26 = vpop.f32.mrf.mxu1 }
0x1ceb   :  { %v2205_v14 = vpop.f32.mrf.mxu0 }
0x1cec   :  { %v2315_v30 = vsel %vm283_vm2, %v2314_v57, %v2205_v14 }
0x1ced   :  { %2316 = vrot.lane.b32.xlu1 %v2315_v30, %s4833_s13  ;;  %v4420_v60 = vpop.f32.mrf.mxu0 }
0x1d5f   :  { %v2317_v12 = vpop.permute.xlu1 %2316 }
0x1d60   :  { %v2319_v33 = vmul.f32 %v2317_v12, %v2311_v11 }
0x1d62   :  { %2327 = vrot.lane.b32.xlu1 %v2319_v33, %s4840_s24 }
0x1d66   :  { %2403 = vrot.lane.b32.xlu1 %v5330_v21, %s4841_s25 }
0x1dd4   :  { %v2328_v51 = vpop.permute.xlu1 %2327 }
0x1dd5   :  { %4437 = vmatmul.mubr.msk.f32.vlgmr.msra.gmra.mxu0 %vm114_vm0, %v2328_v51 }
0x1dd6   :  { %4440 = vmatpush3.msra.mxu0 %v5391_v35  ;;  %4443 = vmatprep.mubr.msk.f32.mxu0 %vm4839_vm4, %v4836_v0 }
0x1dd7   :  { %4441 = vmatprep.subr.mxu0 %v4836_v0 }
0x1dd8   :  { %4442 = vmatpush3.msra.mxu0 %v5396_v19  ;;  %v2404_v17 = vpop.permute.xlu1 %2403 }
0x1dd9   :  { %4453 = vmatprep.subr.mxu0 %v4836_v0  ;;  %v2407_v21 = vsel %vm660_vm6, %v2404_v17, %v2406_v52 }
0x1e95   :  { %v2397_v20 = vpop.f32.mrf.mxu0 }
0x1e96   :  { %v2401_v24 = vadd.f32 %v2397_v20, %v2321_v13 }
0x1e97   :  { %v4438_v31 = vpop.f32.mrf.mxu0 }
0x1e98   :  { %v2409_v36 = vadd.f32 %v2407_v21, %v2401_v24 }
0x1e9a   :  { %4609 = vtanh.f32 %v2409_v36  ;;  %v2410_v39 = vmul.f32 0.5, %v2409_v36 }
0x1e9c   :  { %4611 = vtanh.f32 %v2410_v39 }
0x1ea7   :  { %v4610_v37 = vpop.eup %4609 }
0x1ea8   :  { %2417 = vrot.lane.b32.xlu1 %v4610_v37, %s4841_s25 }
0x1ea9   :  { %v4612_v40 = vpop.eup %4611 }
0x1eaa   :  { %v2412_v41 = vmul.f32 0.5, %v4612_v40 }
0x1eac   :  { %v2413_v42 = vadd.f32 0.5, %v2412_v41 }
0x1eae   :  { %v2415_v53 = vmul.f32 %v2413_v42, %v5296_v45 }
0x1f1a   :  { %v2418_v44 = vpop.permute.xlu1 %2417 }
0x1f1b   :  { %v2420_v61 = vmul.f32 %v2418_v44, %v2413_v42 }
0x1f1d   :  { %2422 = vrot.lane.b32.xlu1 %v2420_v61, %s4833_s13 }
0x1f8f   :  { %v2423_v3 = vpop.permute.xlu1 %2422 }
0x1f90   :  { %v5461_v4 = vadd.f32 %v2423_v3, %v2415_v53 }
0x1f92   :  { %4613 = vtanh.f32 %v5461_v4 }
0x1f9f   :  { %v4614_v22 = vpop.eup %4613 }
0x1fa0   :  { %2428 = vrot.lane.b32.xlu1 %v4614_v22, %s4841_s25 }
0x2012   :  { %v2429_v5 = vpop.permute.xlu1 %2428 }
0x2013   :  { %v2431_v25 = vmul.f32 %v2429_v5, %v2413_v42 }
0x2015   :  { %2433 = vrot.lane.b32.xlu1 %v2431_v25, %s4833_s13 }
0x2087   :  { %v2434_v26 = vpop.permute.xlu1 %2433 }
0x2088   :  { %2437 = vst.msk [vmem:[#allocation11 + $0x6] sm:$0x3] %vm694_vm7, %v2434_v26  ;;  %4244 = vmatmul.mubr.msk.f32.vlgmr.msra.gmra.mxu1 %vm114_vm0, %v2434_v26 }
0x2089   :  { %4447 = vmatpush3.msra.mxu1 %v5384_v23  ;;  %4450 = vmatprep.mubr.msk.f32.mxu1 %vm4839_vm4, %v4836_v0 }
0x208a   :  { %4448 = vmatprep.subr.mxu1 %v4836_v0 }
0x208b   :  { %4449 = vmatpush3.msra.mxu1 %v5387_v27 }
0x208c   :  { %3057 = vmatprep.subr.mxu1 %v5299_v16 }
0x2148   :  { %v5474_v45 = vpop.f32.mrf.mxu1 }
0x2149   :  { %v2534_v57 = vrot.slane %v5474_v45, %v4957_v15 }
0x214b   :  { %v2535_v14 = vcombine.high %v2534_v57, %v2534_v57  ;;  %v2542_v30 = vrot.slane %v2534_v57, %v4957_v15 }
0x214d   :  { %v2549_v60 = vrot.slane %v2535_v14, %v4957_v15  ;;  %v2553_v29 = vrot.slane %v2542_v30, %v4963_v18 }
0x214f   :  { %v2561_v28 = vadd.f32 %v2553_v29, %v5335_v6  ;;  %v2560_v63 = vadd.f32 %v2553_v29, %v5337_v7  ;;  %v2557_v9 = vrot.slane %v2549_v60, %v4963_v18 }
0x2151   :  { %v2565_v32 = vmax.f32 %v2561_v28, 0.0  ;;  %v2564_v16 = vmax.f32 %v2560_v63, 0.0  ;;  %v2563_v11 = vadd.f32 %v2557_v9, %v5343_v56  ;;  %v2562_v12 = vadd.f32 %v2557_v9, %v5341_v55 }
0x2153   :  { %v2576_v33 = vmul.f32 %v5351_v59, %v2565_v32  ;;  %v2575_v51 = vmul.f32 %v5351_v59, %v2564_v16  ;;  %v2567_v13 = vmax.f32 %v2563_v11, 0.0  ;;  %v2566_v17 = vmax.f32 %v2562_v12, 0.0 }
0x2155   :  { %v2582_v20 = vsel %vm114_vm0, %v2576_v33, 0.0  ;;  %v2579_v52 = vsel %vm114_vm0, %v2575_v51, 0.0  ;;  %v2578_v24 = vmul.f32 %v5351_v59, %v2567_v13  ;;  %v2577_v21 = vmul.f32 %v5351_v59, %v2566_v17 }
0x2156   :  { %2583 = vadd.xlane.f32.xlu0 %v2582_v20  ;;  %2580 = vadd.xlane.f32.xlu1 %v2579_v52 }
0x2157   :  { %v2588_v31 = vsel %vm114_vm0, %v2578_v24, 0.0  ;;  %v2585_v36 = vsel %vm114_vm0, %v2577_v21, 0.0 }
0x215a   :  { %2589 = vadd.xlane.f32.xlu1 %v2588_v31  ;;  %2586 = vadd.xlane.f32.xlu0 %v2585_v36 }
0x21df   :  { %v2584_v37 = vpop.xlane.xlu0 %2583  ;;  %v2581_v39 = vpop.xlane.xlu1 %2580 }
0x21e0   :  { %v2602_v40 = vrot.slane %v2584_v37, %v4994_v48  ;;  %v2598_v41 = vrot.slane %v2581_v39, %v4996_v50 }
0x21e2   :  { %v2603_v3 = vsel %vm272_vm1, %v2602_v40, %v2598_v41 }
0x21e3   :  { %v2590_v42 = vpop.xlane.xlu1 %2589  ;;  %v2587_v44 = vpop.xlane.xlu0 %2586 }
0x21e4   :  { %v2611_v61 = vrot.slane %v2590_v42, %v4994_v48  ;;  %v2607_v53 = vrot.slane %v2587_v44, %v4996_v50 }
0x21e6   :  { %v2612_v22 = vsel %vm272_vm1, %v2611_v61, %v2607_v53 }
0x21e7   :  { %v2613_v5 = vsel %vm283_vm2, %v2612_v22, %v2603_v3 }
0x21e8   :  { %v2615_v25 = vsel %vm286_vm3, %v2613_v5, -inf }
0x21e9   :  { %2616 = vmax.xlane.f32.xlu0 %v2615_v25 }
0x2272   :  { %v2617_v26 = vpop.xlane.xlu0 %2616 }
0x2273   :  { %v2622_v57 = vrot.slane %v2617_v26, %v4963_v18  ;;  %v2626_v14 = vrot.slane %v2617_v26, %v5006_v62 }
0x2275   :  { %v2629_v30 = vsub.f32 %v2581_v39, %v2622_v57  ;;  %v2630_v60 = vsub.f32 %v2584_v37, %v2622_v57  ;;  %v2631_v29 = vsub.f32 %v2587_v44, %v2626_v14  ;;  %v2632_v9 = vsub.f32 %v2590_v42, %v2626_v14 }
0x2277   :  { %v2633_v28 = vmul.f32 1.442695, %v2629_v30  ;;  %v2635_v63 = vmul.f32 1.442695, %v2630_v60  ;;  %v2637_v32 = vmul.f32 1.442695, %v2631_v29 }
0x2278   :  { %v2639_v16 = vmul.f32 1.442695, %v2632_v9 }
0x2279   :  { %4615 = vpow2.f32 %v2633_v28 }
0x227a   :  { %4617 = vpow2.f32 %v2635_v63 }
0x227b   :  { %4619 = vpow2.f32 %v2637_v32 }
0x227c   :  { %4621 = vpow2.f32 %v2639_v16 }
0x2286   :  { %v4616_v11 = vpop.eup %4615 }
0x2287   :  { %v4618_v12 = vpop.eup %4617  ;;  %2646 = vperm.xlu1 %4533, %v4616_v11  }
0x2288   :  { %2649 = vperm.xlu0 %4534, %v4618_v12   ;;  %v4620_v33 = vpop.eup %4619 }
0x2289   :  { %v4622_v51 = vpop.eup %4621 }
0x228b   :  { %2652 = vperm.xlu1 %4533, %v4620_v33  }
0x228f   :  { %2655 = vperm.xlu1 %4533, %v4622_v51  }
0x2302   :  { %v2647_v13 = vpop.permute.xlu1 %2646 }
0x2303   :  { %v2650_v17 = vpop.permute.xlu0 %2649  ;;  %v2660_v24 = vrot.slane %v2647_v13, %v4996_v50 }
0x2304   :  { %v2664_v52 = vrot.slane %v2650_v17, %v4994_v48 }
0x2306   :  { %v2653_v20 = vpop.permute.xlu1 %2652  ;;  %v2665_v37 = vsel %vm272_vm1, %v2664_v52, %v2660_v24 }
0x2307   :  { %v2669_v31 = vrot.slane %v2653_v20, %v4996_v50 }
0x230a   :  { %v2656_v21 = vpop.permute.xlu1 %2655 }
0x230b   :  { %v2673_v36 = vrot.slane %v2656_v21, %v4994_v48 }
0x230d   :  { %v2674_v39 = vsel %vm272_vm1, %v2673_v36, %v2669_v31  ;;  %v2902_v36 = vld [vmem:[#allocation7 + $0x8] sm:$0x3] }
0x230e   :  { %v2675_v40 = vsel %vm283_vm2, %v2674_v39, %v2665_v37 }
0x230f   :  { %v2677_v41 = vsel %vm286_vm3, %v2675_v40, 0.0 }
0x2310   :  { %2678 = vadd.xlane.f32.xlu1 %v2677_v41 }
0x2399   :  { %v2679_v42 = vpop.xlane.xlu1 %2678 }
0x239a   :  { %v2688_v44 = vrot.slane %v2679_v42, %v5006_v62  ;;  %v2684_v61 = vrot.slane %v2679_v42, %v4963_v18 }
0x239c   :  { %4623 = vrcp.f32 %v2688_v44 }
0x239d   :  { %4625 = vrcp.f32 %v2684_v61 }
0x23a9   :  { %v4624_v53 = vpop.eup %4623 }
0x23aa   :  { %v2695_v3 = vmul.f32 %v4624_v53, %v4620_v33  ;;  %v2696_v22 = vmul.f32 %v4624_v53, %v4622_v51  ;;  %v4626_v5 = vpop.eup %4625 }
0x23ab   :  { %v2692_v25 = vmul.f32 %v4626_v5, %v4616_v11  ;;  %v2693_v26 = vmul.f32 %v4626_v5, %v4618_v12 }
0x23ac   :  { %2793 = vperm.xlu0 %4534, %v2695_v3  }
0x23b0   :  { %2796 = vperm.xlu0 %4534, %v2696_v22  }
0x23b4   :  { %2704 = vperm.xlu0 %4534, %v2692_v25  }
0x23b8   :  { %2707 = vperm.xlu0 %4534, %v2693_v26  }
0x23bc   :  { %2885 = vrot.lane.b32.xlu0 %v5402_v38, %s4833_s13 }
0x2427   :  { %v2794_v57 = vpop.permute.xlu0 %2793 }
0x2428   :  { %v2801_v30 = vrot.slane %v2794_v57, %v4996_v50 }
0x242b   :  { %v2797_v14 = vpop.permute.xlu0 %2796 }
0x242c   :  { %v2805_v60 = vrot.slane %v2797_v14, %v4994_v48 }
0x242e   :  { %v2806_v29 = vsel %vm272_vm1, %v2805_v60, %v2801_v30 }
0x242f   :  { %4451 = vmatmul.mubr.msk.f32.vlgmr.msra.gmra.mxu1 %vm390_vm5, %v2806_v29  ;;  %v2705_v28 = vpop.permute.xlu0 %2704 }
0x2430   :  { %3058 = vmatpush1.msra.mxu1 %v5301_v1  ;;  %3097 = vmatprep.mubr.f32.mxu1 %v4836_v0  ;;  %v2712_v9 = vrot.slane %v2705_v28, %v4996_v50 }
0x2431   :  { %3059 = vmatprep.subr.mxu1 %v5303_v10  ;;  %v2520_v10 = vpop.f32.mrf.mxu1 }
0x2432   :  { %3060 = vmatpush1.msra.mxu1 %v5306_v46 }
0x2433   :  { %v2708_v63 = vpop.permute.xlu0 %2707  ;;  %3061 = vmatprep.subr.mxu1 %v5309_v47 }
0x2434   :  { %v2716_v32 = vrot.slane %v2708_v63, %v4994_v48  ;;  %3062 = vmatpush1.msra.mxu1 %v5312_v34 }
0x2435   :  { %3063 = vmatprep.subr.mxu1 %v5315_v2 }
0x2436   :  { %v2717_v16 = vsel %vm272_vm1, %v2716_v32, %v2712_v9  ;;  %3064 = vmatpush1.msra.mxu1 %v5318_v49 }
0x2437   :  { %v3019_v1 = vsel %vm283_vm2, %v2806_v29, %v2717_v16  ;;  %4444 = vmatmul.mubr.msk.f32.vlgmr.msra.gmra.mxu0 %vm390_vm5, %v2717_v16  ;;  %4471 = vmatprep.subr.mxu1 %v4836_v0  ;;  %v2886_v12 = vpop.permute.xlu0 %2885 }
0x2438   :  { %3022 = vst.msk [vmem:[#allocation12 + $0x8] sm:$0x3] %vm286_vm3, %v3019_v1  ;;  %4454 = vmatpush3.msra.mxu0 %v5428_v54  ;;  %4461 = vmatprep.mubr.msk.f32.mxu0 %vm4839_vm4, %v4836_v0  ;;  %v2888_v33 = vadd.f32 %v2886_v12, %v5474_v45 }
0x2439   :  { %4455 = vmatprep.subr.mxu0 %v4836_v0 }
0x243a   :  { %4456 = vmatpush3.msra.mxu0 %v5430_v8  ;;  %v2889_v51 = vmul.f32 0.5, %v2888_v33 }
0x243b   :  { %4457 = vmatprep.subr.mxu0 %v4836_v0 }
0x243c   :  { %4458 = vmatpush3.msra.mxu0 %v5434_v43  ;;  %4627 = vtanh.f32 %v2889_v51 }
0x243d   :  { %4459 = vmatprep.subr.mxu0 %v4836_v0 }
0x243e   :  { %4460 = vmatpush3.msra.mxu0 %v5438_v58 }
0x243f   :  { %4464 = vmatprep.subr.mxu0 %v4836_v0 }
0x2449   :  { %v4628_v13 = vpop.eup %4627 }
0x244a   :  { %v2891_v17 = vmul.f32 0.5, %v4628_v13 }
0x244c   :  { %v2892_v20 = vadd.f32 0.5, %v2891_v17 }
0x24ef   :  { %v2875_v46 = vpop.f32.mrf.mxu1 }
0x24f0   :  { %v2895_v34 = vrot.slane %v2875_v46, 7 }
0x24f1   :  { %v4452_v47 = vpop.f32.mrf.mxu1 }
0x24f7   :  { %v2786_v2 = vpop.f32.mrf.mxu0 }
0x24f8   :  { %v2896_v49 = vsel %vm283_vm2, %v2895_v34, %v2786_v2 }
0x24f9   :  { %2897 = vrot.lane.b32.xlu0 %v2896_v49, %s4833_s13  ;;  %v4445_v11 = vpop.f32.mrf.mxu0 }
0x256b   :  { %v2898_v52 = vpop.permute.xlu0 %2897 }
0x256c   :  { %v2900_v24 = vmul.f32 %v2898_v52, %v2892_v20 }
0x256e   :  { %2908 = vrot.lane.b32.xlu0 %v2900_v24, %s4840_s24 }
0x2572   :  { %2984 = vrot.lane.b32.xlu0 %v5474_v45, %s4841_s25 }
0x2576   :  { %2986 = vrot.lane.b32.xlu0 %v2520_v10, %s4841_s25 }
0x25e0   :  { %v2909_v21 = vpop.permute.xlu0 %2908 }
0x25e1   :  { %4462 = vmatmul.mubr.msk.f32.vlgmr.msra.gmra.mxu0 %vm114_vm0, %v2909_v21 }
0x25e2   :  { %4465 = vmatpush3.msra.mxu0 %v5391_v35  ;;  %4468 = vmatprep.mubr.msk.f32.mxu0 %vm4839_vm4, %v4836_v0 }
0x25e3   :  { %4466 = vmatprep.subr.mxu0 %v4836_v0 }
0x25e4   :  { %4467 = vmatpush3.msra.mxu0 %v5396_v19  ;;  %v2985_v31 = vpop.permute.xlu0 %2984 }
0x25e5   :  { %4478 = vmatprep.subr.mxu0 %v4836_v0 }
0x25e8   :  { %v2987_v37 = vpop.permute.xlu0 %2986 }
0x25e9   :  { %v2988_v40 = vsel %vm660_vm6, %v2985_v31, %v2987_v37 }
0x26a1   :  { %v2978_v45 = vpop.f32.mrf.mxu0 }
0x26a2   :  { %v2982_v39 = vadd.f32 %v2978_v45, %v2902_v36 }
0x26a3   :  { %v4463_v41 = vpop.f32.mrf.mxu0 }
0x26a4   :  { %v2990_v42 = vadd.f32 %v2988_v40, %v2982_v39 }
0x26a6   :  { %4629 = vtanh.f32 %v2990_v42  ;;  %v2991_v44 = vmul.f32 0.5, %v2990_v42 }
0x26a8   :  { %4631 = vtanh.f32 %v2991_v44 }
0x26b3   :  { %v4630_v35 = vpop.eup %4629 }
0x26b4   :  { %2998 = vrot.lane.b32.xlu1 %v4630_v35, %s4841_s25 }
0x26b5   :  { %v4632_v61 = vpop.eup %4631 }
0x26b6   :  { %v2993_v53 = vmul.f32 0.5, %v4632_v61 }
0x26b8   :  { %v2994_v19 = vadd.f32 0.5, %v2993_v53 }
0x26ba   :  { %v2996_v5 = vmul.f32 %v2994_v19, %v5461_v4 }
0x2726   :  { %v2999_v3 = vpop.permute.xlu1 %2998 }
0x2727   :  { %v3001_v22 = vmul.f32 %v2999_v3, %v2994_v19 }
0x2729   :  { %3003 = vrot.lane.b32.xlu0 %v3001_v22, %s4833_s13 }
0x279b   :  { %v3004_v25 = vpop.permute.xlu0 %3003 }
0x279c   :  { %v5563_v26 = vadd.f32 %v3004_v25, %v2996_v5 }
0x279e   :  { %4633 = vtanh.f32 %v5563_v26 }
0x27ab   :  { %v4634_v57 = vpop.eup %4633 }
0x27ac   :  { %3009 = vrot.lane.b32.xlu0 %v4634_v57, %s4841_s25 }
0x281e   :  { %v3010_v14 = vpop.permute.xlu0 %3009 }
0x281f   :  { %v3012_v30 = vmul.f32 %v3010_v14, %v2994_v19 }
0x2821   :  { %3014 = vrot.lane.b32.xlu0 %v3012_v30, %s4833_s13 }
0x2893   :  { %v3015_v60 = vpop.permute.xlu0 %3014 }
0x2894   :  { %3018 = vst.msk [vmem:[#allocation11 + $0x8] sm:$0x3] %vm694_vm7, %v3015_v60  ;;  %4250 = vmatmul.mubr.msk.f32.vlgmr.msra.gmra.mxu1 %vm114_vm0, %v3015_v60 }
0x2895   :  { %4472 = vmatpush3.msra.mxu1 %v5384_v23  ;;  %4475 = vmatprep.mubr.msk.f32.mxu1 %vm4839_vm4, %v4836_v0 }
0x2896   :  { %4473 = vmatprep.subr.mxu1 %v4836_v0 }
0x2897   :  { %4474 = vmatpush3.msra.mxu1 %v5387_v27 }
0x2954   :  { %v5575_v4 = vpop.f32.mrf.mxu1 }
0x2955   :  { %v3115_v29 = vrot.slane %v5575_v4, %v4957_v15 }
0x2957   :  { %v3116_v28 = vcombine.high %v3115_v29, %v3115_v29  ;;  %v3123_v63 = vrot.slane %v3115_v29, %v4957_v15 }
0x2959   :  { %v3130_v9 = vrot.slane %v3116_v28, %v4957_v15  ;;  %v3134_v32 = vrot.slane %v3123_v63, %v4963_v18 }
0x295b   :  { %v3142_v23 = vadd.f32 %v3134_v32, %v5335_v6  ;;  %v3141_v16 = vadd.f32 %v3134_v32, %v5337_v7  ;;  %v3138_v1 = vrot.slane %v3130_v9, %v4963_v18 }
0x295d   :  { %v3146_v10 = vmax.f32 %v3142_v23, 0.0  ;;  %v3145_v27 = vmax.f32 %v3141_v16, 0.0  ;;  %v3143_v46 = vadd.f32 %v3138_v1, %v5341_v55  ;;  %v3144_v47 = vadd.f32 %v3138_v1, %v5343_v56 }
0x295f   :  { %v3157_v34 = vmul.f32 %v5351_v59, %v3146_v10  ;;  %v3156_v2 = vmul.f32 %v5351_v59, %v3145_v27  ;;  %v3147_v49 = vmax.f32 %v3143_v46, 0.0  ;;  %v3148_v7 = vmax.f32 %v3144_v47, 0.0  ;;  %v3101_v46 = vpop.f32.mrf.mxu1 }
0x2961   :  { %v3163_v11 = vsel %vm114_vm0, %v3157_v34, 0.0  ;;  %v3160_v12 = vsel %vm114_vm0, %v3156_v2, 0.0  ;;  %v3158_v6 = vmul.f32 %v5351_v59, %v3147_v49  ;;  %v3159_v55 = vmul.f32 %v5351_v59, %v3148_v7 }
0x2962   :  { %3164 = vadd.xlane.f32.xlu1 %v3163_v11  ;;  %3161 = vadd.xlane.f32.xlu0 %v3160_v12 }
0x2963   :  { %v3166_v33 = vsel %vm114_vm0, %v3158_v6, 0.0  ;;  %v3169_v56 = vsel %vm114_vm0, %v3159_v55, 0.0 }
0x2966   :  { %3167 = vadd.xlane.f32.xlu0 %v3166_v33 }
0x296a   :  { %3170 = vadd.xlane.f32.xlu0 %v3169_v56 }
0x29eb   :  { %v3162_v51 = vpop.xlane.xlu0 %3161  ;;  %v3165_v13 = vpop.xlane.xlu1 %3164 }
0x29ec   :  { %v3183_v20 = vrot.slane %v3165_v13, %v4994_v48  ;;  %v3179_v52 = vrot.slane %v3162_v51, %v4996_v50 }
0x29ee   :  { %v3184_v36 = vsel %vm272_vm1, %v3183_v20, %v3179_v52 }
0x29ef   :  { %v3168_v17 = vpop.xlane.xlu0 %3167 }
0x29f0   :  { %v3188_v21 = vrot.slane %v3168_v17, %v4996_v50 }
0x29f3   :  { %v3171_v24 = vpop.xlane.xlu0 %3170 }
0x29f4   :  { %v3192_v31 = vrot.slane %v3171_v24, %v4994_v48 }
0x29f6   :  { %v3193_v59 = vsel %vm272_vm1, %v3192_v31, %v3188_v21 }
0x29f7   :  { %v3194_v37 = vsel %vm283_vm2, %v3193_v59, %v3184_v36 }
0x29f8   :  { %v3196_v45 = vsel %vm286_vm3, %v3194_v37, -inf }
0x29f9   :  { %3197 = vmax.xlane.f32.xlu0 %v3196_v45 }
0x2a82   :  { %v3198_v39 = vpop.xlane.xlu0 %3197 }
0x2a83   :  { %v3203_v40 = vrot.slane %v3198_v39, %v4963_v18  ;;  %v3207_v41 = vrot.slane %v3198_v39, %v5006_v62 }
0x2a85   :  { %v3210_v42 = vsub.f32 %v3162_v51, %v3203_v40  ;;  %v3211_v35 = vsub.f32 %v3165_v13, %v3203_v40  ;;  %v3212_v44 = vsub.f32 %v3168_v17, %v3207_v41  ;;  %v3213_v19 = vsub.f32 %v3171_v24, %v3207_v41 }
0x2a87   :  { %v3214_v61 = vmul.f32 1.442695, %v3210_v42  ;;  %v3216_v53 = vmul.f32 1.442695, %v3211_v35  ;;  %v3218_v3 = vmul.f32 1.442695, %v3212_v44 }
0x2a88   :  { %v3220_v22 = vmul.f32 1.442695, %v3213_v19 }
0x2a89   :  { %4635 = vpow2.f32 %v3214_v61 }
0x2a8a   :  { %4637 = vpow2.f32 %v3216_v53  ;;  %v3483_v53 = vld [vmem:[#allocation7 + $0xa] sm:$0x3] }
0x2a8b   :  { %4639 = vpow2.f32 %v3218_v3 }
0x2a8c   :  { %4641 = vpow2.f32 %v3220_v22 }
0x2a96   :  { %v4636_v5 = vpop.eup %4635 }
0x2a97   :  { %v4638_v25 = vpop.eup %4637  ;;  %3227 = vperm.xlu1 %4533, %v4636_v5  }
0x2a98   :  { %3230 = vperm.xlu0 %4534, %v4638_v25   ;;  %v4640_v57 = vpop.eup %4639 }
0x2a99   :  { %v4642_v14 = vpop.eup %4641 }
0x2a9b   :  { %3233 = vperm.xlu1 %4533, %v4640_v57  }
0x2a9f   :  { %3236 = vperm.xlu1 %4533, %v4642_v14  }
0x2b12   :  { %v3228_v30 = vpop.permute.xlu1 %3227 }
0x2b13   :  { %v3231_v60 = vpop.permute.xlu0 %3230  ;;  %v3241_v63 = vrot.slane %v3228_v30, %v4996_v50 }
0x2b14   :  { %v3245_v28 = vrot.slane %v3231_v60, %v4994_v48 }
0x2b16   :  { %v3234_v29 = vpop.permute.xlu1 %3233  ;;  %v3246_v16 = vsel %vm272_vm1, %v3245_v28, %v3241_v63 }
0x2b17   :  { %v3250_v32 = vrot.slane %v3234_v29, %v4996_v50 }
0x2b1a   :  { %v3237_v9 = vpop.permute.xlu1 %3236 }
0x2b1b   :  { %v3254_v23 = vrot.slane %v3237_v9, %v4994_v48 }
0x2b1d   :  { %v3255_v1 = vsel %vm272_vm1, %v3254_v23, %v3250_v32 }
0x2b1e   :  { %v3256_v10 = vsel %vm283_vm2, %v3255_v1, %v3246_v16  ;;  %v3611_v1 = vld [vmem:[#allocation8 + $0x38] sm:$0xff] }
0x2b1f   :  { %v3258_v27 = vsel %vm286_vm3, %v3256_v10, 0.0  ;;  %v3610_v10 = vld [vmem:[#allocation8 + $0x30] sm:$0xff]  ;;  %3638 = vmatprep.subr.mxu1 %v3611_v1 }
0x2b20   :  { %3259 = vadd.xlane.f32.xlu0 %v3258_v27  ;;  %v3609_v27 = vld [vmem:[#allocation8 + $0x28] sm:$0xff] }
0x2b36   :  { %3567 = vrot.lane.b32.xlu0 %v3101_v46, %s4841_s25  ;;  %v3608_v46 = vld [vmem:[#allocation8 + $0x20] sm:$0xff] }
0x2ba9   :  { %v3260_v47 = vpop.xlane.xlu0 %3259 }
0x2baa   :  { %v3269_v34 = vrot.slane %v3260_v47, %v5006_v62  ;;  %v3265_v2 = vrot.slane %v3260_v47, %v4963_v18  ;;  %v3607_v47 = vld [vmem:[#allocation8 + $0x18] sm:$0xff] }
0x2bac   :  { %4643 = vrcp.f32 %v3269_v34  ;;  %v3606_v34 = vld [vmem:[#allocation8 + $0x10] sm:$0xff] }
0x2bad   :  { %4645 = vrcp.f32 %v3265_v2  ;;  %v3568_v22 = vpop.permute.xlu0 %3567  ;;  %v3605_v2 = vld [vmem:[#allocation8 + $0x8] sm:$0xff] }
0x2bb9   :  { %v4644_v49 = vpop.eup %4643 }
0x2bba   :  { %v3276_v11 = vmul.f32 %v4644_v49, %v4640_v57  ;;  %v3277_v12 = vmul.f32 %v4644_v49, %v4642_v14  ;;  %v4646_v6 = vpop.eup %4645  ;;  %v3604_v49 = vld [vmem:[#allocation8] sm:$0xff] }
0x2bbb   :  { %v3273_v7 = vmul.f32 %v4646_v6, %v4636_v5  ;;  %v3274_v33 = vmul.f32 %v4646_v6, %v4638_v25 }
0x2bbc   :  { %3374 = vperm.xlu1 %4533, %v3276_v11  }
0x2bc0   :  { %3377 = vperm.xlu1 %4533, %v3277_v12  }
0x2bc4   :  { %3285 = vperm.xlu1 %4533, %v3273_v7  }
0x2bc8   :  { %3288 = vperm.xlu1 %4533, %v3274_v33  }
0x2bcc   :  { %3466 = vrot.lane.b32.xlu1 %v5402_v38, %s4833_s13 }
0x2c37   :  { %v3375_v55 = vpop.permute.xlu1 %3374 }
0x2c38   :  { %v3382_v51 = vrot.slane %v3375_v55, %v4996_v50 }
0x2c3b   :  { %v3378_v56 = vpop.permute.xlu1 %3377 }
0x2c3c   :  { %v3386_v13 = vrot.slane %v3378_v56, %v4994_v48 }
0x2c3e   :  { %v3387_v17 = vsel %vm272_vm1, %v3386_v13, %v3382_v51  ;;  %v3686_v51 = vld [vmem:[#allocation5 + $0x8] sm:$0xff]  ;;  %v3685_v13 = vld [vmem:[#allocation5] sm:$0xff] }
0x2c3f   :  { %4476 = vmatmul.mubr.msk.f32.vlgmr.msra.gmra.mxu1 %vm390_vm5, %v3387_v17  ;;  %v3286_v20 = vpop.permute.xlu1 %3285 }
0x2c40   :  { %3678 = vmatprep.mubr.f32.mxu1 %v4836_v0  ;;  %v3293_v24 = vrot.slane %v3286_v20, %v4996_v50  ;;  %3639 = vmatpush1.msra.mxu1 %v3610_v10 }
0x2c41   :  { %3640 = vmatprep.subr.mxu1 %v3609_v27 }
0x2c42   :  { %3641 = vmatpush1.msra.mxu1 %v3608_v46 }
0x2c43   :  { %v3289_v52 = vpop.permute.xlu1 %3288  ;;  %3642 = vmatprep.subr.mxu1 %v3607_v47 }
0x2c44   :  { %v3297_v21 = vrot.slane %v3289_v52, %v4994_v48  ;;  %3643 = vmatpush1.msra.mxu1 %v3606_v34  ;;  %v3688_v52 = vld [vmem:[#allocation5 + $0x18] sm:$0xff] }
0x2c45   :  { %3644 = vmatprep.subr.mxu1 %v3605_v2 }
0x2c46   :  { %v3298_v38 = vsel %vm272_vm1, %v3297_v21, %v3293_v24  ;;  %3645 = vmatpush1.msra.mxu1 %v3604_v49  ;;  %v3687_v24 = vld [vmem:[#allocation5 + $0x10] sm:$0xff] }
0x2c47   :  { %v3600_v31 = vsel %vm283_vm2, %v3387_v17, %v3298_v38  ;;  %4469 = vmatmul.mubr.msk.f32.vlgmr.msra.gmra.mxu0 %vm390_vm5, %v3298_v38  ;;  %4496 = vmatprep.subr.mxu1 %v4836_v0 }
0x2c48   :  { %3603 = vst.msk [vmem:[#allocation12 + $0xa] sm:$0x3] %vm286_vm3, %v3600_v31  ;;  %4479 = vmatpush3.msra.mxu0 %v5428_v54  ;;  %4486 = vmatprep.mubr.msk.f32.mxu0 %vm4839_vm4, %v4836_v0 }
0x2c49   :  { %4480 = vmatprep.subr.mxu0 %v4836_v0 }
0x2c4a   :  { %4481 = vmatpush3.msra.mxu0 %v5430_v8  ;;  %v3467_v8 = vpop.permute.xlu1 %3466 }
0x2c4b   :  { %4482 = vmatprep.subr.mxu0 %v4836_v0  ;;  %v3469_v40 = vadd.f32 %v3467_v8, %v5575_v4 }
0x2c4c   :  { %4483 = vmatpush3.msra.mxu0 %v5434_v43 }
0x2c4d   :  { %4484 = vmatprep.subr.mxu0 %v4836_v0  ;;  %v3470_v41 = vmul.f32 0.5, %v3469_v40 }
0x2c4e   :  { %4485 = vmatpush3.msra.mxu0 %v5438_v58 }
0x2c4f   :  { %4489 = vmatprep.subr.mxu0 %v4836_v0  ;;  %4647 = vtanh.f32 %v3470_v41 }
0x2c5c   :  { %v4648_v43 = vpop.eup %4647 }
0x2c5d   :  { %v3472_v42 = vmul.f32 0.5, %v4648_v43 }
0x2c5f   :  { %v3473_v35 = vadd.f32 0.5, %v3472_v42 }
0x2cff   :  { %v3456_v36 = vpop.f32.mrf.mxu1 }
0x2d00   :  { %v3476_v54 = vrot.slane %v3456_v36, 7  ;;  %v4257_v36 = vld [vmem:[%s5753_s7] ss:$0 sm:$0xff] }
0x2d01   :  { %v4477_v59 = vpop.f32.mrf.mxu1 }
0x2d07   :  { %v3367_v37 = vpop.f32.mrf.mxu0 }
0x2d08   :  { %v3477_v45 = vsel %vm283_vm2, %v3476_v54, %v3367_v37 }
0x2d09   :  { %3478 = vrot.lane.b32.xlu1 %v3477_v45, %s4833_s13  ;;  %v4470_v39 = vpop.f32.mrf.mxu0 }
0x2d7b   :  { %v3479_v58 = vpop.permute.xlu1 %3478 }
0x2d7c   :  { %v3481_v44 = vmul.f32 %v3479_v58, %v3473_v35 }
0x2d7e   :  { %3489 = vrot.lane.b32.xlu1 %v3481_v44, %s4840_s24 }
0x2d82   :  { %3565 = vrot.lane.b32.xlu1 %v5575_v4, %s4841_s25 }
0x2df0   :  { %v3490_v61 = vpop.permute.xlu1 %3489 }
0x2df1   :  { %4487 = vmatmul.mubr.msk.f32.vlgmr.msra.gmra.mxu0 %vm114_vm0, %v3490_v61 }
0x2df2   :  { %4493 = vmatprep.mubr.msk.f32.mxu0 %vm4839_vm4, %v4836_v0 }
0x2df4   :  { %v3566_v19 = vpop.permute.xlu1 %3565 }
0x2df5   :  { %v3569_v25 = vsel %vm660_vm6, %v3566_v19, %v3568_v22 }
0x2eb1   :  { %v3559_v3 = vpop.f32.mrf.mxu0 }
0x2eb2   :  { %v3563_v5 = vadd.f32 %v3559_v3, %v3483_v53 }
0x2eb3   :  { %v4488_v57 = vpop.f32.mrf.mxu0 }
0x2eb4   :  { %v3571_v14 = vadd.f32 %v3569_v25, %v3563_v5 }
0x2eb6   :  { %4649 = vtanh.f32 %v3571_v14  ;;  %v3572_v4 = vmul.f32 0.5, %v3571_v14 }
0x2eb8   :  { %4651 = vtanh.f32 %v3572_v4 }
0x2ec3   :  { %v4650_v30 = vpop.eup %4649 }
0x2ec4   :  { %3579 = vrot.lane.b32.xlu1 %v4650_v30, %s4841_s25 }
0x2ec5   :  { %v4652_v60 = vpop.eup %4651 }
0x2ec6   :  { %v3574_v29 = vmul.f32 0.5, %v4652_v60 }
0x2ec8   :  { %v3575_v28 = vadd.f32 0.5, %v3574_v29 }
0x2eca   :  { %v3577_v32 = vmul.f32 %v3575_v28, %v5563_v26 }
0x2f36   :  { %v3580_v63 = vpop.permute.xlu1 %3579 }
0x2f37   :  { %v3582_v9 = vmul.f32 %v3580_v63, %v3575_v28 }
0x2f39   :  { %3584 = vrot.lane.b32.xlu1 %v3582_v9, %s4833_s13 }
0x2fab   :  { %v3585_v23 = vpop.permute.xlu1 %3584 }
0x2fac   :  { %v5652_v16 = vadd.f32 %v3585_v23, %v3577_v32 }
0x2fae   :  { %4653 = vtanh.f32 %v5652_v16 }
0x2fbb   :  { %v4654_v26 = vpop.eup %4653 }
0x2fbc   :  { %3590 = vrot.lane.b32.xlu1 %v4654_v26, %s4841_s25 }
0x302e   :  { %v3591_v11 = vpop.permute.xlu1 %3590 }
0x302f   :  { %v3593_v12 = vmul.f32 %v3591_v11, %v3575_v28 }
0x3031   :  { %3595 = vrot.lane.b32.xlu1 %v3593_v12, %s4833_s13 }
0x30a3   :  { %v3596_v6 = vpop.permute.xlu1 %3595 }
0x30a4   :  { %3599 = vst.msk [vmem:[#allocation11 + $0xa] sm:$0x3] %vm694_vm7, %v3596_v6  ;;  %4256 = vmatmul.mubr.msk.f32.vlgmr.msra.gmra.mxu1 %vm114_vm0, %v3596_v6 }
0x30a5   :  { %4500 = vmatprep.mubr.msk.f32.mxu1 %vm4839_vm4, %v4836_v0 }
0x3164   :  { %v5662_v7 = vpop.f32.mrf.mxu1 }
0x3165   :  { %v3696_v33 = vrot.slane %v5662_v7, %v4957_v15 }
0x3167   :  { %v3697_v55 = vcombine.high %v3696_v33, %v3696_v33  ;;  %v3704_v56 = vrot.slane %v3696_v33, %v4957_v15 }
0x3169   :  { %v3711_v17 = vrot.slane %v3697_v55, %v4957_v15  ;;  %v3715_v20 = vrot.slane %v3704_v56, %v4963_v18 }
0x316b   :  { %v3723_v21 = vadd.f32 %v3715_v20, %v3686_v51  ;;  %v3722_v38 = vadd.f32 %v3715_v20, %v3685_v13  ;;  %v3719_v31 = vrot.slane %v3711_v17, %v4963_v18 }
0x316d   :  { %v3727_v59 = vmax.f32 %v3723_v21, 0.0  ;;  %v3726_v54 = vmax.f32 %v3722_v38, 0.0  ;;  %v3725_v37 = vadd.f32 %v3719_v31, %v3688_v52  ;;  %v3724_v45 = vadd.f32 %v3719_v31, %v3687_v24 }
0x316f   :  { %v3738_v39 = vmul.f32 %v4257_v36, %v3727_v59  ;;  %v3737_v8 = vmul.f32 %v4257_v36, %v3726_v54  ;;  %v3729_v40 = vmax.f32 %v3725_v37, 0.0  ;;  %v3728_v15 = vmax.f32 %v3724_v45, 0.0  ;;  %v3862_v54 = vld [vmem:[#allocation2 + $0x18] sm:$0xff]  ;;  %v3861_v45 = vld [vmem:[#allocation2 + $0x10] sm:$0xff] }
0x3170   :  { %4497 = vmatpush3.msra.mxu1 %v3862_v54 }
0x3171   :  { %v3744_v41 = vsel %vm114_vm0, %v3738_v39, 0.0  ;;  %v3741_v43 = vsel %vm114_vm0, %v3737_v8, 0.0  ;;  %v3740_v42 = vmul.f32 %v4257_v36, %v3729_v40  ;;  %v3739_v35 = vmul.f32 %v4257_v36, %v3728_v15  ;;  %4498 = vmatprep.subr.mxu1 %v4836_v0  ;;  %v3860_v8 = vld [vmem:[#allocation2 + $0x8] sm:$0xff]  ;;  %v4260_v15 = vld [vmem:[%s5754_s8] ss:$0 sm:$0xff]  ;;  %s4842_s8 = smov [#allocation12]  }
0x3172   :  { %3745 = vadd.xlane.f32.xlu0 %v3744_v41  ;;  %3742 = vadd.xlane.f32.xlu1 %v3741_v43  ;;  %s4202_s5 = sshll.u32 %s4842_s8, 4  ;;  %s4203_s5 = int_to_ptr.vmem [resolvable:$true] %s4202_s5 }
0x3173   :  { %v3750_v58 = vsel %vm114_vm0, %v3740_v42, 0.0  ;;  %v3747_v44 = vsel %vm114_vm0, %v3739_v35, 0.0  ;;  %4499 = vmatpush3.msra.mxu1 %v3861_v45  ;;  %4490 = vmatpush3.msra.mxu0 %v3860_v8  ;;  %s4775_s15 = scalar_lea.vmem %s4203_s5, 224  ;;  %p4780_p12 = scmp.lt.s32.totalorder %s4203_s5, %s4203_s5 }
0x3174   :  { %4491 = vmatprep.subr.mxu0 %v4836_v0  ;;  %p4776_p11 = scmp.ne.s32.totalorder %s4203_s5, %s4775_s15  ;;  %p4781_p13 = scmp.lt.s32.totalorder %s4775_s15, %s4775_s15 }
0x3176   :  { %3751 = vadd.xlane.f32.xlu1 %v3750_v58  ;;  %3748 = vadd.xlane.f32.xlu0 %v3747_v44  ;;  %p4782_p0 = por %p4781_p13, %p4780_p12 }
0x3178   :  { %p4783_p1 = pnand %p4782_p0, %p4776_p11 }
0x31fb   :  { %v3746_v61 = vpop.xlane.xlu0 %3745  ;;  %v3743_v53 = vpop.xlane.xlu1 %3742 }
0x31fc   :  { %v3764_v19 = vrot.slane %v3746_v61, %v4994_v48  ;;  %v3760_v3 = vrot.slane %v3743_v53, %v4996_v50 }
0x31fe   :  { %v3765_v14 = vsel %vm272_vm1, %v3764_v19, %v3760_v3 }
0x31ff   :  { %v3752_v22 = vpop.xlane.xlu1 %3751  ;;  %v3749_v5 = vpop.xlane.xlu0 %3748 }
0x3200   :  { %v3773_v25 = vrot.slane %v3752_v22, %v4994_v48  ;;  %v3769_v57 = vrot.slane %v3749_v5, %v4996_v50 }
0x3202   :  { %v3774_v30 = vsel %vm272_vm1, %v3773_v25, %v3769_v57 }
0x3203   :  { %v3775_v4 = vsel %vm283_vm2, %v3774_v30, %v3765_v14  ;;  %v4068_v30 = vld [vmem:[#allocation10 + $0x18] sm:$0xff] }
0x3204   :  { %v3777_v60 = vsel %vm286_vm3, %v3775_v4, -inf  ;;  %v4067_v4 = vld [vmem:[#allocation10 + $0x10] sm:$0xff] }
0x3205   :  { %3778 = vmax.xlane.f32.xlu0 %v3777_v60  ;;  %v4066_v60 = vld [vmem:[#allocation10 + $0x8] sm:$0xff] }
0x328e   :  { %v3779_v29 = vpop.xlane.xlu0 %3778 }
0x328f   :  { %v3784_v28 = vrot.slane %v3779_v29, %v4963_v18  ;;  %v3788_v63 = vrot.slane %v3779_v29, %v5006_v62 }
0x3291   :  { %v3791_v9 = vsub.f32 %v3743_v53, %v3784_v28  ;;  %v3792_v32 = vsub.f32 %v3746_v61, %v3784_v28  ;;  %v3793_v23 = vsub.f32 %v3749_v5, %v3788_v63  ;;  %v3794_v27 = vsub.f32 %v3752_v22, %v3788_v63  ;;  %v3682_v5 = vpop.f32.mrf.mxu1  ;;  %v4065_v28 = vld [vmem:[#allocation10] sm:$0xff] }
0x3293   :  { %v3795_v1 = vmul.f32 1.442695, %v3791_v9  ;;  %v3797_v10 = vmul.f32 1.442695, %v3792_v32  ;;  %v3799_v46 = vmul.f32 1.442695, %v3793_v23 }
0x3294   :  { %v3801_v47 = vmul.f32 1.442695, %v3794_v27 }
0x3295   :  { %4655 = vpow2.f32 %v3795_v1 }
0x3296   :  { %4657 = vpow2.f32 %v3797_v10 }
0x3297   :  { %4659 = vpow2.f32 %v3799_v46 }
0x3298   :  { %4661 = vpow2.f32 %v3801_v47 }
0x32a2   :  { %v4656_v34 = vpop.eup %4655 }
0x32a3   :  { %v4658_v2 = vpop.eup %4657  ;;  %3808 = vperm.xlu1 %4533, %v4656_v34  }
0x32a4   :  { %3811 = vperm.xlu0 %4534, %v4658_v2   ;;  %v4660_v49 = vpop.eup %4659 }
0x32a5   :  { %v4662_v26 = vpop.eup %4661 }
0x32a7   :  { %3814 = vperm.xlu1 %4533, %v4660_v49  }
0x32ab   :  { %3817 = vperm.xlu1 %4533, %v4662_v26  }
0x331e   :  { %v3809_v11 = vpop.permute.xlu1 %3808 }
0x331f   :  { %v3812_v12 = vpop.permute.xlu0 %3811  ;;  %v3822_v55 = vrot.slane %v3809_v11, %v4996_v50 }
0x3320   :  { %v3826_v33 = vrot.slane %v3812_v12, %v4994_v48 }
0x3322   :  { %v3815_v6 = vpop.permute.xlu1 %3814  ;;  %v3827_v17 = vsel %vm272_vm1, %v3826_v33, %v3822_v55 }
0x3323   :  { %v3831_v51 = vrot.slane %v3815_v6, %v4996_v50 }
0x3326   :  { %v3818_v56 = vpop.permute.xlu1 %3817 }
0x3327   :  { %v3835_v13 = vrot.slane %v3818_v56, %v4994_v48 }
0x3329   :  { %v3836_v20 = vsel %vm272_vm1, %v3835_v13, %v3831_v51 }
0x332a   :  { %v3837_v52 = vsel %vm283_vm2, %v3836_v20, %v3827_v17 }
0x332b   :  { %v3839_v24 = vsel %vm286_vm3, %v3837_v52, 0.0 }
0x332c   :  { %3840 = vadd.xlane.f32.xlu1 %v3839_v24 }
0x33b5   :  { %v3841_v21 = vpop.xlane.xlu1 %3840 }
0x33b6   :  { %v3850_v38 = vrot.slane %v3841_v21, %v5006_v62  ;;  %v3846_v31 = vrot.slane %v3841_v21, %v4963_v18  ;;  %v3859_v62 = vld [vmem:[#allocation2] sm:$0xff] }
0x33b7   :  { %4492 = vmatpush3.msra.mxu0 %v3859_v62 }
0x33b8   :  { %4663 = vrcp.f32 %v3850_v38  ;;  %4503 = vmatprep.subr.mxu0 %v4836_v0 }
0x33b9   :  { %4665 = vrcp.f32 %v3846_v31 }
0x33c5   :  { %v4664_v36 = vpop.eup %4663 }
0x33c6   :  { %v3857_v59 = vmul.f32 %v4664_v36, %v4660_v49  ;;  %v3858_v37 = vmul.f32 %v4664_v36, %v4662_v26  ;;  %v4666_v39 = vpop.eup %4665 }
0x33c7   :  { %v3854_v40 = vmul.f32 %v4666_v39, %v4656_v34  ;;  %v3855_v18 = vmul.f32 %v4666_v39, %v4658_v2  ;;  %v4064_v34 = vld [vmem:[#allocation7 + $0xc] sm:$0x3] }
0x33c8   :  { %3955 = vperm.xlu0 %4534, %v3857_v59  }
0x33cc   :  { %3958 = vperm.xlu0 %4534, %v3858_v37  }
0x33d0   :  { %3866 = vperm.xlu0 %4534, %v3854_v40  }
0x33d4   :  { %3869 = vperm.xlu0 %4534, %v3855_v18  }
0x33d8   :  { %4047 = vrot.lane.b32.xlu0 %v4260_v15, %s4833_s13 }
0x3443   :  { %v3956_v41 = vpop.permute.xlu0 %3955 }
0x3444   :  { %v3963_v42 = vrot.slane %v3956_v41, %v4996_v50 }
0x3447   :  { %v3959_v43 = vpop.permute.xlu0 %3958 }
0x3448   :  { %v3967_v35 = vrot.slane %v3959_v43, %v4994_v48 }
0x344a   :  { %v3968_v58 = vsel %vm272_vm1, %v3967_v35, %v3963_v42 }
0x344b   :  { %4501 = vmatmul.mubr.msk.f32.vlgmr.msra.gmra.mxu1 %vm390_vm5, %v3968_v58  ;;  %v3867_v44 = vpop.permute.xlu0 %3866 }
0x344c   :  { %v3874_v53 = vrot.slane %v3867_v44, %v4996_v50 }
0x344f   :  { %v3870_v61 = vpop.permute.xlu0 %3869 }
0x3450   :  { %v3878_v19 = vrot.slane %v3870_v61, %v4994_v48 }
0x3452   :  { %v3879_v3 = vsel %vm272_vm1, %v3878_v19, %v3874_v53 }
0x3453   :  { %v4181_v22 = vsel %vm283_vm2, %v3968_v58, %v3879_v3  ;;  %4494 = vmatmul.mubr.msk.f32.vlgmr.msra.gmra.mxu0 %vm390_vm5, %v3879_v3  ;;  %v4048_v63 = vpop.permute.xlu0 %4047 }
0x3454   :  { %4184 = vst.msk [vmem:[#allocation12 + $0xc] sm:$0x3] %vm286_vm3, %v4181_v22  ;;  %4511 = vmatprep.mubr.msk.f32.mxu0 %vm4839_vm4, %v4836_v0  ;;  %4504 = vmatpush3.msra.mxu0 %v4068_v30  ;;  %v4050_v9 = vadd.f32 %v4048_v63, %v5662_v7 }
0x3455   :  { %4505 = vmatprep.subr.mxu0 %v4836_v0 }
0x3456   :  { %4506 = vmatpush3.msra.mxu0 %v4067_v4  ;;  %v4051_v32 = vmul.f32 0.5, %v4050_v9 }
0x3457   :  { %4507 = vmatprep.subr.mxu0 %v4836_v0 }
0x3458   :  { %4508 = vmatpush3.msra.mxu0 %v4066_v60  ;;  %4667 = vtanh.f32 %v4051_v32 }
0x3459   :  { %4509 = vmatprep.subr.mxu0 %v4836_v0 }
0x345a   :  { %4510 = vmatpush3.msra.mxu0 %v4065_v28 }
0x3465   :  { %v4668_v23 = vpop.eup %4667 }
0x3466   :  { %v4053_v1 = vmul.f32 0.5, %v4668_v23 }
0x3468   :  { %v4054_v10 = vadd.f32 0.5, %v4053_v1 }
0x350b   :  { %v4037_v25 = vpop.f32.mrf.mxu1 }
0x350c   :  { %v4057_v14 = vrot.slane %v4037_v25, 7 }
0x350d   :  { %v4502_v57 = vpop.f32.mrf.mxu1 }
0x3513   :  { %v3948_v50 = vpop.f32.mrf.mxu0 }
0x3514   :  { %v4058_v48 = vsel %vm283_vm2, %v4057_v14, %v3948_v50 }
0x3515   :  { %4059 = vrot.lane.b32.xlu0 %v4058_v48, %s4833_s13  ;;  %v4495_v29 = vpop.f32.mrf.mxu0 }
0x3587   :  { %v4060_v27 = vpop.permute.xlu0 %4059 }
0x3588   :  { %v4062_v46 = vmul.f32 %v4060_v27, %v4054_v10 }
0x358a   :  { %4070 = vrot.lane.b32.xlu0 %v4062_v46, %s4840_s24 }
0x358e   :  { %4146 = vrot.lane.b32.xlu0 %v5662_v7, %s4841_s25 }
0x3592   :  { %4148 = vrot.lane.b32.xlu0 %v3682_v5, %s4841_s25 }
0x35fc   :  { %v4071_v47 = vpop.permute.xlu0 %4070 }
0x35fd   :  { %4512 = vmatmul.mubr.msk.f32.vlgmr.msra.gmra.mxu0 %vm114_vm0, %v4071_v47 }
0x3600   :  { %v4147_v0 = vpop.permute.xlu0 %4146 }
0x3604   :  { %v4149_v2 = vpop.permute.xlu0 %4148 }
0x3605   :  { %v4150_v11 = vsel %vm660_vm6, %v4147_v0, %v4149_v2 }
0x36bd   :  { %v4140_v49 = vpop.f32.mrf.mxu0 }
0x36be   :  { %v4144_v26 = vadd.f32 %v4140_v49, %v4064_v34 }
0x36bf   :  { %v4513_v12 = vpop.f32.mrf.mxu0 }
0x36c0   :  { %v4152_v6 = vadd.f32 %v4150_v11, %v4144_v26 }
0x36c2   :  { %4669 = vtanh.f32 %v4152_v6  ;;  %v4153_v55 = vmul.f32 0.5, %v4152_v6 }
0x36c4   :  { %4671 = vtanh.f32 %v4153_v55 }
0x36cf   :  { %v4670_v33 = vpop.eup %4669 }
0x36d0   :  { %4160 = vrot.lane.b32.xlu1 %v4670_v33, %s4841_s25 }
0x36d1   :  { %v4672_v7 = vpop.eup %4671 }
0x36d2   :  { %v4155_v56 = vmul.f32 0.5, %v4672_v7 }
0x36d4   :  { %v4156_v51 = vadd.f32 0.5, %v4155_v56 }
0x36d6   :  { %v4158_v20 = vmul.f32 %v4156_v51, %v5652_v16 }
0x3742   :  { %v4161_v13 = vpop.permute.xlu1 %4160 }
0x3743   :  { %v4163_v17 = vmul.f32 %v4161_v13, %v4156_v51 }
0x3745   :  { %4165 = vrot.lane.b32.xlu0 %v4163_v17, %s4833_s13 }
0x37b7   :  { %v4166_v52 = vpop.permute.xlu0 %4165 }
0x37b8   :  { %v4168_v24 = vadd.f32 %v4166_v52, %v4158_v20 }
0x37ba   :  { %4673 = vtanh.f32 %v4168_v24 }
0x37c7   :  { %v4674_v21 = vpop.eup %4673 }
0x37c8   :  { %4171 = vrot.lane.b32.xlu0 %v4674_v21, %s4841_s25 }
0x37c9   :  { %4786 = shalt.err (!%p4783_p1)
}
0x37ca   :  { %4208 = dma.vmem_to_hbm [thread:$0]  %s4203_s5, 224, %s5756_s10, [#allocation13], %s4833_s13, %s4833_s13, %s4834_s14  }
0x37cb   :  { %s4843_s20 = smov [#allocation11]  }
0x37cc   :  { %s4190_s0 = sshll.u32 %s4843_s20, 4  ;;  %s4191_s0 = int_to_ptr.vmem [resolvable:$true] %s4190_s0 }
0x37cd   :  { %s4795_s21 = scalar_lea.vmem %s4191_s0, 224  ;;  %p4800_p3 = scmp.lt.s32.totalorder %s4191_s0, %s4191_s0 }
0x37ce   :  { %p4796_p2 = scmp.ne.s32.totalorder %s4191_s0, %s4795_s21  ;;  %p4801_p4 = scmp.lt.s32.totalorder %s4795_s21, %s4795_s21 }
0x37d0   :  { %p4802_p5 = por %p4801_p4, %p4800_p3 }
0x37d2   :  { %p4803_p6 = pnand %p4802_p5, %p4796_p2 }
0x383a   :  { %v4172_v16 = vpop.permute.xlu0 %4171 }
0x383b   :  { %v4174_v38 = vmul.f32 %v4172_v16, %v4156_v51 }
0x383d   :  { %4176 = vrot.lane.b32.xlu0 %v4174_v38, %s4833_s13 }
0x38af   :  { %v4177_v31 = vpop.permute.xlu0 %4176 }
0x38b0   :  { %4180 = vst.msk [vmem:[#allocation11 + $0xc] sm:$0x3] %vm694_vm7, %v4177_v31 }
0x38b1   :  { %4806 = shalt.err (!%p4803_p6)
}
0x38b2   :  { %4196 = dma.vmem_to_hbm [thread:$0]  %s4191_s0, 224, %s5755_s9, [#allocation4], %s4833_s13, %s4833_s13, %s4834_s14  }
0x38b3   :  { %4821 = dma.done.wait [#allocation4], 224  }
0x38b4   :  { %4822 = vsyncadd [#allocation4], 4294967072 }
0x38b5   :  { %4823 = dma.done.wait [#allocation13], 224  }
0x38b6   :  { %4824 = vsyncadd [#allocation13], 4294967072 }
0x38b7   :  { %4215 = vsyncpa [#allocation3], 1 }
0x38b8   :  { %4216 = vsyncpa [#allocation6], 1 }
0x38b9   :  { %4217 = vsyncpa [#allocation9], 1 }
0x38ba   :  { %4218 = vsyncpa [#allocation4], 1 }
0x38bb   :  { %4219 = vsyncpa [#allocation13], 1 }

</bundles_post_ra>
